<compile_context>
chip_gen: v5e
topology: v5e:2x2
jax: 0.10.0
libtpu: 0.0.40
codegen_flags: <defaults>
</compile_context>

<pallas_src>
import functools
from dataclasses import dataclass

import jax
import jax.numpy as jnp
from jax.experimental import pallas as pl
from jax.experimental.pallas import tpu as pltpu


# ----------------------------- config ---------------------------------------
@dataclass(frozen=True)
class Config:
    n_vocab: int = 64
    n_embed: int = 32
    n_hidden_E: int = 32
    n_layers_E: int = 1
    n_hidden_G: int = 32
    n_layers_G: int = 1
    n_z: int = 16
    n_highway_layers: int = 2


# ----------------------------- shared helpers --------------------------------
def _lstm_cell(gates, c_prev, H):
    """gates: [B, 4H] packed (i, f, g, o) as in PyTorch. One full-vreg sigmoid
    and one full-vreg tanh, then cheap lane slices for the recombination."""
    sig = jax.nn.sigmoid(gates)
    tnh = jnp.tanh(gates)
    i_g = sig[:, 0:H]
    f_g = sig[:, H:2 * H]
    g_g = tnh[:, 2 * H:3 * H]
    o_g = sig[:, 3 * H:4 * H]
    c_new = f_g * c_prev + i_g * g_g
    h_new = o_g * jnp.tanh(c_new)
    return h_new, c_new


# ----------------------------- Pallas kernels --------------------------------
def _highway_kernel(x_ref, *rest):
    """All highway layers in one call. Per layer one fused weight [E, 3E]
    packing (gate | nonlinear | linear) -> a single MXU push per layer."""
    o_ref = rest[-1]
    wb = rest[:-1]
    n_layers = len(wb) // 2
    E = x_ref.shape[-1]
    x = x_ref[...]
    for l in range(n_layers):
        w = wb[2 * l][...]
        b = wb[2 * l + 1][...]
        proj = jnp.dot(x, w, preferred_element_type=jnp.float32) + b   # [N, 3E]
        gate = jax.nn.sigmoid(proj[:, 0:E])
        nonlin = jnp.maximum(proj[:, E:2 * E], 0.0)
        lin = proj[:, 2 * E:3 * E]
        x = gate * nonlin + (1.0 - gate) * lin
    o_ref[...] = x.astype(o_ref.dtype)


def _bilstm_kernel(x_ref, wih_ref, whhf_ref, whhb_ref, b_ref, out_ref, eh_ref):
    """Bidirectional single-layer LSTM over the whole sequence in one body.

    x_ref:   [B, T, E]
    wih_ref: [E, 8H]  (fwd 4H | bwd 4H), b_ref: [1, 8H]
    out_ref: [B, T, 2H]  (fwd | bwd, per time step)
    eh_ref:  [B, 2H]     final hidden states concat(fwd, bwd)
    """
    B, T, E = x_ref.shape
    H = whhf_ref.shape[0]

    # Hoisted input projection for BOTH directions in one batched matmul.
    x_flat = x_ref[...].reshape(B * T, E)
    pre = (jnp.dot(x_flat, wih_ref[...], preferred_element_type=jnp.float32)
           + b_ref[...])                                   # [B*T, 8H]
    pre_f = pre[:, 0:4 * H].reshape(B, T, 4 * H)
    pre_b = pre[:, 4 * H:8 * H].reshape(B, T, 4 * H)

    whh_f = whhf_ref[...]
    whh_b = whhb_ref[...]

    h_f = jnp.zeros((B, H), jnp.float32)
    c_f = jnp.zeros((B, H), jnp.float32)
    h_b = jnp.zeros((B, H), jnp.float32)
    c_b = jnp.zeros((B, H), jnp.float32)

    for step in range(T):
        tb = T - 1 - step
        # Two independent recurrence chains -> scheduler can overlap them.
        g_f = pre_f[:, step, :] + jnp.dot(h_f, whh_f,
                                          preferred_element_type=jnp.float32)
        g_b = pre_b[:, tb, :] + jnp.dot(h_b, whh_b,
                                        preferred_element_type=jnp.float32)
        h_f, c_f = _lstm_cell(g_f, c_f, H)
        h_b, c_b = _lstm_cell(g_b, c_b, H)
        out_ref[:, step, 0:H] = h_f.astype(out_ref.dtype)
        out_ref[:, tb, H:2 * H] = h_b.astype(out_ref.dtype)

    eh_ref[...] = jnp.concatenate([h_f, h_b], axis=-1).astype(eh_ref.dtype)


def _latent_kernel(eh_ref, w_ref, b_ref, eps_ref, z_ref, kld_ref):
    """Fused hidden_to_mu + hidden_to_logvar (one [2H_E, 2nz] matmul),
    reparameterization and KLD."""
    nz = z_ref.shape[-1]
    proj = (jnp.dot(eh_ref[...], w_ref[...], preferred_element_type=jnp.float32)
            + b_ref[...])                                  # [B, 2*nz]
    mu = proj[:, 0:nz]
    lv = proj[:, nz:2 * nz]
    z_ref[...] = (mu + eps_ref[...] * jnp.exp(0.5 * lv)).astype(z_ref.dtype)
    term = 1.0 + lv - mu * mu - jnp.exp(lv)
    kld_ref[...] = -0.5 * jnp.sum(
        jnp.sum(term, axis=1, keepdims=True), axis=0, keepdims=True)


def _generator_kernel(emb_ref, z_ref, *rest, n_layers):
    """All generator LSTM layers + final fc in one call.

    rest layout:
      layer 0:        w_ih_emb [E,4H], w_ih_z [nz,4H], w_hh [H,4H], b [1,4H]
      layers 1..L-1:  w_ih [H,4H], w_hh [H,4H], b [1,4H]
      fc:             w_fc [H,V], b_fc [1,V]
      outputs:        logits [B,T,V], h_n [L,B,H], c_n [L,B,H]
      scratch:        hseq [B,T,H] (VMEM)
    """
    n_w = 4 + 3 * (n_layers - 1) + 2
    w_refs = rest[:n_w]
    logits_ref, h_out_ref, c_out_ref, hseq_sc = rest[n_w:]

    B, T, E = emb_ref.shape
    H = w_refs[2].shape[0]
    V = logits_ref.shape[-1]

    # Hoisted layer-0 input projection. The z contribution is time-invariant,
    # so it is computed once (folds the PyTorch concat([x, z]) away entirely).
    emb_flat = emb_ref[...].reshape(B * T, E)
    pre0 = jnp.dot(emb_flat, w_refs[0][...],
                   preferred_element_type=jnp.float32).reshape(B, T, 4 * H)
    zb = (jnp.dot(z_ref[...], w_refs[1][...],
                  preferred_element_type=jnp.float32) + w_refs[3][...])  # [B, 4H]

    h_seq_flat = None
    idx = 4
    for l in range(n_layers):
        if l == 0:
            whh = w_refs[2][...]
            pre_l = None
        else:
            wih = w_refs[idx][...]
            whh = w_refs[idx + 1][...]
            b_l = w_refs[idx + 2][...]
            idx += 3
            pre_l = (jnp.dot(h_seq_flat, wih,
                             preferred_element_type=jnp.float32)
                     + b_l).reshape(B, T, 4 * H)

        h = jnp.zeros((B, H), jnp.float32)
        c = jnp.zeros((B, H), jnp.float32)
        for t in range(T):
            g = jnp.dot(h, whh, preferred_element_type=jnp.float32)
            if l == 0:
                g = g + pre0[:, t, :] + zb
            else:
                g = g + pre_l[:, t, :]
            h, c = _lstm_cell(g, c, H)
            hseq_sc[:, t, :] = h

        h_out_ref[l] = h.astype(h_out_ref.dtype)
        c_out_ref[l] = c.astype(c_out_ref.dtype)
        h_seq_flat = hseq_sc[...].reshape(B * T, H)

    # Fused fc: one batched [B*T, H] x [H, V] matmul on the resident sequence.
    logits = (jnp.dot(h_seq_flat, w_refs[n_w - 2][...],
                      preferred_element_type=jnp.float32) + w_refs[n_w - 1][...])
    logits_ref[...] = logits.reshape(B, T, V).astype(logits_ref.dtype)


# ----------------------------- kernel wrappers --------------------------------
def highway(x, layer_weights):
    args = [x]
    for w, b in layer_weights:
        args += [w, b]
    return pl.pallas_call(
        _highway_kernel,
        out_shape=jax.ShapeDtypeStruct(x.shape, x.dtype),
    )(*args)


def bilstm(x, w_ih_cat, w_hh_f, w_hh_b, b_cat):
    B, T, _ = x.shape
    H = w_hh_f.shape[0]
    out, eh = pl.pallas_call(
        _bilstm_kernel,
        out_shape=(jax.ShapeDtypeStruct((B, T, 2 * H), jnp.float32),
                   jax.ShapeDtypeStruct((B, 2 * H), jnp.float32)),
    )(x, w_ih_cat, w_hh_f, w_hh_b, b_cat)
    return out, eh


def latent(e_hidden, w_cat, b_cat, eps):
    B = e_hidden.shape[0]
    nz = w_cat.shape[1] // 2
    z, kld = pl.pallas_call(
        _latent_kernel,
        out_shape=(jax.ShapeDtypeStruct((B, nz), jnp.float32),
                   jax.ShapeDtypeStruct((1, 1), jnp.float32)),
    )(e_hidden, w_cat, b_cat, eps)
    return z, kld[0, 0]


def generator(g_emb, z, gen_params, fc_params, n_layers):
    B, T, _ = g_emb.shape
    H = gen_params[0][2].shape[0]
    V = fc_params[0].shape[1]
    args = [g_emb, z]
    for lp in gen_params:
        args += list(lp)
    args += list(fc_params)
    kernel = functools.partial(_generator_kernel, n_layers=n_layers)
    logits, h_n, c_n = pl.pallas_call(
        kernel,
        out_shape=(jax.ShapeDtypeStruct((B, T, V), jnp.float32),
                   jax.ShapeDtypeStruct((n_layers, B, H), jnp.float32),
                   jax.ShapeDtypeStruct((n_layers, B, H), jnp.float32)),
        scratch_shapes=[pltpu.VMEM((B, T, H), jnp.float32)],
    )(*args)
    return logits, h_n, c_n


# ----------------------------- parameters ------------------------------------
def _init(key, shape, scale=0.08):
    return scale * jax.random.normal(key, shape, dtype=jnp.float32)


def init_vae_params(key, cfg: Config):
    keys = iter(jax.random.split(key, 256))
    p = {}
    p["embedding"] = _init(next(keys), (cfg.n_vocab, cfg.n_embed))

    # Highway: per layer one fused weight [E, 3E] packing (gate|nonlinear|linear).
    p["highway"] = [(_init(next(keys), (cfg.n_embed, 3 * cfg.n_embed)),
                     _init(next(keys), (1, 3 * cfg.n_embed)))
                    for _ in range(cfg.n_highway_layers)]

    # Encoder bi-LSTM: per layer (w_ih_cat [d_in,8H], w_hh_f, w_hh_b, b_cat [1,8H]);
    # biases are the PyTorch b_ih + b_hh combined.
    H_E = cfg.n_hidden_E
    enc = []
    for layer in range(cfg.n_layers_E):
        d_in = cfg.n_embed if layer == 0 else 2 * H_E
        enc.append((_init(next(keys), (d_in, 8 * H_E)),
                    _init(next(keys), (H_E, 4 * H_E)),
                    _init(next(keys), (H_E, 4 * H_E)),
                    _init(next(keys), (1, 8 * H_E))))
    p["enc_lstm"] = enc

    # hidden_to_mu / hidden_to_logvar fused along the output dim.
    p["latent"] = (_init(next(keys), (2 * H_E, 2 * cfg.n_z)),
                   _init(next(keys), (1, 2 * cfg.n_z)))

    # Generator LSTM; layer 0 keeps the embed / z parts of W_ih split so the
    # z-concat never has to materialize.
    H_G = cfg.n_hidden_G
    gen = []
    for layer in range(cfg.n_layers_G):
        if layer == 0:
            gen.append((_init(next(keys), (cfg.n_embed, 4 * H_G)),
                        _init(next(keys), (cfg.n_z, 4 * H_G)),
                        _init(next(keys), (H_G, 4 * H_G)),
                        _init(next(keys), (1, 4 * H_G))))
        else:
            gen.append((_init(next(keys), (H_G, 4 * H_G)),
                        _init(next(keys), (H_G, 4 * H_G)),
                        _init(next(keys), (1, 4 * H_G))))
    p["gen_lstm"] = gen

    p["fc"] = (_init(next(keys), (H_G, cfg.n_vocab)),
               _init(next(keys), (1, cfg.n_vocab)))
    return p


# ----------------------------- VAE forward -----------------------------------
def vae_forward(params, x_ids, g_inp_ids, eps, cfg: Config):
    B, T = x_ids.shape
    emb = params["embedding"]

    # --- encoder path ---
    x_emb = jnp.take(emb, x_ids, axis=0)                  # [B, T, E] (XLA gather glue)
    h = highway(x_emb.reshape(B * T, cfg.n_embed), params["highway"])
    layer_in = h.reshape(B, T, cfg.n_embed)

    e_hidden = None
    for layer_params in params["enc_lstm"]:
        layer_in, e_hidden = bilstm(layer_in, *layer_params)

    z, kld = latent(e_hidden, *params["latent"], eps)

    # --- generator path ---
    g_emb = jnp.take(emb, g_inp_ids, axis=0)              # [B, Tg, E]
    logits, g_h, g_c = generator(g_emb, z, params["gen_lstm"], params["fc"],
                                 cfg.n_layers_G)
    return logits, (g_h, g_c), kld


# ----------------------------- main ------------------------------------------
if __name__ == "__main__":
    cfg = Config()
    B, T = 2, 8

    key = jax.random.PRNGKey(0)
    k_x, k_g, k_eps, k_params = jax.random.split(key, 4)

    x_ids = jax.random.randint(k_x, (B, T), 0, cfg.n_vocab, dtype=jnp.int32)
    g_inp_ids = jax.random.randint(k_g, (B, T), 0, cfg.n_vocab, dtype=jnp.int32)
    # TODO(synk): torch.randn inside forward replaced by an explicit eps input
    # (randomness is generated outside the kernel, deterministically).
    eps = jax.random.normal(k_eps, (B, cfg.n_z), dtype=jnp.float32)

    params = init_vae_params(k_params, cfg)

    fwd = jax.jit(functools.partial(vae_forward, cfg=cfg))
    logits, (g_h, g_c), kld = fwd(params, x_ids, g_inp_ids, eps)

    jax.block_until_ready((logits, g_h, g_c, kld))

    assert logits.shape == (B, T, cfg.n_vocab)
    assert g_h.shape == (cfg.n_layers_G, B, cfg.n_hidden_G)
    assert g_c.shape == (cfg.n_layers_G, B, cfg.n_hidden_G)
    assert kld.shape == ()
    print("KERNEL_OK")
</pallas_src>

<mosaic_0001>
module attributes {stable_mosaic.version = 11 : i64} {
  func.func @_highway_kernel(%arg0: memref<16x32xf32, #tpu.memory_space<vmem>>, %arg1: memref<32x96xf32, #tpu.memory_space<vmem>>, %arg2: memref<1x96xf32, #tpu.memory_space<vmem>>, %arg3: memref<32x96xf32, #tpu.memory_space<vmem>>, %arg4: memref<1x96xf32, #tpu.memory_space<vmem>>, %arg5: memref<16x32xf32, #tpu.memory_space<vmem>>) attributes {dimension_semantics = [], scalar_prefetch = 0 : i64, scratch_operands = 0 : i64, tpu.core_type = #tpu.core_type<tc>} {
    %c0 = arith.constant 0 : index
    %c0_0 = arith.constant 0 : index
    %0 = vector.load %arg0[%c0, %c0_0] : memref<16x32xf32, #tpu.memory_space<vmem>>, vector<16x32xf32>
    %c0_1 = arith.constant 0 : index
    %c0_2 = arith.constant 0 : index
    %1 = vector.load %arg1[%c0_1, %c0_2] : memref<32x96xf32, #tpu.memory_space<vmem>>, vector<32x96xf32>
    %c0_3 = arith.constant 0 : index
    %c0_4 = arith.constant 0 : index
    %2 = vector.load %arg2[%c0_3, %c0_4] : memref<1x96xf32, #tpu.memory_space<vmem>>, vector<1x96xf32>
    %cst = arith.constant dense<0.000000e+00> : vector<16x96xf32>
    %3 = tpu.matmul %0, %1, %cst {dimension_numbers = #tpu.dot_dimension_numbers<[1], [0], [0], [1], [0, 0, 1, 1], [], []>} : vector<16x32xf32>, vector<32x96xf32>, vector<16x96xf32> -> vector<16x96xf32>
    %4 = vector.broadcast %2 : vector<1x96xf32> to vector<16x96xf32>
    %5 = arith.addf %3, %4 : vector<16x96xf32>
    %6 = vector.extract_strided_slice %5 {offsets = [0, 0], sizes = [16, 32], strides = [1, 1]} : vector<16x96xf32> to vector<16x32xf32>
    %7 = arith.negf %6 : vector<16x32xf32>
    %8 = math.exp %7 : vector<16x32xf32>
    %cst_5 = arith.constant 1.000000e+00 : f32
    %9 = vector.broadcast %cst_5 : f32 to vector<16x32xf32>
    %10 = arith.addf %9, %8 : vector<16x32xf32>
    %11 = arith.divf %9, %10 : vector<16x32xf32>
    %12 = vector.extract_strided_slice %5 {offsets = [0, 32], sizes = [16, 32], strides = [1, 1]} : vector<16x96xf32> to vector<16x32xf32>
    %cst_6 = arith.constant 0.000000e+00 : f32
    %13 = vector.broadcast %cst_6 : f32 to vector<16x32xf32>
    %14 = arith.maximumf %12, %13 : vector<16x32xf32>
    %15 = vector.extract_strided_slice %5 {offsets = [0, 64], sizes = [16, 32], strides = [1, 1]} : vector<16x96xf32> to vector<16x32xf32>
    %16 = arith.mulf %11, %14 : vector<16x32xf32>
    %cst_7 = arith.constant 1.000000e+00 : f32
    %17 = vector.broadcast %cst_7 : f32 to vector<16x32xf32>
    %18 = arith.subf %17, %11 : vector<16x32xf32>
    %19 = arith.mulf %18, %15 : vector<16x32xf32>
    %20 = arith.addf %16, %19 : vector<16x32xf32>
    %c0_8 = arith.constant 0 : index
    %c0_9 = arith.constant 0 : index
    %21 = vector.load %arg3[%c0_8, %c0_9] : memref<32x96xf32, #tpu.memory_space<vmem>>, vector<32x96xf32>
    %c0_10 = arith.constant 0 : index
    %c0_11 = arith.constant 0 : index
    %22 = vector.load %arg4[%c0_10, %c0_11] : memref<1x96xf32, #tpu.memory_space<vmem>>, vector<1x96xf32>
    %cst_12 = arith.constant dense<0.000000e+00> : vector<16x96xf32>
    %23 = tpu.matmul %20, %21, %cst_12 {dimension_numbers = #tpu.dot_dimension_numbers<[1], [0], [0], [1], [0, 0, 1, 1], [], []>} : vector<16x32xf32>, vector<32x96xf32>, vector<16x96xf32> -> vector<16x96xf32>
    %24 = vector.broadcast %22 : vector<1x96xf32> to vector<16x96xf32>
    %25 = arith.addf %23, %24 : vector<16x96xf32>
    %26 = vector.extract_strided_slice %25 {offsets = [0, 0], sizes = [16, 32], strides = [1, 1]} : vector<16x96xf32> to vector<16x32xf32>
    %27 = arith.negf %26 : vector<16x32xf32>
    %28 = math.exp %27 : vector<16x32xf32>
    %cst_13 = arith.constant 1.000000e+00 : f32
    %29 = vector.broadcast %cst_13 : f32 to vector<16x32xf32>
    %30 = arith.addf %29, %28 : vector<16x32xf32>
    %31 = arith.divf %29, %30 : vector<16x32xf32>
    %32 = vector.extract_strided_slice %25 {offsets = [0, 32], sizes = [16, 32], strides = [1, 1]} : vector<16x96xf32> to vector<16x32xf32>
    %cst_14 = arith.constant 0.000000e+00 : f32
    %33 = vector.broadcast %cst_14 : f32 to vector<16x32xf32>
    %34 = arith.maximumf %32, %33 : vector<16x32xf32>
    %35 = vector.extract_strided_slice %25 {offsets = [0, 64], sizes = [16, 32], strides = [1, 1]} : vector<16x96xf32> to vector<16x32xf32>
    %36 = arith.mulf %31, %34 : vector<16x32xf32>
    %cst_15 = arith.constant 1.000000e+00 : f32
    %37 = vector.broadcast %cst_15 : f32 to vector<16x32xf32>
    %38 = arith.subf %37, %31 : vector<16x32xf32>
    %39 = arith.mulf %38, %35 : vector<16x32xf32>
    %40 = arith.addf %36, %39 : vector<16x32xf32>
    %c0_16 = arith.constant 0 : index
    %c0_17 = arith.constant 0 : index
    %41 = vector.load %arg5[%c0_16, %c0_17] : memref<16x32xf32, #tpu.memory_space<vmem>>, vector<16x32xf32>
    tpu.vector_store %arg5[%c0_16, %c0_17], %40 {strides = array<i32>} : memref<16x32xf32, #tpu.memory_space<vmem>>, vector<16x32xf32>,
    return
  }
}

module attributes {stable_mosaic.version = 11 : i64} {
  func.func @_latent_kernel(%arg0: memref<2x64xf32, #tpu.memory_space<vmem>>, %arg1: memref<64x32xf32, #tpu.memory_space<vmem>>, %arg2: memref<1x32xf32, #tpu.memory_space<vmem>>, %arg3: memref<2x16xf32, #tpu.memory_space<vmem>>, %arg4: memref<2x16xf32, #tpu.memory_space<vmem>>, %arg5: memref<1x1xf32, #tpu.memory_space<vmem>>) attributes {dimension_semantics = [], scalar_prefetch = 0 : i64, scratch_operands = 0 : i64, tpu.core_type = #tpu.core_type<tc>} {
    %c0 = arith.constant 0 : index
    %c0_0 = arith.constant 0 : index
    %0 = vector.load %arg0[%c0, %c0_0] : memref<2x64xf32, #tpu.memory_space<vmem>>, vector<2x64xf32>
    %c0_1 = arith.constant 0 : index
    %c0_2 = arith.constant 0 : index
    %1 = vector.load %arg1[%c0_1, %c0_2] : memref<64x32xf32, #tpu.memory_space<vmem>>, vector<64x32xf32>
    %cst = arith.constant dense<0.000000e+00> : vector<2x32xf32>
    %2 = tpu.matmul %0, %1, %cst {dimension_numbers = #tpu.dot_dimension_numbers<[1], [0], [0], [1], [0, 0, 1, 1], [], []>} : vector<2x64xf32>, vector<64x32xf32>, vector<2x32xf32> -> vector<2x32xf32>
    %c0_3 = arith.constant 0 : index
    %c0_4 = arith.constant 0 : index
    %3 = vector.load %arg2[%c0_3, %c0_4] : memref<1x32xf32, #tpu.memory_space<vmem>>, vector<1x32xf32>
    %4 = vector.broadcast %3 : vector<1x32xf32> to vector<2x32xf32>
    %5 = arith.addf %2, %4 : vector<2x32xf32>
    %6 = vector.extract_strided_slice %5 {offsets = [0, 0], sizes = [2, 16], strides = [1, 1]} : vector<2x32xf32> to vector<2x16xf32>
    %7 = vector.extract_strided_slice %5 {offsets = [0, 16], sizes = [2, 16], strides = [1, 1]} : vector<2x32xf32> to vector<2x16xf32>
    %c0_5 = arith.constant 0 : index
    %c0_6 = arith.constant 0 : index
    %8 = vector.load %arg3[%c0_5, %c0_6] : memref<2x16xf32, #tpu.memory_space<vmem>>, vector<2x16xf32>
    %cst_7 = arith.constant 5.000000e-01 : f32
    %9 = vector.broadcast %cst_7 : f32 to vector<2x16xf32>
    %10 = arith.mulf %9, %7 : vector<2x16xf32>
    %11 = math.exp %10 : vector<2x16xf32>
    %12 = arith.mulf %8, %11 : vector<2x16xf32>
    %13 = arith.addf %6, %12 : vector<2x16xf32>
    %c0_8 = arith.constant 0 : index
    %c0_9 = arith.constant 0 : index
    %14 = vector.load %arg4[%c0_8, %c0_9] : memref<2x16xf32, #tpu.memory_space<vmem>>, vector<2x16xf32>
    tpu.vector_store %arg4[%c0_8, %c0_9], %13 {strides = array<i32>} : memref<2x16xf32, #tpu.memory_space<vmem>>, vector<2x16xf32>,
    %cst_10 = arith.constant 1.000000e+00 : f32
    %15 = vector.broadcast %cst_10 : f32 to vector<2x16xf32>
    %16 = arith.addf %15, %7 : vector<2x16xf32>
    %17 = arith.mulf %6, %6 : vector<2x16xf32>
    %18 = arith.subf %16, %17 : vector<2x16xf32>
    %19 = math.exp %7 : vector<2x16xf32>
    %20 = arith.subf %18, %19 : vector<2x16xf32>
    %cst_11 = arith.constant dense<0.000000e+00> : vector<2xf32>
    %21 = vector.multi_reduction <add>, %20, %cst_11 [1] : vector<2x16xf32> to vector<2xf32>
    %22 = vector.shape_cast %21 : vector<2xf32> to vector<2x1xf32>
    %cst_12 = arith.constant dense<0.000000e+00> : vector<1xf32>
    %23 = vector.multi_reduction <add>, %22, %cst_12 [0] : vector<2x1xf32> to vector<1xf32>
    %24 = vector.shape_cast %23 : vector<1xf32> to vector<1x1xf32>
    %cst_13 = arith.constant -5.000000e-01 : f32
    %25 = vector.broadcast %cst_13 : f32 to vector<1x1xf32>
    %26 = arith.mulf %25, %24 : vector<1x1xf32>
    %c0_14 = arith.constant 0 : index
    %c0_15 = arith.constant 0 : index
    %27 = vector.load %arg5[%c0_14, %c0_15] : memref<1x1xf32, #tpu.memory_space<vmem>>, vector<1x1xf32>
    tpu.vector_store %arg5[%c0_14, %c0_15], %26 {strides = array<i32>} : memref<1x1xf32, #tpu.memory_space<vmem>>, vector<1x1xf32>,
    return
  }
}

module attributes {stable_mosaic.version = 11 : i64} {
  func.func @_generator_kernel(%arg0: memref<2x8x32xf32, #tpu.memory_space<vmem>>, %arg1: memref<2x16xf32, #tpu.memory_space<vmem>>, %arg2: memref<32x128xf32, #tpu.memory_space<vmem>>, %arg3: memref<16x128xf32, #tpu.memory_space<vmem>>, %arg4: memref<32x128xf32, #tpu.memory_space<vmem>>, %arg5: memref<1x128xf32, #tpu.memory_space<vmem>>, %arg6: memref<32x64xf32, #tpu.memory_space<vmem>>, %arg7: memref<1x64xf32, #tpu.memory_space<vmem>>, %arg8: memref<2x8x64xf32, #tpu.memory_space<vmem>>, %arg9: memref<1x2x32xf32, #tpu.memory_space<vmem>>, %arg10: memref<1x2x32xf32, #tpu.memory_space<vmem>>, %arg11: memref<2x8x32xf32, #tpu.memory_space<vmem>>) attributes {dimension_semantics = [], scalar_prefetch = 0 : i64, scratch_operands = 1 : i64, tpu.core_type = #tpu.core_type<tc>} {
    %c0 = arith.constant 0 : index
    %c0_0 = arith.constant 0 : index
    %c0_1 = arith.constant 0 : index
    %0 = vector.load %arg0[%c0, %c0_0, %c0_1] : memref<2x8x32xf32, #tpu.memory_space<vmem>>, vector<2x8x32xf32>
    %1 = vector.shape_cast %0 : vector<2x8x32xf32> to vector<16x32xf32>
    %c0_2 = arith.constant 0 : index
    %c0_3 = arith.constant 0 : index
    %2 = vector.load %arg2[%c0_2, %c0_3] : memref<32x128xf32, #tpu.memory_space<vmem>>, vector<32x128xf32>
    %cst = arith.constant dense<0.000000e+00> : vector<16x128xf32>
    %3 = tpu.matmul %1, %2, %cst {dimension_numbers = #tpu.dot_dimension_numbers<[1], [0], [0], [1], [0, 0, 1, 1], [], []>} : vector<16x32xf32>, vector<32x128xf32>, vector<16x128xf32> -> vector<16x128xf32>
    %4 = vector.shape_cast %3 : vector<16x128xf32> to vector<2x8x128xf32>
    %c0_4 = arith.constant 0 : index
    %c0_5 = arith.constant 0 : index
    %5 = vector.load %arg1[%c0_4, %c0_5] : memref<2x16xf32, #tpu.memory_space<vmem>>, vector<2x16xf32>
    %c0_6 = arith.constant 0 : index
    %c0_7 = arith.constant 0 : index
    %6 = vector.load %arg3[%c0_6, %c0_7] : memref<16x128xf32, #tpu.memory_space<vmem>>, vector<16x128xf32>
    %cst_8 = arith.constant dense<0.000000e+00> : vector<2x128xf32>
    %7 = tpu.matmul %5, %6, %cst_8 {dimension_numbers = #tpu.dot_dimension_numbers<[1], [0], [0], [1], [0, 0, 1, 1], [], []>} : vector<2x16xf32>, vector<16x128xf32>, vector<2x128xf32> -> vector<2x128xf32>
    %c0_9 = arith.constant 0 : index
    %c0_10 = arith.constant 0 : index
    %8 = vector.load %arg5[%c0_9, %c0_10] : memref<1x128xf32, #tpu.memory_space<vmem>>, vector<1x128xf32>
    %9 = vector.broadcast %8 : vector<1x128xf32> to vector<2x128xf32>
    %10 = arith.addf %7, %9 : vector<2x128xf32>
    %c0_11 = arith.constant 0 : index
    %c0_12 = arith.constant 0 : index
    %11 = vector.load %arg4[%c0_11, %c0_12] : memref<32x128xf32, #tpu.memory_space<vmem>>, vector<32x128xf32>
    %cst_13 = arith.constant 0.000000e+00 : f32
    %12 = vector.broadcast %cst_13 : f32 to vector<2x32xf32>
    %cst_14 = arith.constant 0.000000e+00 : f32
    %13 = vector.broadcast %cst_14 : f32 to vector<2x32xf32>
    %cst_15 = arith.constant dense<0.000000e+00> : vector<2x128xf32>
    %14 = tpu.matmul %12, %11, %cst_15 {dimension_numbers = #tpu.dot_dimension_numbers<[1], [0], [0], [1], [0, 0, 1, 1], [], []>} : vector<2x32xf32>, vector<32x128xf32>, vector<2x128xf32> -> vector<2x128xf32>
    %15 = vector.extract_strided_slice %4 {offsets = [0, 0, 0], sizes = [2, 1, 128], strides = [1, 1, 1]} : vector<2x8x128xf32> to vector<2x1x128xf32>
    %16 = vector.shape_cast %15 : vector<2x1x128xf32> to vector<2x128xf32>
    %17 = arith.addf %14, %16 : vector<2x128xf32>
    %18 = arith.addf %17, %10 : vector<2x128xf32>
    %19 = arith.negf %18 : vector<2x128xf32>
    %20 = math.exp %19 : vector<2x128xf32>
    %cst_16 = arith.constant 1.000000e+00 : f32
    %21 = vector.broadcast %cst_16 : f32 to vector<2x128xf32>
    %22 = arith.addf %21, %20 : vector<2x128xf32>
    %23 = arith.divf %21, %22 : vector<2x128xf32>
    %24 = math.tanh %18 : vector<2x128xf32>
    %25 = vector.extract_strided_slice %23 {offsets = [0, 0], sizes = [2, 32], strides = [1, 1]} : vector<2x128xf32> to vector<2x32xf32>
    %26 = vector.extract_strided_slice %23 {offsets = [0, 32], sizes = [2, 32], strides = [1, 1]} : vector<2x128xf32> to vector<2x32xf32>
    %27 = vector.extract_strided_slice %24 {offsets = [0, 64], sizes = [2, 32], strides = [1, 1]} : vector<2x128xf32> to vector<2x32xf32>
    %28 = vector.extract_strided_slice %23 {offsets = [0, 96], sizes = [2, 32], strides = [1, 1]} : vector<2x128xf32> to vector<2x32xf32>
    %29 = arith.mulf %26, %13 : vector<2x32xf32>
    %30 = arith.mulf %25, %27 : vector<2x32xf32>
    %31 = arith.addf %29, %30 : vector<2x32xf32>
    %32 = math.tanh %31 : vector<2x32xf32>
    %33 = arith.mulf %28, %32 : vector<2x32xf32>
    %c0_17 = arith.constant 0 : index
    %c0_18 = arith.constant 0 : index
    %c0_19 = arith.constant 0 : index
    %34 = vector.load %arg11[%c0_17, %c0_18, %c0_19] : memref<2x8x32xf32, #tpu.memory_space<vmem>>, vector<2x1x32xf32>
    %35 = vector.shape_cast %34 : vector<2x1x32xf32> to vector<2x32xf32>
    %36 = vector.shape_cast %33 : vector<2x32xf32> to vector<2x1x32xf32>
    tpu.vector_store %arg11[%c0_17, %c0_18, %c0_19], %36 {strides = array<i32>} : memref<2x8x32xf32, #tpu.memory_space<vmem>>, vector<2x1x32xf32>,
    %cst_20 = arith.constant dense<0.000000e+00> : vector<2x128xf32>
    %37 = tpu.matmul %33, %11, %cst_20 {dimension_numbers = #tpu.dot_dimension_numbers<[1], [0], [0], [1], [0, 0, 1, 1], [], []>} : vector<2x32xf32>, vector<32x128xf32>, vector<2x128xf32> -> vector<2x128xf32>
    %38 = vector.extract_strided_slice %4 {offsets = [0, 1, 0], sizes = [2, 1, 128], strides = [1, 1, 1]} : vector<2x8x128xf32> to vector<2x1x128xf32>
    %39 = vector.shape_cast %38 : vector<2x1x128xf32> to vector<2x128xf32>
    %40 = arith.addf %37, %39 : vector<2x128xf32>
    %41 = arith.addf %40, %10 : vector<2x128xf32>
    %42 = arith.negf %41 : vector<2x128xf32>
    %43 = math.exp %42 : vector<2x128xf32>
    %cst_21 = arith.constant 1.000000e+00 : f32
    %44 = vector.broadcast %cst_21 : f32 to vector<2x128xf32>
    %45 = arith.addf %44, %43 : vector<2x128xf32>
    %46 = arith.divf %44, %45 : vector<2x128xf32>
    %47 = math.tanh %41 : vector<2x128xf32>
    %48 = vector.extract_strided_slice %46 {offsets = [0, 0], sizes = [2, 32], strides = [1, 1]} : vector<2x128xf32> to vector<2x32xf32>
    %49 = vector.extract_strided_slice %46 {offsets = [0, 32], sizes = [2, 32], strides = [1, 1]} : vector<2x128xf32> to vector<2x32xf32>
    %50 = vector.extract_strided_slice %47 {offsets = [0, 64], sizes = [2, 32], strides = [1, 1]} : vector<2x128xf32> to vector<2x32xf32>
    %51 = vector.extract_strided_slice %46 {offsets = [0, 96], sizes = [2, 32], strides = [1, 1]} : vector<2x128xf32> to vector<2x32xf32>
    %52 = arith.mulf %49, %31 : vector<2x32xf32>
    %53 = arith.mulf %48, %50 : vector<2x32xf32>
    %54 = arith.addf %52, %53 : vector<2x32xf32>
    %55 = math.tanh %54 : vector<2x32xf32>
    %56 = arith.mulf %51, %55 : vector<2x32xf32>
    %c0_22 = arith.constant 0 : index
    %c1 = arith.constant 1 : index
    %c0_23 = arith.constant 0 : index
    %57 = vector.load %arg11[%c0_22, %c1, %c0_23] : memref<2x8x32xf32, #tpu.memory_space<vmem>>, vector<2x1x32xf32>
    %58 = vector.shape_cast %57 : vector<2x1x32xf32> to vector<2x32xf32>
    %59 = vector.shape_cast %56 : vector<2x32xf32> to vector<2x1x32xf32>
    tpu.vector_store %arg11[%c0_22, %c1, %c0_23], %59 {strides = array<i32>} : memref<2x8x32xf32, #tpu.memory_space<vmem>>, vector<2x1x32xf32>,
    %cst_24 = arith.constant dense<0.000000e+00> : vector<2x128xf32>
    %60 = tpu.matmul %56, %11, %cst_24 {dimension_numbers = #tpu.dot_dimension_numbers<[1], [0], [0], [1], [0, 0, 1, 1], [], []>} : vector<2x32xf32>, vector<32x128xf32>, vector<2x128xf32> -> vector<2x128xf32>
    %61 = vector.extract_strided_slice %4 {offsets = [0, 2, 0], sizes = [2, 1, 128], strides = [1, 1, 1]} : vector<2x8x128xf32> to vector<2x1x128xf32>
    %62 = vector.shape_cast %61 : vector<2x1x128xf32> to vector<2x128xf32>
    %63 = arith.addf %60, %62 : vector<2x128xf32>
    %64 = arith.addf %63, %10 : vector<2x128xf32>
    %65 = arith.negf %64 : vector<2x128xf32>
    %66 = math.exp %65 : vector<2x128xf32>
    %cst_25 = arith.constant 1.000000e+00 : f32
    %67 = vector.broadcast %cst_25 : f32 to vector<2x128xf32>
    %68 = arith.addf %67, %66 : vector<2x128xf32>
    %69 = arith.divf %67, %68 : vector<2x128xf32>
    %70 = math.tanh %64 : vector<2x128xf32>
    %71 = vector.extract_strided_slice %69 {offsets = [0, 0], sizes = [2, 32], strides = [1, 1]} : vector<2x128xf32> to vector<2x32xf32>
    %72 = vector.extract_strided_slice %69 {offsets = [0, 32], sizes = [2, 32], strides = [1, 1]} : vector<2x128xf32> to vector<2x32xf32>
    %73 = vector.extract_strided_slice %70 {offsets = [0, 64], sizes = [2, 32], strides = [1, 1]} : vector<2x128xf32> to vector<2x32xf32>
    %74 = vector.extract_strided_slice %69 {offsets = [0, 96], sizes = [2, 32], strides = [1, 1]} : vector<2x128xf32> to vector<2x32xf32>
    %75 = arith.mulf %72, %54 : vector<2x32xf32>
    %76 = arith.mulf %71, %73 : vector<2x32xf32>
    %77 = arith.addf %75, %76 : vector<2x32xf32>
    %78 = math.tanh %77 : vector<2x32xf32>
    %79 = arith.mulf %74, %78 : vector<2x32xf32>
    %c0_26 = arith.constant 0 : index
    %c2 = arith.constant 2 : index
    %c0_27 = arith.constant 0 : index
    %80 = vector.load %arg11[%c0_26, %c2, %c0_27] : memref<2x8x32xf32, #tpu.memory_space<vmem>>, vector<2x1x32xf32>
    %81 = vector.shape_cast %80 : vector<2x1x32xf32> to vector<2x32xf32>
    %82 = vector.shape_cast %79 : vector<2x32xf32> to vector<2x1x32xf32>
    tpu.vector_store %arg11[%c0_26, %c2, %c0_27], %82 {strides = array<i32>} : memref<2x8x32xf32, #tpu.memory_space<vmem>>, vector<2x1x32xf32>,
    %cst_28 = arith.constant dense<0.000000e+00> : vector<2x128xf32>
    %83 = tpu.matmul %79, %11, %cst_28 {dimension_numbers = #tpu.dot_dimension_numbers<[1], [0], [0], [1], [0, 0, 1, 1], [], []>} : vector<2x32xf32>, vector<32x128xf32>, vector<2x128xf32> -> vector<2x128xf32>
    %84 = vector.extract_strided_slice %4 {offsets = [0, 3, 0], sizes = [2, 1, 128], strides = [1, 1, 1]} : vector<2x8x128xf32> to vector<2x1x128xf32>
    %85 = vector.shape_cast %84 : vector<2x1x128xf32> to vector<2x128xf32>
    %86 = arith.addf %83, %85 : vector<2x128xf32>
    %87 = arith.addf %86, %10 : vector<2x128xf32>
    %88 = arith.negf %87 : vector<2x128xf32>
    %89 = math.exp %88 : vector<2x128xf32>
    %cst_29 = arith.constant 1.000000e+00 : f32
    %90 = vector.broadcast %cst_29 : f32 to vector<2x128xf32>
    %91 = arith.addf %90, %89 : vector<2x128xf32>
    %92 = arith.divf %90, %91 : vector<2x128xf32>
    %93 = math.tanh %87 : vector<2x128xf32>
    %94 = vector.extract_strided_slice %92 {offsets = [0, 0], sizes = [2, 32], strides = [1, 1]} : vector<2x128xf32> to vector<2x32xf32>
    %95 = vector.extract_strided_slice %92 {offsets = [0, 32], sizes = [2, 32], strides = [1, 1]} : vector<2x128xf32> to vector<2x32xf32>
    %96 = vector.extract_strided_slice %93 {offsets = [0, 64], sizes = [2, 32], strides = [1, 1]} : vector<2x128xf32> to vector<2x32xf32>
    %97 = vector.extract_strided_slice %92 {offsets = [0, 96], sizes = [2, 32], strides = [1, 1]} : vector<2x128xf32> to vector<2x32xf32>
    %98 = arith.mulf %95, %77 : vector<2x32xf32>
    %99 = arith.mulf %94, %96 : vector<2x32xf32>
    %100 = arith.addf %98, %99 : vector<2x32xf32>
    %101 = math.tanh %100 : vector<2x32xf32>
    %102 = arith.mulf %97, %101 : vector<2x32xf32>
    %c0_30 = arith.constant 0 : index
    %c3 = arith.constant 3 : index
    %c0_31 = arith.constant 0 : index
    %103 = vector.load %arg11[%c0_30, %c3, %c0_31] : memref<2x8x32xf32, #tpu.memory_space<vmem>>, vector<2x1x32xf32>
    %104 = vector.shape_cast %103 : vector<2x1x32xf32> to vector<2x32xf32>
    %105 = vector.shape_cast %102 : vector<2x32xf32> to vector<2x1x32xf32>
    tpu.vector_store %arg11[%c0_30, %c3, %c0_31], %105 {strides = array<i32>} : memref<2x8x32xf32, #tpu.memory_space<vmem>>, vector<2x1x32xf32>,
    %cst_32 = arith.constant dense<0.000000e+00> : vector<2x128xf32>
    %106 = tpu.matmul %102, %11, %cst_32 {dimension_numbers = #tpu.dot_dimension_numbers<[1], [0], [0], [1], [0, 0, 1, 1], [], []>} : vector<2x32xf32>, vector<32x128xf32>, vector<2x128xf32> -> vector<2x128xf32>
    %107 = vector.extract_strided_slice %4 {offsets = [0, 4, 0], sizes = [2, 1, 128], strides = [1, 1, 1]} : vector<2x8x128xf32> to vector<2x1x128xf32>
    %108 = vector.shape_cast %107 : vector<2x1x128xf32> to vector<2x128xf32>
    %109 = arith.addf %106, %108 : vector<2x128xf32>
    %110 = arith.addf %109, %10 : vector<2x128xf32>
    %111 = arith.negf %110 : vector<2x128xf32>
    %112 = math.exp %111 : vector<2x128xf32>
    %cst_33 = arith.constant 1.000000e+00 : f32
    %113 = vector.broadcast %cst_33 : f32 to vector<2x128xf32>
    %114 = arith.addf %113, %112 : vector<2x128xf32>
    %115 = arith.divf %113, %114 : vector<2x128xf32>
    %116 = math.tanh %110 : vector<2x128xf32>
    %117 = vector.extract_strided_slice %115 {offsets = [0, 0], sizes = [2, 32], strides = [1, 1]} : vector<2x128xf32> to vector<2x32xf32>
    %118 = vector.extract_strided_slice %115 {offsets = [0, 32], sizes = [2, 32], strides = [1, 1]} : vector<2x128xf32> to vector<2x32xf32>
    %119 = vector.extract_strided_slice %116 {offsets = [0, 64], sizes = [2, 32], strides = [1, 1]} : vector<2x128xf32> to vector<2x32xf32>
    %120 = vector.extract_strided_slice %115 {offsets = [0, 96], sizes = [2, 32], strides = [1, 1]} : vector<2x128xf32> to vector<2x32xf32>
    %121 = arith.mulf %118, %100 : vector<2x32xf32>
    %122 = arith.mulf %117, %119 : vector<2x32xf32>
    %123 = arith.addf %121, %122 : vector<2x32xf32>
    %124 = math.tanh %123 : vector<2x32xf32>
    %125 = arith.mulf %120, %124 : vector<2x32xf32>
    %c0_34 = arith.constant 0 : index
    %c4 = arith.constant 4 : index
    %c0_35 = arith.constant 0 : index
    %126 = vector.load %arg11[%c0_34, %c4, %c0_35] : memref<2x8x32xf32, #tpu.memory_space<vmem>>, vector<2x1x32xf32>
    %127 = vector.shape_cast %126 : vector<2x1x32xf32> to vector<2x32xf32>
    %128 = vector.shape_cast %125 : vector<2x32xf32> to vector<2x1x32xf32>
    tpu.vector_store %arg11[%c0_34, %c4, %c0_35], %128 {strides = array<i32>} : memref<2x8x32xf32, #tpu.memory_space<vmem>>, vector<2x1x32xf32>,
    %cst_36 = arith.constant dense<0.000000e+00> : vector<2x128xf32>
    %129 = tpu.matmul %125, %11, %cst_36 {dimension_numbers = #tpu.dot_dimension_numbers<[1], [0], [0], [1], [0, 0, 1, 1], [], []>} : vector<2x32xf32>, vector<32x128xf32>, vector<2x128xf32> -> vector<2x128xf32>
    %130 = vector.extract_strided_slice %4 {offsets = [0, 5, 0], sizes = [2, 1, 128], strides = [1, 1, 1]} : vector<2x8x128xf32> to vector<2x1x128xf32>
    %131 = vector.shape_cast %130 : vector<2x1x128xf32> to vector<2x128xf32>
    %132 = arith.addf %129, %131 : vector<2x128xf32>
    %133 = arith.addf %132, %10 : vector<2x128xf32>
    %134 = arith.negf %133 : vector<2x128xf32>
    %135 = math.exp %134 : vector<2x128xf32>
    %cst_37 = arith.constant 1.000000e+00 : f32
    %136 = vector.broadcast %cst_37 : f32 to vector<2x128xf32>
    %137 = arith.addf %136, %135 : vector<2x128xf32>
    %138 = arith.divf %136, %137 : vector<2x128xf32>
    %139 = math.tanh %133 : vector<2x128xf32>
    %140 = vector.extract_strided_slice %138 {offsets = [0, 0], sizes = [2, 32], strides = [1, 1]} : vector<2x128xf32> to vector<2x32xf32>
    %141 = vector.extract_strided_slice %138 {offsets = [0, 32], sizes = [2, 32], strides = [1, 1]} : vector<2x128xf32> to vector<2x32xf32>
    %142 = vector.extract_strided_slice %139 {offsets = [0, 64], sizes = [2, 32], strides = [1, 1]} : vector<2x128xf32> to vector<2x32xf32>
    %143 = vector.extract_strided_slice %138 {offsets = [0, 96], sizes = [2, 32], strides = [1, 1]} : vector<2x128xf32> to vector<2x32xf32>
    %144 = arith.mulf %141, %123 : vector<2x32xf32>
    %145 = arith.mulf %140, %142 : vector<2x32xf32>
    %146 = arith.addf %144, %145 : vector<2x32xf32>
    %147 = math.tanh %146 : vector<2x32xf32>
    %148 = arith.mulf %143, %147 : vector<2x32xf32>
    %c0_38 = arith.constant 0 : index
    %c5 = arith.constant 5 : index
    %c0_39 = arith.constant 0 : index
    %149 = vector.load %arg11[%c0_38, %c5, %c0_39] : memref<2x8x32xf32, #tpu.memory_space<vmem>>, vector<2x1x32xf32>
    %150 = vector.shape_cast %149 : vector<2x1x32xf32> to vector<2x32xf32>
    %151 = vector.shape_cast %148 : vector<2x32xf32> to vector<2x1x32xf32>
    tpu.vector_store %arg11[%c0_38, %c5, %c0_39], %151 {strides = array<i32>} : memref<2x8x32xf32, #tpu.memory_space<vmem>>, vector<2x1x32xf32>,
    %cst_40 = arith.constant dense<0.000000e+00> : vector<2x128xf32>
    %152 = tpu.matmul %148, %11, %cst_40 {dimension_numbers = #tpu.dot_dimension_numbers<[1], [0], [0], [1], [0, 0, 1, 1], [], []>} : vector<2x32xf32>, vector<32x128xf32>, vector<2x128xf32> -> vector<2x128xf32>
    %153 = vector.extract_strided_slice %4 {offsets = [0, 6, 0], sizes = [2, 1, 128], strides = [1, 1, 1]} : vector<2x8x128xf32> to vector<2x1x128xf32>
    %154 = vector.shape_cast %153 : vector<2x1x128xf32> to vector<2x128xf32>
    %155 = arith.addf %152, %154 : vector<2x128xf32>
    %156 = arith.addf %155, %10 : vector<2x128xf32>
    %157 = arith.negf %156 : vector<2x128xf32>
    %158 = math.exp %157 : vector<2x128xf32>
    %cst_41 = arith.constant 1.000000e+00 : f32
    %159 = vector.broadcast %cst_41 : f32 to vector<2x128xf32>
    %160 = arith.addf %159, %158 : vector<2x128xf32>
    %161 = arith.divf %159, %160 : vector<2x128xf32>
    %162 = math.tanh %156 : vector<2x128xf32>
    %163 = vector.extract_strided_slice %161 {offsets = [0, 0], sizes = [2, 32], strides = [1, 1]} : vector<2x128xf32> to vector<2x32xf32>
    %164 = vector.extract_strided_slice %161 {offsets = [0, 32], sizes = [2, 32], strides = [1, 1]} : vector<2x128xf32> to vector<2x32xf32>
    %165 = vector.extract_strided_slice %162 {offsets = [0, 64], sizes = [2, 32], strides = [1, 1]} : vector<2x128xf32> to vector<2x32xf32>
    %166 = vector.extract_strided_slice %161 {offsets = [0, 96], sizes = [2, 32], strides = [1, 1]} : vector<2x128xf32> to vector<2x32xf32>
    %167 = arith.mulf %164, %146 : vector<2x32xf32>
    %168 = arith.mulf %163, %165 : vector<2x32xf32>
    %169 = arith.addf %167, %168 : vector<2x32xf32>
    %170 = math.tanh %169 : vector<2x32xf32>
    %171 = arith.mulf %166, %170 : vector<2x32xf32>
    %c0_42 = arith.constant 0 : index
    %c6 = arith.constant 6 : index
    %c0_43 = arith.constant 0 : index
    %172 = vector.load %arg11[%c0_42, %c6, %c0_43] : memref<2x8x32xf32, #tpu.memory_space<vmem>>, vector<2x1x32xf32>
    %173 = vector.shape_cast %172 : vector<2x1x32xf32> to vector<2x32xf32>
    %174 = vector.shape_cast %171 : vector<2x32xf32> to vector<2x1x32xf32>
    tpu.vector_store %arg11[%c0_42, %c6, %c0_43], %174 {strides = array<i32>} : memref<2x8x32xf32, #tpu.memory_space<vmem>>, vector<2x1x32xf32>,
    %cst_44 = arith.constant dense<0.000000e+00> : vector<2x128xf32>
    %175 = tpu.matmul %171, %11, %cst_44 {dimension_numbers = #tpu.dot_dimension_numbers<[1], [0], [0], [1], [0, 0, 1, 1], [], []>} : vector<2x32xf32>, vector<32x128xf32>, vector<2x128xf32> -> vector<2x128xf32>
    %176 = vector.extract_strided_slice %4 {offsets = [0, 7, 0], sizes = [2, 1, 128], strides = [1, 1, 1]} : vector<2x8x128xf32> to vector<2x1x128xf32>
    %177 = vector.shape_cast %176 : vector<2x1x128xf32> to vector<2x128xf32>
    %178 = arith.addf %175, %177 : vector<2x128xf32>
    %179 = arith.addf %178, %10 : vector<2x128xf32>
    %180 = arith.negf %179 : vector<2x128xf32>
    %181 = math.exp %180 : vector<2x128xf32>
    %cst_45 = arith.constant 1.000000e+00 : f32
    %182 = vector.broadcast %cst_45 : f32 to vector<2x128xf32>
    %183 = arith.addf %182, %181 : vector<2x128xf32>
    %184 = arith.divf %182, %183 : vector<2x128xf32>
    %185 = math.tanh %179 : vector<2x128xf32>
    %186 = vector.extract_strided_slice %184 {offsets = [0, 0], sizes = [2, 32], strides = [1, 1]} : vector<2x128xf32> to vector<2x32xf32>
    %187 = vector.extract_strided_slice %184 {offsets = [0, 32], sizes = [2, 32], strides = [1, 1]} : vector<2x128xf32> to vector<2x32xf32>
    %188 = vector.extract_strided_slice %185 {offsets = [0, 64], sizes = [2, 32], strides = [1, 1]} : vector<2x128xf32> to vector<2x32xf32>
    %189 = vector.extract_strided_slice %184 {offsets = [0, 96], sizes = [2, 32], strides = [1, 1]} : vector<2x128xf32> to vector<2x32xf32>
    %190 = arith.mulf %187, %169 : vector<2x32xf32>
    %191 = arith.mulf %186, %188 : vector<2x32xf32>
    %192 = arith.addf %190, %191 : vector<2x32xf32>
    %193 = math.tanh %192 : vector<2x32xf32>
    %194 = arith.mulf %189, %193 : vector<2x32xf32>
    %c0_46 = arith.constant 0 : index
    %c7 = arith.constant 7 : index
    %c0_47 = arith.constant 0 : index
    %195 = vector.load %arg11[%c0_46, %c7, %c0_47] : memref<2x8x32xf32, #tpu.memory_space<vmem>>, vector<2x1x32xf32>
    %196 = vector.shape_cast %195 : vector<2x1x32xf32> to vector<2x32xf32>
    %197 = vector.shape_cast %194 : vector<2x32xf32> to vector<2x1x32xf32>
    tpu.vector_store %arg11[%c0_46, %c7, %c0_47], %197 {strides = array<i32>} : memref<2x8x32xf32, #tpu.memory_space<vmem>>, vector<2x1x32xf32>,
    %c0_48 = arith.constant 0 : index
    %c0_49 = arith.constant 0 : index
    %c0_50 = arith.constant 0 : index
    %198 = vector.load %arg9[%c0_48, %c0_49, %c0_50] : memref<1x2x32xf32, #tpu.memory_space<vmem>>, vector<1x2x32xf32>
    %199 = vector.shape_cast %198 : vector<1x2x32xf32> to vector<2x32xf32>
    %200 = vector.shape_cast %194 : vector<2x32xf32> to vector<1x2x32xf32>
    tpu.vector_store %arg9[%c0_48, %c0_49, %c0_50], %200 {strides = array<i32>} : memref<1x2x32xf32, #tpu.memory_space<vmem>>, vector<1x2x32xf32>,
    %c0_51 = arith.constant 0 : index
    %c0_52 = arith.constant 0 : index
    %c0_53 = arith.constant 0 : index
    %201 = vector.load %arg10[%c0_51, %c0_52, %c0_53] : memref<1x2x32xf32, #tpu.memory_space<vmem>>, vector<1x2x32xf32>
    %202 = vector.shape_cast %201 : vector<1x2x32xf32> to vector<2x32xf32>
    %203 = vector.shape_cast %192 : vector<2x32xf32> to vector<1x2x32xf32>
    tpu.vector_store %arg10[%c0_51, %c0_52, %c0_53], %203 {strides = array<i32>} : memref<1x2x32xf32, #tpu.memory_space<vmem>>, vector<1x2x32xf32>,
    %c0_54 = arith.constant 0 : index
    %c0_55 = arith.constant 0 : index
    %c0_56 = arith.constant 0 : index
    %204 = vector.load %arg11[%c0_54, %c0_55, %c0_56] : memref<2x8x32xf32, #tpu.memory_space<vmem>>, vector<2x8x32xf32>
    %205 = vector.shape_cast %204 : vector<2x8x32xf32> to vector<16x32xf32>
    %c0_57 = arith.constant 0 : index
    %c0_58 = arith.constant 0 : index
    %206 = vector.load %arg6[%c0_57, %c0_58] : memref<32x64xf32, #tpu.memory_space<vmem>>, vector<32x64xf32>
    %cst_59 = arith.constant dense<0.000000e+00> : vector<16x64xf32>
    %207 = tpu.matmul %205, %206, %cst_59 {dimension_numbers = #tpu.dot_dimension_numbers<[1], [0], [0], [1], [0, 0, 1, 1], [], []>} : vector<16x32xf32>, vector<32x64xf32>, vector<16x64xf32> -> vector<16x64xf32>
    %c0_60 = arith.constant 0 : index
    %c0_61 = arith.constant 0 : index
    %208 = vector.load %arg7[%c0_60, %c0_61] : memref<1x64xf32, #tpu.memory_space<vmem>>, vector<1x64xf32>
    %209 = vector.broadcast %208 : vector<1x64xf32> to vector<16x64xf32>
    %210 = arith.addf %207, %209 : vector<16x64xf32>
    %211 = vector.shape_cast %210 : vector<16x64xf32> to vector<2x8x64xf32>
    %c0_62 = arith.constant 0 : index
    %c0_63 = arith.constant 0 : index
    %c0_64 = arith.constant 0 : index
    %212 = vector.load %arg8[%c0_62, %c0_63, %c0_64] : memref<2x8x64xf32, #tpu.memory_space<vmem>>, vector<2x8x64xf32>
    tpu.vector_store %arg8[%c0_62, %c0_63, %c0_64], %211 {strides = array<i32>} : memref<2x8x64xf32, #tpu.memory_space<vmem>>, vector<2x8x64xf32>,
    return
  }
}

module attributes {stable_mosaic.version = 11 : i64} {
  func.func @_bilstm_kernel(%arg0: memref<2x8x32xf32, #tpu.memory_space<vmem>>, %arg1: memref<32x256xf32, #tpu.memory_space<vmem>>, %arg2: memref<32x128xf32, #tpu.memory_space<vmem>>, %arg3: memref<32x128xf32, #tpu.memory_space<vmem>>, %arg4: memref<1x256xf32, #tpu.memory_space<vmem>>, %arg5: memref<2x8x64xf32, #tpu.memory_space<vmem>>, %arg6: memref<2x64xf32, #tpu.memory_space<vmem>>) attributes {dimension_semantics = [], scalar_prefetch = 0 : i64, scratch_operands = 0 : i64, tpu.core_type = #tpu.core_type<tc>} {
    %c0 = arith.constant 0 : index
    %c0_0 = arith.constant 0 : index
    %c0_1 = arith.constant 0 : index
    %0 = vector.load %arg0[%c0, %c0_0, %c0_1] : memref<2x8x32xf32, #tpu.memory_space<vmem>>, vector<2x8x32xf32>
    %1 = vector.shape_cast %0 : vector<2x8x32xf32> to vector<16x32xf32>
    %c0_2 = arith.constant 0 : index
    %c0_3 = arith.constant 0 : index
    %2 = vector.load %arg1[%c0_2, %c0_3] : memref<32x256xf32, #tpu.memory_space<vmem>>, vector<32x256xf32>
    %cst = arith.constant dense<0.000000e+00> : vector<16x256xf32>
    %3 = tpu.matmul %1, %2, %cst {dimension_numbers = #tpu.dot_dimension_numbers<[1], [0], [0], [1], [0, 0, 1, 1], [], []>} : vector<16x32xf32>, vector<32x256xf32>, vector<16x256xf32> -> vector<16x256xf32>
    %c0_4 = arith.constant 0 : index
    %c0_5 = arith.constant 0 : index
    %4 = vector.load %arg4[%c0_4, %c0_5] : memref<1x256xf32, #tpu.memory_space<vmem>>, vector<1x256xf32>
    %5 = vector.broadcast %4 : vector<1x256xf32> to vector<16x256xf32>
    %6 = arith.addf %3, %5 : vector<16x256xf32>
    %7 = vector.extract_strided_slice %6 {offsets = [0, 0], sizes = [16, 128], strides = [1, 1]} : vector<16x256xf32> to vector<16x128xf32>
    %8 = vector.shape_cast %7 : vector<16x128xf32> to vector<2x8x128xf32>
    %9 = vector.extract_strided_slice %6 {offsets = [0, 128], sizes = [16, 128], strides = [1, 1]} : vector<16x256xf32> to vector<16x128xf32>
    %10 = vector.shape_cast %9 : vector<16x128xf32> to vector<2x8x128xf32>
    %c0_6 = arith.constant 0 : index
    %c0_7 = arith.constant 0 : index
    %11 = vector.load %arg2[%c0_6, %c0_7] : memref<32x128xf32, #tpu.memory_space<vmem>>, vector<32x128xf32>
    %c0_8 = arith.constant 0 : index
    %c0_9 = arith.constant 0 : index
    %12 = vector.load %arg3[%c0_8, %c0_9] : memref<32x128xf32, #tpu.memory_space<vmem>>, vector<32x128xf32>
    %cst_10 = arith.constant 0.000000e+00 : f32
    %13 = vector.broadcast %cst_10 : f32 to vector<2x32xf32>
    %cst_11 = arith.constant 0.000000e+00 : f32
    %14 = vector.broadcast %cst_11 : f32 to vector<2x32xf32>
    %cst_12 = arith.constant 0.000000e+00 : f32
    %15 = vector.broadcast %cst_12 : f32 to vector<2x32xf32>
    %cst_13 = arith.constant 0.000000e+00 : f32
    %16 = vector.broadcast %cst_13 : f32 to vector<2x32xf32>
    %17 = vector.extract_strided_slice %8 {offsets = [0, 0, 0], sizes = [2, 1, 128], strides = [1, 1, 1]} : vector<2x8x128xf32> to vector<2x1x128xf32>
    %18 = vector.shape_cast %17 : vector<2x1x128xf32> to vector<2x128xf32>
    %cst_14 = arith.constant dense<0.000000e+00> : vector<2x128xf32>
    %19 = tpu.matmul %13, %11, %cst_14 {dimension_numbers = #tpu.dot_dimension_numbers<[1], [0], [0], [1], [0, 0, 1, 1], [], []>} : vector<2x32xf32>, vector<32x128xf32>, vector<2x128xf32> -> vector<2x128xf32>
    %20 = arith.addf %18, %19 : vector<2x128xf32>
    %21 = vector.extract_strided_slice %10 {offsets = [0, 7, 0], sizes = [2, 1, 128], strides = [1, 1, 1]} : vector<2x8x128xf32> to vector<2x1x128xf32>
    %22 = vector.shape_cast %21 : vector<2x1x128xf32> to vector<2x128xf32>
    %cst_15 = arith.constant dense<0.000000e+00> : vector<2x128xf32>
    %23 = tpu.matmul %15, %12, %cst_15 {dimension_numbers = #tpu.dot_dimension_numbers<[1], [0], [0], [1], [0, 0, 1, 1], [], []>} : vector<2x32xf32>, vector<32x128xf32>, vector<2x128xf32> -> vector<2x128xf32>
    %24 = arith.addf %22, %23 : vector<2x128xf32>
    %25 = arith.negf %20 : vector<2x128xf32>
    %26 = math.exp %25 : vector<2x128xf32>
    %cst_16 = arith.constant 1.000000e+00 : f32
    %27 = vector.broadcast %cst_16 : f32 to vector<2x128xf32>
    %28 = arith.addf %27, %26 : vector<2x128xf32>
    %29 = arith.divf %27, %28 : vector<2x128xf32>
    %30 = math.tanh %20 : vector<2x128xf32>
    %31 = vector.extract_strided_slice %29 {offsets = [0, 0], sizes = [2, 32], strides = [1, 1]} : vector<2x128xf32> to vector<2x32xf32>
    %32 = vector.extract_strided_slice %29 {offsets = [0, 32], sizes = [2, 32], strides = [1, 1]} : vector<2x128xf32> to vector<2x32xf32>
    %33 = vector.extract_strided_slice %30 {offsets = [0, 64], sizes = [2, 32], strides = [1, 1]} : vector<2x128xf32> to vector<2x32xf32>
    %34 = vector.extract_strided_slice %29 {offsets = [0, 96], sizes = [2, 32], strides = [1, 1]} : vector<2x128xf32> to vector<2x32xf32>
    %35 = arith.mulf %32, %14 : vector<2x32xf32>
    %36 = arith.mulf %31, %33 : vector<2x32xf32>
    %37 = arith.addf %35, %36 : vector<2x32xf32>
    %38 = math.tanh %37 : vector<2x32xf32>
    %39 = arith.mulf %34, %38 : vector<2x32xf32>
    %40 = arith.negf %24 : vector<2x128xf32>
    %41 = math.exp %40 : vector<2x128xf32>
    %cst_17 = arith.constant 1.000000e+00 : f32
    %42 = vector.broadcast %cst_17 : f32 to vector<2x128xf32>
    %43 = arith.addf %42, %41 : vector<2x128xf32>
    %44 = arith.divf %42, %43 : vector<2x128xf32>
    %45 = math.tanh %24 : vector<2x128xf32>
    %46 = vector.extract_strided_slice %44 {offsets = [0, 0], sizes = [2, 32], strides = [1, 1]} : vector<2x128xf32> to vector<2x32xf32>
    %47 = vector.extract_strided_slice %44 {offsets = [0, 32], sizes = [2, 32], strides = [1, 1]} : vector<2x128xf32> to vector<2x32xf32>
    %48 = vector.extract_strided_slice %45 {offsets = [0, 64], sizes = [2, 32], strides = [1, 1]} : vector<2x128xf32> to vector<2x32xf32>
    %49 = vector.extract_strided_slice %44 {offsets = [0, 96], sizes = [2, 32], strides = [1, 1]} : vector<2x128xf32> to vector<2x32xf32>
    %50 = arith.mulf %47, %16 : vector<2x32xf32>
    %51 = arith.mulf %46, %48 : vector<2x32xf32>
    %52 = arith.addf %50, %51 : vector<2x32xf32>
    %53 = math.tanh %52 : vector<2x32xf32>
    %54 = arith.mulf %49, %53 : vector<2x32xf32>
    %c0_18 = arith.constant 0 : index
    %c0_19 = arith.constant 0 : index
    %c0_20 = arith.constant 0 : index
    %55 = vector.load %arg5[%c0_18, %c0_19, %c0_20] : memref<2x8x64xf32, #tpu.memory_space<vmem>>, vector<2x1x32xf32>
    %56 = vector.shape_cast %55 : vector<2x1x32xf32> to vector<2x32xf32>
    %57 = vector.shape_cast %39 : vector<2x32xf32> to vector<2x1x32xf32>
    tpu.vector_store %arg5[%c0_18, %c0_19, %c0_20], %57 {strides = array<i32>} : memref<2x8x64xf32, #tpu.memory_space<vmem>>, vector<2x1x32xf32>,
    %c0_21 = arith.constant 0 : index
    %c7 = arith.constant 7 : index
    %c32 = arith.constant 32 : index
    %58 = vector.load %arg5[%c0_21, %c7, %c32] : memref<2x8x64xf32, #tpu.memory_space<vmem>>, vector<2x1x32xf32>
    %59 = vector.shape_cast %58 : vector<2x1x32xf32> to vector<2x32xf32>
    %60 = vector.shape_cast %54 : vector<2x32xf32> to vector<2x1x32xf32>
    tpu.vector_store %arg5[%c0_21, %c7, %c32], %60 {strides = array<i32>} : memref<2x8x64xf32, #tpu.memory_space<vmem>>, vector<2x1x32xf32>,
    %61 = vector.extract_strided_slice %8 {offsets = [0, 1, 0], sizes = [2, 1, 128], strides = [1, 1, 1]} : vector<2x8x128xf32> to vector<2x1x128xf32>
    %62 = vector.shape_cast %61 : vector<2x1x128xf32> to vector<2x128xf32>
    %cst_22 = arith.constant dense<0.000000e+00> : vector<2x128xf32>
    %63 = tpu.matmul %39, %11, %cst_22 {dimension_numbers = #tpu.dot_dimension_numbers<[1], [0], [0], [1], [0, 0, 1, 1], [], []>} : vector<2x32xf32>, vector<32x128xf32>, vector<2x128xf32> -> vector<2x128xf32>
    %64 = arith.addf %62, %63 : vector<2x128xf32>
    %65 = vector.extract_strided_slice %10 {offsets = [0, 6, 0], sizes = [2, 1, 128], strides = [1, 1, 1]} : vector<2x8x128xf32> to vector<2x1x128xf32>
    %66 = vector.shape_cast %65 : vector<2x1x128xf32> to vector<2x128xf32>
    %cst_23 = arith.constant dense<0.000000e+00> : vector<2x128xf32>
    %67 = tpu.matmul %54, %12, %cst_23 {dimension_numbers = #tpu.dot_dimension_numbers<[1], [0], [0], [1], [0, 0, 1, 1], [], []>} : vector<2x32xf32>, vector<32x128xf32>, vector<2x128xf32> -> vector<2x128xf32>
    %68 = arith.addf %66, %67 : vector<2x128xf32>
    %69 = arith.negf %64 : vector<2x128xf32>
    %70 = math.exp %69 : vector<2x128xf32>
    %cst_24 = arith.constant 1.000000e+00 : f32
    %71 = vector.broadcast %cst_24 : f32 to vector<2x128xf32>
    %72 = arith.addf %71, %70 : vector<2x128xf32>
    %73 = arith.divf %71, %72 : vector<2x128xf32>
    %74 = math.tanh %64 : vector<2x128xf32>
    %75 = vector.extract_strided_slice %73 {offsets = [0, 0], sizes = [2, 32], strides = [1, 1]} : vector<2x128xf32> to vector<2x32xf32>
    %76 = vector.extract_strided_slice %73 {offsets = [0, 32], sizes = [2, 32], strides = [1, 1]} : vector<2x128xf32> to vector<2x32xf32>
    %77 = vector.extract_strided_slice %74 {offsets = [0, 64], sizes = [2, 32], strides = [1, 1]} : vector<2x128xf32> to vector<2x32xf32>
    %78 = vector.extract_strided_slice %73 {offsets = [0, 96], sizes = [2, 32], strides = [1, 1]} : vector<2x128xf32> to vector<2x32xf32>
    %79 = arith.mulf %76, %37 : vector<2x32xf32>
    %80 = arith.mulf %75, %77 : vector<2x32xf32>
    %81 = arith.addf %79, %80 : vector<2x32xf32>
    %82 = math.tanh %81 : vector<2x32xf32>
    %83 = arith.mulf %78, %82 : vector<2x32xf32>
    %84 = arith.negf %68 : vector<2x128xf32>
    %85 = math.exp %84 : vector<2x128xf32>
    %cst_25 = arith.constant 1.000000e+00 : f32
    %86 = vector.broadcast %cst_25 : f32 to vector<2x128xf32>
    %87 = arith.addf %86, %85 : vector<2x128xf32>
    %88 = arith.divf %86, %87 : vector<2x128xf32>
    %89 = math.tanh %68 : vector<2x128xf32>
    %90 = vector.extract_strided_slice %88 {offsets = [0, 0], sizes = [2, 32], strides = [1, 1]} : vector<2x128xf32> to vector<2x32xf32>
    %91 = vector.extract_strided_slice %88 {offsets = [0, 32], sizes = [2, 32], strides = [1, 1]} : vector<2x128xf32> to vector<2x32xf32>
    %92 = vector.extract_strided_slice %89 {offsets = [0, 64], sizes = [2, 32], strides = [1, 1]} : vector<2x128xf32> to vector<2x32xf32>
    %93 = vector.extract_strided_slice %88 {offsets = [0, 96], sizes = [2, 32], strides = [1, 1]} : vector<2x128xf32> to vector<2x32xf32>
    %94 = arith.mulf %91, %52 : vector<2x32xf32>
    %95 = arith.mulf %90, %92 : vector<2x32xf32>
    %96 = arith.addf %94, %95 : vector<2x32xf32>
    %97 = math.tanh %96 : vector<2x32xf32>
    %98 = arith.mulf %93, %97 : vector<2x32xf32>
    %c0_26 = arith.constant 0 : index
    %c1 = arith.constant 1 : index
    %c0_27 = arith.constant 0 : index
    %99 = vector.load %arg5[%c0_26, %c1, %c0_27] : memref<2x8x64xf32, #tpu.memory_space<vmem>>, vector<2x1x32xf32>
    %100 = vector.shape_cast %99 : vector<2x1x32xf32> to vector<2x32xf32>
    %101 = vector.shape_cast %83 : vector<2x32xf32> to vector<2x1x32xf32>
    tpu.vector_store %arg5[%c0_26, %c1, %c0_27], %101 {strides = array<i32>} : memref<2x8x64xf32, #tpu.memory_space<vmem>>, vector<2x1x32xf32>,
    %c0_28 = arith.constant 0 : index
    %c6 = arith.constant 6 : index
    %c32_29 = arith.constant 32 : index
    %102 = vector.load %arg5[%c0_28, %c6, %c32_29] : memref<2x8x64xf32, #tpu.memory_space<vmem>>, vector<2x1x32xf32>
    %103 = vector.shape_cast %102 : vector<2x1x32xf32> to vector<2x32xf32>
    %104 = vector.shape_cast %98 : vector<2x32xf32> to vector<2x1x32xf32>
    tpu.vector_store %arg5[%c0_28, %c6, %c32_29], %104 {strides = array<i32>} : memref<2x8x64xf32, #tpu.memory_space<vmem>>, vector<2x1x32xf32>,
    %105 = vector.extract_strided_slice %8 {offsets = [0, 2, 0], sizes = [2, 1, 128], strides = [1, 1, 1]} : vector<2x8x128xf32> to vector<2x1x128xf32>
    %106 = vector.shape_cast %105 : vector<2x1x128xf32> to vector<2x128xf32>
    %cst_30 = arith.constant dense<0.000000e+00> : vector<2x128xf32>
    %107 = tpu.matmul %83, %11, %cst_30 {dimension_numbers = #tpu.dot_dimension_numbers<[1], [0], [0], [1], [0, 0, 1, 1], [], []>} : vector<2x32xf32>, vector<32x128xf32>, vector<2x128xf32> -> vector<2x128xf32>
    %108 = arith.addf %106, %107 : vector<2x128xf32>
    %109 = vector.extract_strided_slice %10 {offsets = [0, 5, 0], sizes = [2, 1, 128], strides = [1, 1, 1]} : vector<2x8x128xf32> to vector<2x1x128xf32>
    %110 = vector.shape_cast %109 : vector<2x1x128xf32> to vector<2x128xf32>
    %cst_31 = arith.constant dense<0.000000e+00> : vector<2x128xf32>
    %111 = tpu.matmul %98, %12, %cst_31 {dimension_numbers = #tpu.dot_dimension_numbers<[1], [0], [0], [1], [0, 0, 1, 1], [], []>} : vector<2x32xf32>, vector<32x128xf32>, vector<2x128xf32> -> vector<2x128xf32>
    %112 = arith.addf %110, %111 : vector<2x128xf32>
    %113 = arith.negf %108 : vector<2x128xf32>
    %114 = math.exp %113 : vector<2x128xf32>
    %cst_32 = arith.constant 1.000000e+00 : f32
    %115 = vector.broadcast %cst_32 : f32 to vector<2x128xf32>
    %116 = arith.addf %115, %114 : vector<2x128xf32>
    %117 = arith.divf %115, %116 : vector<2x128xf32>
    %118 = math.tanh %108 : vector<2x128xf32>
    %119 = vector.extract_strided_slice %117 {offsets = [0, 0], sizes = [2, 32], strides = [1, 1]} : vector<2x128xf32> to vector<2x32xf32>
    %120 = vector.extract_strided_slice %117 {offsets = [0, 32], sizes = [2, 32], strides = [1, 1]} : vector<2x128xf32> to vector<2x32xf32>
    %121 = vector.extract_strided_slice %118 {offsets = [0, 64], sizes = [2, 32], strides = [1, 1]} : vector<2x128xf32> to vector<2x32xf32>
    %122 = vector.extract_strided_slice %117 {offsets = [0, 96], sizes = [2, 32], strides = [1, 1]} : vector<2x128xf32> to vector<2x32xf32>
    %123 = arith.mulf %120, %81 : vector<2x32xf32>
    %124 = arith.mulf %119, %121 : vector<2x32xf32>
    %125 = arith.addf %123, %124 : vector<2x32xf32>
    %126 = math.tanh %125 : vector<2x32xf32>
    %127 = arith.mulf %122, %126 : vector<2x32xf32>
    %128 = arith.negf %112 : vector<2x128xf32>
    %129 = math.exp %128 : vector<2x128xf32>
    %cst_33 = arith.constant 1.000000e+00 : f32
    %130 = vector.broadcast %cst_33 : f32 to vector<2x128xf32>
    %131 = arith.addf %130, %129 : vector<2x128xf32>
    %132 = arith.divf %130, %131 : vector<2x128xf32>
    %133 = math.tanh %112 : vector<2x128xf32>
    %134 = vector.extract_strided_slice %132 {offsets = [0, 0], sizes = [2, 32], strides = [1, 1]} : vector<2x128xf32> to vector<2x32xf32>
    %135 = vector.extract_strided_slice %132 {offsets = [0, 32], sizes = [2, 32], strides = [1, 1]} : vector<2x128xf32> to vector<2x32xf32>
    %136 = vector.extract_strided_slice %133 {offsets = [0, 64], sizes = [2, 32], strides = [1, 1]} : vector<2x128xf32> to vector<2x32xf32>
    %137 = vector.extract_strided_slice %132 {offsets = [0, 96], sizes = [2, 32], strides = [1, 1]} : vector<2x128xf32> to vector<2x32xf32>
    %138 = arith.mulf %135, %96 : vector<2x32xf32>
    %139 = arith.mulf %134, %136 : vector<2x32xf32>
    %140 = arith.addf %138, %139 : vector<2x32xf32>
    %141 = math.tanh %140 : vector<2x32xf32>
    %142 = arith.mulf %137, %141 : vector<2x32xf32>
    %c0_34 = arith.constant 0 : index
    %c2 = arith.constant 2 : index
    %c0_35 = arith.constant 0 : index
    %143 = vector.load %arg5[%c0_34, %c2, %c0_35] : memref<2x8x64xf32, #tpu.memory_space<vmem>>, vector<2x1x32xf32>
    %144 = vector.shape_cast %143 : vector<2x1x32xf32> to vector<2x32xf32>
    %145 = vector.shape_cast %127 : vector<2x32xf32> to vector<2x1x32xf32>
    tpu.vector_store %arg5[%c0_34, %c2, %c0_35], %145 {strides = array<i32>} : memref<2x8x64xf32, #tpu.memory_space<vmem>>, vector<2x1x32xf32>,
    %c0_36 = arith.constant 0 : index
    %c5 = arith.constant 5 : index
    %c32_37 = arith.constant 32 : index
    %146 = vector.load %arg5[%c0_36, %c5, %c32_37] : memref<2x8x64xf32, #tpu.memory_space<vmem>>, vector<2x1x32xf32>
    %147 = vector.shape_cast %146 : vector<2x1x32xf32> to vector<2x32xf32>
    %148 = vector.shape_cast %142 : vector<2x32xf32> to vector<2x1x32xf32>
    tpu.vector_store %arg5[%c0_36, %c5, %c32_37], %148 {strides = array<i32>} : memref<2x8x64xf32, #tpu.memory_space<vmem>>, vector<2x1x32xf32>,
    %149 = vector.extract_strided_slice %8 {offsets = [0, 3, 0], sizes = [2, 1, 128], strides = [1, 1, 1]} : vector<2x8x128xf32> to vector<2x1x128xf32>
    %150 = vector.shape_cast %149 : vector<2x1x128xf32> to vector<2x128xf32>
    %cst_38 = arith.constant dense<0.000000e+00> : vector<2x128xf32>
    %151 = tpu.matmul %127, %11, %cst_38 {dimension_numbers = #tpu.dot_dimension_numbers<[1], [0], [0], [1], [0, 0, 1, 1], [], []>} : vector<2x32xf32>, vector<32x128xf32>, vector<2x128xf32> -> vector<2x128xf32>
    %152 = arith.addf %150, %151 : vector<2x128xf32>
    %153 = vector.extract_strided_slice %10 {offsets = [0, 4, 0], sizes = [2, 1, 128], strides = [1, 1, 1]} : vector<2x8x128xf32> to vector<2x1x128xf32>
    %154 = vector.shape_cast %153 : vector<2x1x128xf32> to vector<2x128xf32>
    %cst_39 = arith.constant dense<0.000000e+00> : vector<2x128xf32>
    %155 = tpu.matmul %142, %12, %cst_39 {dimension_numbers = #tpu.dot_dimension_numbers<[1], [0], [0], [1], [0, 0, 1, 1], [], []>} : vector<2x32xf32>, vector<32x128xf32>, vector<2x128xf32> -> vector<2x128xf32>
    %156 = arith.addf %154, %155 : vector<2x128xf32>
    %157 = arith.negf %152 : vector<2x128xf32>
    %158 = math.exp %157 : vector<2x128xf32>
    %cst_40 = arith.constant 1.000000e+00 : f32
    %159 = vector.broadcast %cst_40 : f32 to vector<2x128xf32>
    %160 = arith.addf %159, %158 : vector<2x128xf32>
    %161 = arith.divf %159, %160 : vector<2x128xf32>
    %162 = math.tanh %152 : vector<2x128xf32>
    %163 = vector.extract_strided_slice %161 {offsets = [0, 0], sizes = [2, 32], strides = [1, 1]} : vector<2x128xf32> to vector<2x32xf32>
    %164 = vector.extract_strided_slice %161 {offsets = [0, 32], sizes = [2, 32], strides = [1, 1]} : vector<2x128xf32> to vector<2x32xf32>
    %165 = vector.extract_strided_slice %162 {offsets = [0, 64], sizes = [2, 32], strides = [1, 1]} : vector<2x128xf32> to vector<2x32xf32>
    %166 = vector.extract_strided_slice %161 {offsets = [0, 96], sizes = [2, 32], strides = [1, 1]} : vector<2x128xf32> to vector<2x32xf32>
    %167 = arith.mulf %164, %125 : vector<2x32xf32>
    %168 = arith.mulf %163, %165 : vector<2x32xf32>
    %169 = arith.addf %167, %168 : vector<2x32xf32>
    %170 = math.tanh %169 : vector<2x32xf32>
    %171 = arith.mulf %166, %170 : vector<2x32xf32>
    %172 = arith.negf %156 : vector<2x128xf32>
    %173 = math.exp %172 : vector<2x128xf32>
    %cst_41 = arith.constant 1.000000e+00 : f32
    %174 = vector.broadcast %cst_41 : f32 to vector<2x128xf32>
    %175 = arith.addf %174, %173 : vector<2x128xf32>
    %176 = arith.divf %174, %175 : vector<2x128xf32>
    %177 = math.tanh %156 : vector<2x128xf32>
    %178 = vector.extract_strided_slice %176 {offsets = [0, 0], sizes = [2, 32], strides = [1, 1]} : vector<2x128xf32> to vector<2x32xf32>
    %179 = vector.extract_strided_slice %176 {offsets = [0, 32], sizes = [2, 32], strides = [1, 1]} : vector<2x128xf32> to vector<2x32xf32>
    %180 = vector.extract_strided_slice %177 {offsets = [0, 64], sizes = [2, 32], strides = [1, 1]} : vector<2x128xf32> to vector<2x32xf32>
    %181 = vector.extract_strided_slice %176 {offsets = [0, 96], sizes = [2, 32], strides = [1, 1]} : vector<2x128xf32> to vector<2x32xf32>
    %182 = arith.mulf %179, %140 : vector<2x32xf32>
    %183 = arith.mulf %178, %180 : vector<2x32xf32>
    %184 = arith.addf %182, %183 : vector<2x32xf32>
    %185 = math.tanh %184 : vector<2x32xf32>
    %186 = arith.mulf %181, %185 : vector<2x32xf32>
    %c0_42 = arith.constant 0 : index
    %c3 = arith.constant 3 : index
    %c0_43 = arith.constant 0 : index
    %187 = vector.load %arg5[%c0_42, %c3, %c0_43] : memref<2x8x64xf32, #tpu.memory_space<vmem>>, vector<2x1x32xf32>
    %188 = vector.shape_cast %187 : vector<2x1x32xf32> to vector<2x32xf32>
    %189 = vector.shape_cast %171 : vector<2x32xf32> to vector<2x1x32xf32>
    tpu.vector_store %arg5[%c0_42, %c3, %c0_43], %189 {strides = array<i32>} : memref<2x8x64xf32, #tpu.memory_space<vmem>>, vector<2x1x32xf32>,
    %c0_44 = arith.constant 0 : index
    %c4 = arith.constant 4 : index
    %c32_45 = arith.constant 32 : index
    %190 = vector.load %arg5[%c0_44, %c4, %c32_45] : memref<2x8x64xf32, #tpu.memory_space<vmem>>, vector<2x1x32xf32>
    %191 = vector.shape_cast %190 : vector<2x1x32xf32> to vector<2x32xf32>
    %192 = vector.shape_cast %186 : vector<2x32xf32> to vector<2x1x32xf32>
    tpu.vector_store %arg5[%c0_44, %c4, %c32_45], %192 {strides = array<i32>} : memref<2x8x64xf32, #tpu.memory_space<vmem>>, vector<2x1x32xf32>,
    %193 = vector.extract_strided_slice %8 {offsets = [0, 4, 0], sizes = [2, 1, 128], strides = [1, 1, 1]} : vector<2x8x128xf32> to vector<2x1x128xf32>
    %194 = vector.shape_cast %193 : vector<2x1x128xf32> to vector<2x128xf32>
    %cst_46 = arith.constant dense<0.000000e+00> : vector<2x128xf32>
    %195 = tpu.matmul %171, %11, %cst_46 {dimension_numbers = #tpu.dot_dimension_numbers<[1], [0], [0], [1], [0, 0, 1, 1], [], []>} : vector<2x32xf32>, vector<32x128xf32>, vector<2x128xf32> -> vector<2x128xf32>
    %196 = arith.addf %194, %195 : vector<2x128xf32>
    %197 = vector.extract_strided_slice %10 {offsets = [0, 3, 0], sizes = [2, 1, 128], strides = [1, 1, 1]} : vector<2x8x128xf32> to vector<2x1x128xf32>
    %198 = vector.shape_cast %197 : vector<2x1x128xf32> to vector<2x128xf32>
    %cst_47 = arith.constant dense<0.000000e+00> : vector<2x128xf32>
    %199 = tpu.matmul %186, %12, %cst_47 {dimension_numbers = #tpu.dot_dimension_numbers<[1], [0], [0], [1], [0, 0, 1, 1], [], []>} : vector<2x32xf32>, vector<32x128xf32>, vector<2x128xf32> -> vector<2x128xf32>
    %200 = arith.addf %198, %199 : vector<2x128xf32>
    %201 = arith.negf %196 : vector<2x128xf32>
    %202 = math.exp %201 : vector<2x128xf32>
    %cst_48 = arith.constant 1.000000e+00 : f32
    %203 = vector.broadcast %cst_48 : f32 to vector<2x128xf32>
    %204 = arith.addf %203, %202 : vector<2x128xf32>
    %205 = arith.divf %203, %204 : vector<2x128xf32>
    %206 = math.tanh %196 : vector<2x128xf32>
    %207 = vector.extract_strided_slice %205 {offsets = [0, 0], sizes = [2, 32], strides = [1, 1]} : vector<2x128xf32> to vector<2x32xf32>
    %208 = vector.extract_strided_slice %205 {offsets = [0, 32], sizes = [2, 32], strides = [1, 1]} : vector<2x128xf32> to vector<2x32xf32>
    %209 = vector.extract_strided_slice %206 {offsets = [0, 64], sizes = [2, 32], strides = [1, 1]} : vector<2x128xf32> to vector<2x32xf32>
    %210 = vector.extract_strided_slice %205 {offsets = [0, 96], sizes = [2, 32], strides = [1, 1]} : vector<2x128xf32> to vector<2x32xf32>
    %211 = arith.mulf %208, %169 : vector<2x32xf32>
    %212 = arith.mulf %207, %209 : vector<2x32xf32>
    %213 = arith.addf %211, %212 : vector<2x32xf32>
    %214 = math.tanh %213 : vector<2x32xf32>
    %215 = arith.mulf %210, %214 : vector<2x32xf32>
    %216 = arith.negf %200 : vector<2x128xf32>
    %217 = math.exp %216 : vector<2x128xf32>
    %cst_49 = arith.constant 1.000000e+00 : f32
    %218 = vector.broadcast %cst_49 : f32 to vector<2x128xf32>
    %219 = arith.addf %218, %217 : vector<2x128xf32>
    %220 = arith.divf %218, %219 : vector<2x128xf32>
    %221 = math.tanh %200 : vector<2x128xf32>
    %222 = vector.extract_strided_slice %220 {offsets = [0, 0], sizes = [2, 32], strides = [1, 1]} : vector<2x128xf32> to vector<2x32xf32>
    %223 = vector.extract_strided_slice %220 {offsets = [0, 32], sizes = [2, 32], strides = [1, 1]} : vector<2x128xf32> to vector<2x32xf32>
    %224 = vector.extract_strided_slice %221 {offsets = [0, 64], sizes = [2, 32], strides = [1, 1]} : vector<2x128xf32> to vector<2x32xf32>
    %225 = vector.extract_strided_slice %220 {offsets = [0, 96], sizes = [2, 32], strides = [1, 1]} : vector<2x128xf32> to vector<2x32xf32>
    %226 = arith.mulf %223, %184 : vector<2x32xf32>
    %227 = arith.mulf %222, %224 : vector<2x32xf32>
    %228 = arith.addf %226, %227 : vector<2x32xf32>
    %229 = math.tanh %228 : vector<2x32xf32>
    %230 = arith.mulf %225, %229 : vector<2x32xf32>
    %c0_50 = arith.constant 0 : index
    %c4_51 = arith.constant 4 : index
    %c0_52 = arith.constant 0 : index
    %231 = vector.load %arg5[%c0_50, %c4_51, %c0_52] : memref<2x8x64xf32, #tpu.memory_space<vmem>>, vector<2x1x32xf32>
    %232 = vector.shape_cast %231 : vector<2x1x32xf32> to vector<2x32xf32>
    %233 = vector.shape_cast %215 : vector<2x32xf32> to vector<2x1x32xf32>
    tpu.vector_store %arg5[%c0_50, %c4_51, %c0_52], %233 {strides = array<i32>} : memref<2x8x64xf32, #tpu.memory_space<vmem>>, vector<2x1x32xf32>,
    %c0_53 = arith.constant 0 : index
    %c3_54 = arith.constant 3 : index
    %c32_55 = arith.constant 32 : index
    %234 = vector.load %arg5[%c0_53, %c3_54, %c32_55] : memref<2x8x64xf32, #tpu.memory_space<vmem>>, vector<2x1x32xf32>
    %235 = vector.shape_cast %234 : vector<2x1x32xf32> to vector<2x32xf32>
    %236 = vector.shape_cast %230 : vector<2x32xf32> to vector<2x1x32xf32>
    tpu.vector_store %arg5[%c0_53, %c3_54, %c32_55], %236 {strides = array<i32>} : memref<2x8x64xf32, #tpu.memory_space<vmem>>, vector<2x1x32xf32>,
    %237 = vector.extract_strided_slice %8 {offsets = [0, 5, 0], sizes = [2, 1, 128], strides = [1, 1, 1]} : vector<2x8x128xf32> to vector<2x1x128xf32>
    %238 = vector.shape_cast %237 : vector<2x1x128xf32> to vector<2x128xf32>
    %cst_56 = arith.constant dense<0.000000e+00> : vector<2x128xf32>
    %239 = tpu.matmul %215, %11, %cst_56 {dimension_numbers = #tpu.dot_dimension_numbers<[1], [0], [0], [1], [0, 0, 1, 1], [], []>} : vector<2x32xf32>, vector<32x128xf32>, vector<2x128xf32> -> vector<2x128xf32>
    %240 = arith.addf %238, %239 : vector<2x128xf32>
    %241 = vector.extract_strided_slice %10 {offsets = [0, 2, 0], sizes = [2, 1, 128], strides = [1, 1, 1]} : vector<2x8x128xf32> to vector<2x1x128xf32>
    %242 = vector.shape_cast %241 : vector<2x1x128xf32> to vector<2x128xf32>
    %cst_57 = arith.constant dense<0.000000e+00> : vector<2x128xf32>
    %243 = tpu.matmul %230, %12, %cst_57 {dimension_numbers = #tpu.dot_dimension_numbers<[1], [0], [0], [1], [0, 0, 1, 1], [], []>} : vector<2x32xf32>, vector<32x128xf32>, vector<2x128xf32> -> vector<2x128xf32>
    %244 = arith.addf %242, %243 : vector<2x128xf32>
    %245 = arith.negf %240 : vector<2x128xf32>
    %246 = math.exp %245 : vector<2x128xf32>
    %cst_58 = arith.constant 1.000000e+00 : f32
    %247 = vector.broadcast %cst_58 : f32 to vector<2x128xf32>
    %248 = arith.addf %247, %246 : vector<2x128xf32>
    %249 = arith.divf %247, %248 : vector<2x128xf32>
    %250 = math.tanh %240 : vector<2x128xf32>
    %251 = vector.extract_strided_slice %249 {offsets = [0, 0], sizes = [2, 32], strides = [1, 1]} : vector<2x128xf32> to vector<2x32xf32>
    %252 = vector.extract_strided_slice %249 {offsets = [0, 32], sizes = [2, 32], strides = [1, 1]} : vector<2x128xf32> to vector<2x32xf32>
    %253 = vector.extract_strided_slice %250 {offsets = [0, 64], sizes = [2, 32], strides = [1, 1]} : vector<2x128xf32> to vector<2x32xf32>
    %254 = vector.extract_strided_slice %249 {offsets = [0, 96], sizes = [2, 32], strides = [1, 1]} : vector<2x128xf32> to vector<2x32xf32>
    %255 = arith.mulf %252, %213 : vector<2x32xf32>
    %256 = arith.mulf %251, %253 : vector<2x32xf32>
    %257 = arith.addf %255, %256 : vector<2x32xf32>
    %258 = math.tanh %257 : vector<2x32xf32>
    %259 = arith.mulf %254, %258 : vector<2x32xf32>
    %260 = arith.negf %244 : vector<2x128xf32>
    %261 = math.exp %260 : vector<2x128xf32>
    %cst_59 = arith.constant 1.000000e+00 : f32
    %262 = vector.broadcast %cst_59 : f32 to vector<2x128xf32>
    %263 = arith.addf %262, %261 : vector<2x128xf32>
    %264 = arith.divf %262, %263 : vector<2x128xf32>
    %265 = math.tanh %244 : vector<2x128xf32>
    %266 = vector.extract_strided_slice %264 {offsets = [0, 0], sizes = [2, 32], strides = [1, 1]} : vector<2x128xf32> to vector<2x32xf32>
    %267 = vector.extract_strided_slice %264 {offsets = [0, 32], sizes = [2, 32], strides = [1, 1]} : vector<2x128xf32> to vector<2x32xf32>
    %268 = vector.extract_strided_slice %265 {offsets = [0, 64], sizes = [2, 32], strides = [1, 1]} : vector<2x128xf32> to vector<2x32xf32>
    %269 = vector.extract_strided_slice %264 {offsets = [0, 96], sizes = [2, 32], strides = [1, 1]} : vector<2x128xf32> to vector<2x32xf32>
    %270 = arith.mulf %267, %228 : vector<2x32xf32>
    %271 = arith.mulf %266, %268 : vector<2x32xf32>
    %272 = arith.addf %270, %271 : vector<2x32xf32>
    %273 = math.tanh %272 : vector<2x32xf32>
    %274 = arith.mulf %269, %273 : vector<2x32xf32>
    %c0_60 = arith.constant 0 : index
    %c5_61 = arith.constant 5 : index
    %c0_62 = arith.constant 0 : index
    %275 = vector.load %arg5[%c0_60, %c5_61, %c0_62] : memref<2x8x64xf32, #tpu.memory_space<vmem>>, vector<2x1x32xf32>
    %276 = vector.shape_cast %275 : vector<2x1x32xf32> to vector<2x32xf32>
    %277 = vector.shape_cast %259 : vector<2x32xf32> to vector<2x1x32xf32>
    tpu.vector_store %arg5[%c0_60, %c5_61, %c0_62], %277 {strides = array<i32>} : memref<2x8x64xf32, #tpu.memory_space<vmem>>, vector<2x1x32xf32>,
    %c0_63 = arith.constant 0 : index
    %c2_64 = arith.constant 2 : index
    %c32_65 = arith.constant 32 : index
    %278 = vector.load %arg5[%c0_63, %c2_64, %c32_65] : memref<2x8x64xf32, #tpu.memory_space<vmem>>, vector<2x1x32xf32>
    %279 = vector.shape_cast %278 : vector<2x1x32xf32> to vector<2x32xf32>
    %280 = vector.shape_cast %274 : vector<2x32xf32> to vector<2x1x32xf32>
    tpu.vector_store %arg5[%c0_63, %c2_64, %c32_65], %280 {strides = array<i32>} : memref<2x8x64xf32, #tpu.memory_space<vmem>>, vector<2x1x32xf32>,
    %281 = vector.extract_strided_slice %8 {offsets = [0, 6, 0], sizes = [2, 1, 128], strides = [1, 1, 1]} : vector<2x8x128xf32> to vector<2x1x128xf32>
    %282 = vector.shape_cast %281 : vector<2x1x128xf32> to vector<2x128xf32>
    %cst_66 = arith.constant dense<0.000000e+00> : vector<2x128xf32>
    %283 = tpu.matmul %259, %11, %cst_66 {dimension_numbers = #tpu.dot_dimension_numbers<[1], [0], [0], [1], [0, 0, 1, 1], [], []>} : vector<2x32xf32>, vector<32x128xf32>, vector<2x128xf32> -> vector<2x128xf32>
    %284 = arith.addf %282, %283 : vector<2x128xf32>
    %285 = vector.extract_strided_slice %10 {offsets = [0, 1, 0], sizes = [2, 1, 128], strides = [1, 1, 1]} : vector<2x8x128xf32> to vector<2x1x128xf32>
    %286 = vector.shape_cast %285 : vector<2x1x128xf32> to vector<2x128xf32>
    %cst_67 = arith.constant dense<0.000000e+00> : vector<2x128xf32>
    %287 = tpu.matmul %274, %12, %cst_67 {dimension_numbers = #tpu.dot_dimension_numbers<[1], [0], [0], [1], [0, 0, 1, 1], [], []>} : vector<2x32xf32>, vector<32x128xf32>, vector<2x128xf32> -> vector<2x128xf32>
    %288 = arith.addf %286, %287 : vector<2x128xf32>
    %289 = arith.negf %284 : vector<2x128xf32>
    %290 = math.exp %289 : vector<2x128xf32>
    %cst_68 = arith.constant 1.000000e+00 : f32
    %291 = vector.broadcast %cst_68 : f32 to vector<2x128xf32>
    %292 = arith.addf %291, %290 : vector<2x128xf32>
    %293 = arith.divf %291, %292 : vector<2x128xf32>
    %294 = math.tanh %284 : vector<2x128xf32>
    %295 = vector.extract_strided_slice %293 {offsets = [0, 0], sizes = [2, 32], strides = [1, 1]} : vector<2x128xf32> to vector<2x32xf32>
    %296 = vector.extract_strided_slice %293 {offsets = [0, 32], sizes = [2, 32], strides = [1, 1]} : vector<2x128xf32> to vector<2x32xf32>
    %297 = vector.extract_strided_slice %294 {offsets = [0, 64], sizes = [2, 32], strides = [1, 1]} : vector<2x128xf32> to vector<2x32xf32>
    %298 = vector.extract_strided_slice %293 {offsets = [0, 96], sizes = [2, 32], strides = [1, 1]} : vector<2x128xf32> to vector<2x32xf32>
    %299 = arith.mulf %296, %257 : vector<2x32xf32>
    %300 = arith.mulf %295, %297 : vector<2x32xf32>
    %301 = arith.addf %299, %300 : vector<2x32xf32>
    %302 = math.tanh %301 : vector<2x32xf32>
    %303 = arith.mulf %298, %302 : vector<2x32xf32>
    %304 = arith.negf %288 : vector<2x128xf32>
    %305 = math.exp %304 : vector<2x128xf32>
    %cst_69 = arith.constant 1.000000e+00 : f32
    %306 = vector.broadcast %cst_69 : f32 to vector<2x128xf32>
    %307 = arith.addf %306, %305 : vector<2x128xf32>
    %308 = arith.divf %306, %307 : vector<2x128xf32>
    %309 = math.tanh %288 : vector<2x128xf32>
    %310 = vector.extract_strided_slice %308 {offsets = [0, 0], sizes = [2, 32], strides = [1, 1]} : vector<2x128xf32> to vector<2x32xf32>
    %311 = vector.extract_strided_slice %308 {offsets = [0, 32], sizes = [2, 32], strides = [1, 1]} : vector<2x128xf32> to vector<2x32xf32>
    %312 = vector.extract_strided_slice %309 {offsets = [0, 64], sizes = [2, 32], strides = [1, 1]} : vector<2x128xf32> to vector<2x32xf32>
    %313 = vector.extract_strided_slice %308 {offsets = [0, 96], sizes = [2, 32], strides = [1, 1]} : vector<2x128xf32> to vector<2x32xf32>
    %314 = arith.mulf %311, %272 : vector<2x32xf32>
    %315 = arith.mulf %310, %312 : vector<2x32xf32>
    %316 = arith.addf %314, %315 : vector<2x32xf32>
    %317 = math.tanh %316 : vector<2x32xf32>
    %318 = arith.mulf %313, %317 : vector<2x32xf32>
    %c0_70 = arith.constant 0 : index
    %c6_71 = arith.constant 6 : index
    %c0_72 = arith.constant 0 : index
    %319 = vector.load %arg5[%c0_70, %c6_71, %c0_72] : memref<2x8x64xf32, #tpu.memory_space<vmem>>, vector<2x1x32xf32>
    %320 = vector.shape_cast %319 : vector<2x1x32xf32> to vector<2x32xf32>
    %321 = vector.shape_cast %303 : vector<2x32xf32> to vector<2x1x32xf32>
    tpu.vector_store %arg5[%c0_70, %c6_71, %c0_72], %321 {strides = array<i32>} : memref<2x8x64xf32, #tpu.memory_space<vmem>>, vector<2x1x32xf32>,
    %c0_73 = arith.constant 0 : index
    %c1_74 = arith.constant 1 : index
    %c32_75 = arith.constant 32 : index
    %322 = vector.load %arg5[%c0_73, %c1_74, %c32_75] : memref<2x8x64xf32, #tpu.memory_space<vmem>>, vector<2x1x32xf32>
    %323 = vector.shape_cast %322 : vector<2x1x32xf32> to vector<2x32xf32>
    %324 = vector.shape_cast %318 : vector<2x32xf32> to vector<2x1x32xf32>
    tpu.vector_store %arg5[%c0_73, %c1_74, %c32_75], %324 {strides = array<i32>} : memref<2x8x64xf32, #tpu.memory_space<vmem>>, vector<2x1x32xf32>,
    %325 = vector.extract_strided_slice %8 {offsets = [0, 7, 0], sizes = [2, 1, 128], strides = [1, 1, 1]} : vector<2x8x128xf32> to vector<2x1x128xf32>
    %326 = vector.shape_cast %325 : vector<2x1x128xf32> to vector<2x128xf32>
    %cst_76 = arith.constant dense<0.000000e+00> : vector<2x128xf32>
    %327 = tpu.matmul %303, %11, %cst_76 {dimension_numbers = #tpu.dot_dimension_numbers<[1], [0], [0], [1], [0, 0, 1, 1], [], []>} : vector<2x32xf32>, vector<32x128xf32>, vector<2x128xf32> -> vector<2x128xf32>
    %328 = arith.addf %326, %327 : vector<2x128xf32>
    %329 = vector.extract_strided_slice %10 {offsets = [0, 0, 0], sizes = [2, 1, 128], strides = [1, 1, 1]} : vector<2x8x128xf32> to vector<2x1x128xf32>
    %330 = vector.shape_cast %329 : vector<2x1x128xf32> to vector<2x128xf32>
    %cst_77 = arith.constant dense<0.000000e+00> : vector<2x128xf32>
    %331 = tpu.matmul %318, %12, %cst_77 {dimension_numbers = #tpu.dot_dimension_numbers<[1], [0], [0], [1], [0, 0, 1, 1], [], []>} : vector<2x32xf32>, vector<32x128xf32>, vector<2x128xf32> -> vector<2x128xf32>
    %332 = arith.addf %330, %331 : vector<2x128xf32>
    %333 = arith.negf %328 : vector<2x128xf32>
    %334 = math.exp %333 : vector<2x128xf32>
    %cst_78 = arith.constant 1.000000e+00 : f32
    %335 = vector.broadcast %cst_78 : f32 to vector<2x128xf32>
    %336 = arith.addf %335, %334 : vector<2x128xf32>
    %337 = arith.divf %335, %336 : vector<2x128xf32>
    %338 = math.tanh %328 : vector<2x128xf32>
    %339 = vector.extract_strided_slice %337 {offsets = [0, 0], sizes = [2, 32], strides = [1, 1]} : vector<2x128xf32> to vector<2x32xf32>
    %340 = vector.extract_strided_slice %337 {offsets = [0, 32], sizes = [2, 32], strides = [1, 1]} : vector<2x128xf32> to vector<2x32xf32>
    %341 = vector.extract_strided_slice %338 {offsets = [0, 64], sizes = [2, 32], strides = [1, 1]} : vector<2x128xf32> to vector<2x32xf32>
    %342 = vector.extract_strided_slice %337 {offsets = [0, 96], sizes = [2, 32], strides = [1, 1]} : vector<2x128xf32> to vector<2x32xf32>
    %343 = arith.mulf %340, %301 : vector<2x32xf32>
    %344 = arith.mulf %339, %341 : vector<2x32xf32>
    %345 = arith.addf %343, %344 : vector<2x32xf32>
    %346 = math.tanh %345 : vector<2x32xf32>
    %347 = arith.mulf %342, %346 : vector<2x32xf32>
    %348 = arith.negf %332 : vector<2x128xf32>
    %349 = math.exp %348 : vector<2x128xf32>
    %cst_79 = arith.constant 1.000000e+00 : f32
    %350 = vector.broadcast %cst_79 : f32 to vector<2x128xf32>
    %351 = arith.addf %350, %349 : vector<2x128xf32>
    %352 = arith.divf %350, %351 : vector<2x128xf32>
    %353 = math.tanh %332 : vector<2x128xf32>
    %354 = vector.extract_strided_slice %352 {offsets = [0, 0], sizes = [2, 32], strides = [1, 1]} : vector<2x128xf32> to vector<2x32xf32>
    %355 = vector.extract_strided_slice %352 {offsets = [0, 32], sizes = [2, 32], strides = [1, 1]} : vector<2x128xf32> to vector<2x32xf32>
    %356 = vector.extract_strided_slice %353 {offsets = [0, 64], sizes = [2, 32], strides = [1, 1]} : vector<2x128xf32> to vector<2x32xf32>
    %357 = vector.extract_strided_slice %352 {offsets = [0, 96], sizes = [2, 32], strides = [1, 1]} : vector<2x128xf32> to vector<2x32xf32>
    %358 = arith.mulf %355, %316 : vector<2x32xf32>
    %359 = arith.mulf %354, %356 : vector<2x32xf32>
    %360 = arith.addf %358, %359 : vector<2x32xf32>
    %361 = math.tanh %360 : vector<2x32xf32>
    %362 = arith.mulf %357, %361 : vector<2x32xf32>
    %c0_80 = arith.constant 0 : index
    %c7_81 = arith.constant 7 : index
    %c0_82 = arith.constant 0 : index
    %363 = vector.load %arg5[%c0_80, %c7_81, %c0_82] : memref<2x8x64xf32, #tpu.memory_space<vmem>>, vector<2x1x32xf32>
    %364 = vector.shape_cast %363 : vector<2x1x32xf32> to vector<2x32xf32>
    %365 = vector.shape_cast %347 : vector<2x32xf32> to vector<2x1x32xf32>
    tpu.vector_store %arg5[%c0_80, %c7_81, %c0_82], %365 {strides = array<i32>} : memref<2x8x64xf32, #tpu.memory_space<vmem>>, vector<2x1x32xf32>,
    %c0_83 = arith.constant 0 : index
    %c0_84 = arith.constant 0 : index
    %c32_85 = arith.constant 32 : index
    %366 = vector.load %arg5[%c0_83, %c0_84, %c32_85] : memref<2x8x64xf32, #tpu.memory_space<vmem>>, vector<2x1x32xf32>
    %367 = vector.shape_cast %366 : vector<2x1x32xf32> to vector<2x32xf32>
    %368 = vector.shape_cast %362 : vector<2x32xf32> to vector<2x1x32xf32>
    tpu.vector_store %arg5[%c0_83, %c0_84, %c32_85], %368 {strides = array<i32>} : memref<2x8x64xf32, #tpu.memory_space<vmem>>, vector<2x1x32xf32>,
    %369 = tpu.concatenate %347, %362 in 1 : vector<2x32xf32>, vector<2x32xf32> -> vector<2x64xf32>
    %c0_86 = arith.constant 0 : index
    %c0_87 = arith.constant 0 : index
    %370 = vector.load %arg6[%c0_86, %c0_87] : memref<2x64xf32, #tpu.memory_space<vmem>>, vector<2x64xf32>
    tpu.vector_store %arg6[%c0_86, %c0_87], %369 {strides = array<i32>} : memref<2x64xf32, #tpu.memory_space<vmem>>, vector<2x64xf32>,
    return
  }
}

</mosaic_0001>

<bundles_post_ra>
// kernel: vae_forward.6
= control target key start
LH: loop header
LB: loop body
LE: loop exit
PB: predicated region body
PF: predicated region fallthrough
CT: control target
= control target key end

     0   :  { %s226_s0 = inlined_call_operand.vmem [shape: f32[2,64], index: 0, kind: input, shape index: {}]   ;;  %s227_s1 = inlined_call_operand.vmem [shape: f32[64,32], index: 1, kind: input, shape index: {}]   ;;  %s228_s2 = inlined_call_operand.vmem [shape: f32[1,32], index: 2, kind: input, shape index: {}]   ;;  %s229_s3 = inlined_call_operand.vmem [shape: f32[2,16], index: 3, kind: input, shape index: {}]   ;;  %s230_s4 = inlined_call_operand.vmem [shape: f32[2,16], index: 4, kind: output, shape index: {0}]   ;;  %s231_s5 = inlined_call_operand.hbm [shape: f32[1,1], index: 5, kind: output, shape index: {1}]  }
   0x1   :  { %v28_v0 = vld [vmem:[%s227_s1 + $0x38] sm:$0xff]  ;;  %v27_v1 = vld [vmem:[%s227_s1 + $0x30] sm:$0xff]  ;;  %v26_v2 = vld [vmem:[%s227_s1 + $0x28] sm:$0xff] }
   0x2   :  { %45 = vmatpush.msra.mxu0 %v28_v0 }
   0x4   :  { %46 = vmatpush.msra.mxu0 %v27_v1 }
   0x5   :  { %11 = vsyncpa [#allocation3], 0  ;;  %v25_v3 = vld [vmem:[%s227_s1 + $0x20] sm:$0xff]  ;;  %v24_v4 = vld [vmem:[%s227_s1 + $0x18] sm:$0xff]  ;;  %vm33_vm0 = vcmask 523264   ;;  %s152_s13 = smov 16  }
   0x6   :  { %47 = vmatpush.msra.mxu0 %v26_v2  ;;  %v23_v5 = vld [vmem:[%s227_s1 + $0x10] sm:$0xff]  ;;  %v22_v6 = vld [vmem:[%s227_s1 + $0x8] sm:$0xff]  ;;  %v21_v7 = vld [vmem:[%s227_s1] sm:$0xff]  ;;  %vm67_vm1 = vcmask 123904   ;;  %vm86_vm2 = vcmask 1041408   ;;  %s154_s1 = smov [#allocation2]  }
   0x7   :  { %v20_v8 = vld [vmem:[%s226_s0] sm:$0x3]  ;;  %s153_s0 = smov 112   ;;  %s106_s16 = sshll.u32 %s231_s5, 4  ;;  %vm95_vm3 = vcmask 0   ;;  %s107_s16 = int_to_ptr.hbm [resolvable:$true] %s106_s16 }
   0x8   :  { %48 = vmatpush.msra.mxu0 %v25_v3  ;;  %v121_v9 = vld [vmem:[%s228_s2] ss:$0 sm:$0xff]  ;;  %s104_s2 = sshll.u32 %s154_s1, 4  ;;  %s105_s2 = int_to_ptr.vmem [resolvable:$true] %s104_s2 }
   0x9   :  { %v57_v33 = vld [vmem:[%s229_s3] sm:$0x3] }
   0xa   :  { %49 = vmatpush.msra.mxu0 %v24_v4 }
   0xc   :  { %50 = vmatpush.msra.mxu0 %v23_v5 }
   0xe   :  { %51 = vmatpush.msra.mxu0 %v22_v6 }
  0x10   :  { %52 = vmatpush.msra.mxu0 %v21_v7 }
  0x11   :  { %117 = vmatmul.msk.f32.vlgmr.msra.gmra.mxu0 %vm33_vm0, %v20_v8 }
  0x8e   :  { %v54_v10 = vpop.f32.mrf.mxu0 }
  0x8f   :  { %v55_v11 = vadd.f32 %v121_v9, %v54_v10 }
  0x91   :  { %v70_v12 = vmul.f32 %v55_v11, %v55_v11  ;;  %v76_v13 = vmul.f32 1.442695, %v55_v11  ;;  %v69_v14 = vadd.f32 1.0, %v55_v11  ;;  %v58_v21 = vmul.f32 0.5, %v55_v11 }
  0x93   :  { %72 = vrot.lane.b32.xlu0 %v70_v12, %s152_s13  ;;  %122 = vpow2.f32 %v76_v13  ;;  %v59_v22 = vmul.f32 1.442695, %v58_v21 }
  0x95   :  { %124 = vpow2.f32 %v59_v22 }
  0x99   :  { %v123_v17 = vpop.eup %122 }
  0x9b   :  { %v125_v23 = vpop.eup %124 }
 0x105   :  { %v73_v15 = vpop.permute.xlu0 %72 }
 0x106   :  { %v75_v16 = vsub.f32 %v69_v14, %v73_v15 }
 0x108   :  { %v78_v18 = vsub.f32 %v75_v16, %v123_v17 }
 0x10a   :  { %80 = vrot.lane.b32.xlu0 %v78_v18, %s153_s0 }
 0x17c   :  { %v81_v19 = vpop.permute.xlu0 %80 }
 0x17d   :  { %v83_v20 = vsel %vm67_vm1, %v81_v19, 0.0 }
 0x17e   :  { %84 = vadd.xlane.f32.xlu1 %v83_v20 }
 0x197   :  { %62 = vrot.lane.b32.xlu1 %v125_v23, %s153_s0 }
 0x1f1   :  { %v85_v24 = vpop.xlane.xlu1 %84 }
 0x1f2   :  { %v87_v25 = vsel %vm86_vm2, %v85_v24, 0.0 }
 0x1f3   :  { %v88_v26 = vrot.slane %v87_v25, 4 }
 0x1f5   :  { %v89_v27 = vadd.f32 %v88_v26, %v87_v25 }
 0x1f7   :  { %v90_v28 = vrot.slane %v89_v27, 2 }
 0x1f9   :  { %v91_v29 = vadd.f32 %v90_v28, %v89_v27 }
 0x1fb   :  { %v92_v30 = vrot.slane %v91_v29, 1 }
 0x1fd   :  { %v93_v31 = vadd.f32 %v92_v30, %v91_v29 }
 0x1ff   :  { %v94_v32 = vmul.f32 -0.5, %v93_v31 }
 0x201   :  { %96 = vst.msk [vmem:[#allocation2] sm:$0x1] %vm95_vm3, %v94_v32 }
 0x202   :  { %109 = dma.vmem_to_hbm [thread:$0]  %s105_s2, 16, %s107_s16, [#allocation3]  }
 0x209   :  { %v63_v34 = vpop.permute.xlu1 %62 }
 0x20a   :  { %v65_v35 = vmul.f32 %v63_v34, %v57_v33 }
 0x20c   :  { %v66_v36 = vadd.f32 %v65_v35, %v55_v11 }
 0x20e   :  { %68 = vst.msk [vmem:[%s230_s4] sm:$0x3] %vm67_vm1, %v66_v36 }
 0x20f   :  { %150 = dma.done.wait [#allocation3], 16  }
 0x210   :  { %151 = vsyncadd [#allocation3], 4294967280 }
 0x211   :  { %116 = vsyncpa [#allocation3], 1 }

// kernel: vae_forward.4
= control target key start
LH: loop header
LB: loop body
LE: loop exit
PB: predicated region body
PF: predicated region fallthrough
CT: control target
= control target key end

     0   :  { %vm30_vm0 = vcmask 261120   ;;  %s355_s1 = inlined_call_operand.vmem [shape: f32[32,96], index: 1, kind: input, shape index: {}]   ;;  %s356_s2 = inlined_call_operand.vmem [shape: f32[1,96], index: 2, kind: input, shape index: {}]   ;;  %s357_s0 = inlined_call_operand.vmem [shape: f32[16,32], index: 0, kind: input, shape index: {}]   ;;  %s358_s4 = inlined_call_operand.vmem [shape: f32[1,96], index: 4, kind: input, shape index: {}]   ;;  %s359_s3 = inlined_call_operand.vmem [shape: f32[32,96], index: 3, kind: input, shape index: {}]   ;;  %s360_s5 = inlined_call_operand.vmem [shape: f32[16,32], index: 5, kind: output, shape index: {}]  }
   0x1   :  { %v25_v0 = vld [vmem:[%s355_s1 + $0x18] sm:$0xff]  ;;  %v24_v1 = vld [vmem:[%s355_s1 + $0x10] sm:$0xff]  ;;  %v23_v2 = vld [vmem:[%s355_s1 + $0x8] sm:$0xff] }
   0x2   :  { %49 = vmatpush.msra.mxu0 %v25_v0  ;;  %239 = vmatpush.msra.mxu2 %v25_v0  ;;  %v22_v3 = vld [vmem:[%s355_s1] sm:$0xff]  ;;  %v21_v5 = vld [vmem:[%s357_s0 + $0x8] sm:$0xff]  ;;  %s267_s1 = smov 96   ;;  %v127_v16 = vld [vmem:[%s359_s3 + $0x18] sm:$0xff] }
   0x3   :  { %v20_v4 = vld [vmem:[%s357_s0] sm:$0xff]  ;;  %s268_s0 = smov 64   ;;  %150 = vmatpush.msra.mxu1 %v127_v16  ;;  %243 = vmatpush.msra.mxu3 %v127_v16  ;;  %v126_v19 = vld [vmem:[%s359_s3 + $0x10] sm:$0xff]  ;;  %v125_v20 = vld [vmem:[%s359_s3 + $0x8] sm:$0xff] }
   0x4   :  { %50 = vmatpush.msra.mxu0 %v24_v1  ;;  %240 = vmatpush.msra.mxu2 %v24_v1  ;;  %v249_v6 = vld [vmem:[%s356_s2] ss:$0 sm:$0xff] }
   0x5   :  { %151 = vmatpush.msra.mxu1 %v126_v19  ;;  %244 = vmatpush.msra.mxu3 %v126_v19  ;;  %v124_v22 = vld [vmem:[%s359_s3] sm:$0xff] }
   0x6   :  { %51 = vmatpush.msra.mxu0 %v23_v2  ;;  %241 = vmatpush.msra.mxu2 %v23_v2  ;;  %v250_v55 = vld [vmem:[%s358_s4] ss:$0 sm:$0xff] }
   0x7   :  { %152 = vmatpush.msra.mxu1 %v125_v20  ;;  %245 = vmatpush.msra.mxu3 %v125_v20 }
   0x8   :  { %52 = vmatpush.msra.mxu0 %v22_v3  ;;  %242 = vmatpush.msra.mxu2 %v22_v3 }
   0x9   :  { %231 = vmatmul.msk.f32.vlgmr.msra.gmra.mxu0 %vm30_vm0, %v20_v4  ;;  %232 = vmatmul.msk.f32.vlgmr.msra.gmra.mxu2 %vm30_vm0, %v21_v5 }
   0xa   :  { %153 = vmatpush.msra.mxu1 %v124_v22  ;;  %246 = vmatpush.msra.mxu3 %v124_v22 }
  0x86   :  { %v54_v7 = vpop.f32.mrf.mxu0 }
  0x87   :  { %v55_v8 = vadd.f32 %v249_v6, %v54_v7 }
  0x89   :  { %v98_v9 = vmax.f32 %v55_v8, 0.0  ;;  %v233_v13 = vmul.f32 -1.442695, %v55_v8 }
  0x8b   :  { %102 = vrot.lane.b32.xlu1 %v98_v9, %s267_s1  ;;  %251 = vpow2.f32 %v233_v13 }
  0x8c   :  { %v57_v10 = vpop.f32.mrf.mxu2 }
  0x8d   :  { %v58_v11 = vadd.f32 %v249_v6, %v57_v10 }
  0x8f   :  { %v99_v12 = vmax.f32 %v58_v11, 0.0  ;;  %v234_v14 = vmul.f32 -1.442695, %v58_v11 }
  0x91   :  { %104 = vrot.lane.b32.xlu0 %v99_v12, %s267_s1  ;;  %v252_v15 = vpop.eup %251  ;;  %253 = vpow2.f32 %v234_v14 }
  0x92   :  { %v66_v17 = vadd.f32 1.0, %v252_v15 }
  0x93   :  { %114 = vrot.lane.b32.xlu1 %v55_v8, %s268_s0 }
  0x94   :  { %255 = vrcp.f32 %v66_v17  ;;  %vm73_vm1 = vweird.f32 %v66_v17  ;;  %v79_v30 = vand.u32 2147483648, %v66_v17  ;;  %v77_v32 = vand.u32 2147483647, %v66_v17 }
  0x96   :  { %v80_v35 = vor.u32 1.1754944e-38, %v79_v30  ;;  %vm78_vm4 = vcmp.eq.f32.partialorder %v77_v32, 8.507059e+37 }
  0x97   :  { %v254_v18 = vpop.eup %253 }
  0x98   :  { %v67_v21 = vadd.f32 1.0, %v254_v18 }
  0x99   :  { %116 = vrot.lane.b32.xlu0 %v58_v11, %s268_s0 }
  0x9a   :  { %v256_v23 = vpop.eup %255  ;;  %257 = vrcp.f32 %v67_v21  ;;  %v94_v39 = vand.u32 2147483648, %v67_v21  ;;  %vm88_vm6 = vweird.f32 %v67_v21  ;;  %v92_v40 = vand.u32 2147483647, %v67_v21 }
  0x9b   :  { %v69_v24 = vmul.f32 %v256_v23, %v66_v17  ;;  %vm74_vm2 = vweird.f32 %v256_v23 }
  0x9c   :  { %vm75_vm3 = vmor %vm73_vm1, %vm74_vm2  ;;  %v95_v44 = vor.u32 1.1754944e-38, %v94_v39  ;;  %vm93_vm8 = vcmp.eq.f32.partialorder %v92_v40, 8.507059e+37 }
  0x9d   :  { %v70_v26 = vsub.f32 1.0, %v69_v24 }
  0x9f   :  { %v71_v28 = vmul.f32 %v256_v23, %v70_v26 }
  0xa0   :  { %v258_v25 = vpop.eup %257 }
  0xa1   :  { %v84_v27 = vmul.f32 %v258_v25, %v67_v21  ;;  %v72_v31 = vadd.f32 %v256_v23, %v71_v28  ;;  %vm89_vm5 = vweird.f32 %v258_v25 }
  0xa2   :  { %vm90_vm7 = vmor %vm88_vm6, %vm89_vm5 }
  0xa3   :  { %v85_v29 = vsub.f32 1.0, %v84_v27  ;;  %v76_v36 = vsel %vm75_vm3, %v256_v23, %v72_v31 }
  0xa4   :  { %v81_v38 = vsel %vm78_vm4, %v80_v35, %v76_v36 }
  0xa5   :  { %v86_v33 = vmul.f32 %v258_v25, %v85_v29  ;;  %v110_v43 = vsub.f32 1.0, %v81_v38 }
  0xa7   :  { %v87_v37 = vadd.f32 %v258_v25, %v86_v33 }
  0xa9   :  { %v91_v42 = vsel %vm90_vm7, %v258_v25, %v87_v37 }
  0xaa   :  { %v96_v48 = vsel %vm93_vm8, %v95_v44, %v91_v42 }
  0xab   :  { %v111_v50 = vsub.f32 1.0, %v96_v48 }
  0xfd   :  { %v103_v34 = vpop.permute.xlu1 %102 }
  0xfe   :  { %v108_v46 = vmul.f32 %v103_v34, %v81_v38 }
 0x103   :  { %v105_v41 = vpop.permute.xlu0 %104 }
 0x104   :  { %v109_v52 = vmul.f32 %v105_v41, %v96_v48 }
 0x105   :  { %v115_v45 = vpop.permute.xlu1 %114 }
 0x106   :  { %v120_v47 = vmul.f32 %v115_v45, %v110_v43 }
 0x108   :  { %v122_v49 = vadd.f32 %v120_v47, %v108_v46 }
 0x10a   :  { %235 = vmatmul.msk.f32.vlgmr.msra.gmra.mxu1 %vm30_vm0, %v122_v49 }
 0x10b   :  { %v117_v51 = vpop.permute.xlu0 %116 }
 0x10c   :  { %v121_v53 = vmul.f32 %v117_v51, %v111_v50 }
 0x10e   :  { %v123_v54 = vadd.f32 %v121_v53, %v109_v52 }
 0x110   :  { %236 = vmatmul.msk.f32.vlgmr.msra.gmra.mxu3 %vm30_vm0, %v123_v54 }
 0x187   :  { %v155_v56 = vpop.f32.mrf.mxu1 }
 0x188   :  { %v156_v57 = vadd.f32 %v250_v55, %v155_v56 }
 0x18a   :  { %215 = vrot.lane.b32.xlu0 %v156_v57, %s268_s0  ;;  %v199_v58 = vmax.f32 %v156_v57, 0.0  ;;  %v237_v62 = vmul.f32 -1.442695, %v156_v57 }
 0x18c   :  { %203 = vrot.lane.b32.xlu2 %v199_v58, %s267_s1  ;;  %259 = vpow2.f32 %v237_v62 }
 0x192   :  { %v260_v63 = vpop.eup %259 }
 0x193   :  { %v158_v59 = vpop.f32.mrf.mxu3  ;;  %v167_v1 = vadd.f32 1.0, %v260_v63 }
 0x194   :  { %v159_v60 = vadd.f32 %v250_v55, %v158_v59 }
 0x195   :  { %v180_v11 = vand.u32 2147483648, %v167_v1  ;;  %vm174_vm10 = vweird.f32 %v167_v1  ;;  %v178_v12 = vand.u32 2147483647, %v167_v1 }
 0x196   :  { %217 = vrot.lane.b32.xlu1 %v159_v60, %s268_s0  ;;  %v200_v61 = vmax.f32 %v159_v60, 0.0  ;;  %v238_v0 = vmul.f32 -1.442695, %v159_v60 }
 0x197   :  { %v181_v15 = vor.u32 1.1754944e-38, %v180_v11  ;;  %vm179_vm12 = vcmp.eq.f32.partialorder %v178_v12, 8.507059e+37 }
 0x198   :  { %205 = vrot.lane.b32.xlu2 %v200_v61, %s267_s1  ;;  %261 = vpow2.f32 %v238_v0 }
 0x199   :  { %263 = vrcp.f32 %v167_v1 }
 0x19e   :  { %v262_v2 = vpop.eup %261 }
 0x19f   :  { %v264_v3 = vpop.eup %263  ;;  %v168_v4 = vadd.f32 1.0, %v262_v2 }
 0x1a0   :  { %v170_v5 = vmul.f32 %v264_v3, %v167_v1  ;;  %vm175_vm9 = vweird.f32 %v264_v3 }
 0x1a1   :  { %265 = vrcp.f32 %v168_v4  ;;  %vm176_vm11 = vmor %vm174_vm10, %vm175_vm9  ;;  %v195_v24 = vand.u32 2147483648, %v168_v4  ;;  %vm189_vm14 = vweird.f32 %v168_v4  ;;  %v193_v25 = vand.u32 2147483647, %v168_v4 }
 0x1a2   :  { %v171_v6 = vsub.f32 1.0, %v170_v5 }
 0x1a3   :  { %v196_v28 = vor.u32 1.1754944e-38, %v195_v24  ;;  %vm194_vm1 = vcmp.eq.f32.partialorder %v193_v25, 8.507059e+37 }
 0x1a4   :  { %v172_v7 = vmul.f32 %v264_v3, %v171_v6 }
 0x1a6   :  { %v173_v9 = vadd.f32 %v264_v3, %v172_v7 }
 0x1a7   :  { %v266_v8 = vpop.eup %265 }
 0x1a8   :  { %v185_v10 = vmul.f32 %v266_v8, %v168_v4  ;;  %v177_v13 = vsel %vm176_vm11, %v264_v3, %v173_v9  ;;  %vm190_vm13 = vweird.f32 %v266_v8 }
 0x1a9   :  { %v182_v16 = vsel %vm179_vm12, %v181_v15, %v177_v13  ;;  %vm191_vm15 = vmor %vm189_vm14, %vm190_vm13 }
 0x1aa   :  { %v186_v14 = vsub.f32 1.0, %v185_v10  ;;  %v211_v19 = vsub.f32 1.0, %v182_v16 }
 0x1ac   :  { %v187_v17 = vmul.f32 %v266_v8, %v186_v14 }
 0x1ae   :  { %v188_v22 = vadd.f32 %v266_v8, %v187_v17 }
 0x1b0   :  { %v192_v27 = vsel %vm191_vm15, %v266_v8, %v188_v22 }
 0x1b1   :  { %v197_v29 = vsel %vm194_vm1, %v196_v28, %v192_v27 }
 0x1b2   :  { %v212_v31 = vsub.f32 1.0, %v197_v29 }
 0x1e6   :  { %v204_v18 = vpop.permute.xlu2 %203 }
 0x1e7   :  { %v209_v21 = vmul.f32 %v204_v18, %v182_v16 }
 0x1f2   :  { %v206_v30 = vpop.permute.xlu2 %205 }
 0x1f3   :  { %v210_v33 = vmul.f32 %v206_v30, %v197_v29 }
 0x1fc   :  { %v216_v20 = vpop.permute.xlu0 %215 }
 0x1fd   :  { %v221_v23 = vmul.f32 %v216_v20, %v211_v19 }
 0x1ff   :  { %v223_v26 = vadd.f32 %v221_v23, %v209_v21 }
 0x201   :  { %225 = vst.msk [vmem:[%s360_s5] sm:$0xff] %vm30_vm0, %v223_v26 }
 0x208   :  { %v218_v32 = vpop.permute.xlu1 %217 }
 0x209   :  { %v222_v34 = vmul.f32 %v218_v32, %v212_v31 }
 0x20b   :  { %v224_v35 = vadd.f32 %v222_v34, %v210_v33 }
 0x20d   :  { %226 = vst.msk [vmem:[%s360_s5 + $0x8] sm:$0xff] %vm30_vm0, %v224_v35 }

// kernel: vae_forward.7
= control target key start
LH: loop header
LB: loop body
LE: loop exit
PB: predicated region body
PF: predicated region fallthrough
CT: control target
= control target key end

     0   :  { %16 = vsyncpa [#allocation4], 0  ;;  %vm77_vm0 = vcmask 130048   ;;  %vm40_vm1 = vcmask 261120   ;;  %s1324_s0 = inlined_call_operand.vmem [shape: f32[2,8,32], index: 0, kind: input, shape index: {}]   ;;  %s1325_s1 = inlined_call_operand.vmem [shape: f32[2,16], index: 1, kind: input, shape index: {}]   ;;  %s1326_s2 = inlined_call_operand.vmem [shape: f32[32,128], index: 2, kind: input, shape index: {}]   ;;  %s1327_s3 = inlined_call_operand.vmem [shape: f32[16,128], index: 3, kind: input, shape index: {}]   ;;  %s1328_s4 = inlined_call_operand.vmem [shape: f32[32,128], index: 4, kind: input, shape index: {}]   ;;  %s1329_s5 = inlined_call_operand.vmem [shape: f32[1,128], index: 5, kind: input, shape index: {}]   ;;  %s1330_s6 = inlined_call_operand.vmem [shape: f32[32,64], index: 6, kind: input, shape index: {}]   ;;  %s1331_s7 = inlined_call_operand.vmem [shape: f32[1,64], index: 7, kind: input, shape index: {}]   ;;  %s1332_s8 = inlined_call_operand.hbm [shape: f32[2,8,64], index: 8, kind: output, shape index: {0}]   ;;  %s1333_s9 = inlined_call_operand.hbm [shape: f32[1,2,32], index: 9, kind: output, shape index: {1}]   ;;  %s1334_s10 = inlined_call_operand.hbm [shape: f32[1,2,32], index: 10, kind: output, shape index: {2}]  }
   0x1   :  { %v39_v0 = vld [vmem:[%s1326_s2 + $0x18] sm:$0xff]  ;;  %v38_v1 = vld [vmem:[%s1326_s2 + $0x10] sm:$0xff]  ;;  %v37_v3 = vld [vmem:[%s1326_s2 + $0x8] sm:$0xff] }
   0x2   :  { %59 = vmatpush.msra.mxu0 %v39_v0  ;;  %v1075_v2 = vld [vmem:[%s1328_s4 + $0x18] sm:$0xff]  ;;  %v36_v4 = vld [vmem:[%s1326_s2] sm:$0xff]  ;;  %v1087_v5 = vld [vmem:[%s1328_s4 + $0x10] sm:$0xff] }
   0x3   :  { %126 = vmatpush.msra.mxu2 %v1075_v2  ;;  %438 = vmatpush.msra.mxu3 %v1075_v2  ;;  %v1093_v6 = vld [vmem:[%s1328_s4 + $0x8] sm:$0xff]  ;;  %v71_v8 = vld [vmem:[%s1327_s3] sm:$0xff] }
   0x4   :  { %60 = vmatpush.msra.mxu0 %v38_v1  ;;  %v72_v7 = vld [vmem:[%s1327_s3 + $0x8] sm:$0xff]  ;;  %v70_v9 = vld [vmem:[%s1325_s1] sm:$0x3] }
   0x5   :  { %127 = vmatpush.msra.mxu2 %v1087_v5  ;;  %95 = vmatpush.msra.mxu1 %v72_v7  ;;  %v34_v10 = vld [vmem:[%s1324_s0] sm:$0xff] }
   0x6   :  { %61 = vmatpush.msra.mxu0 %v37_v3  ;;  %v1111_v11 = vld [vmem:[%s1328_s4] sm:$0xff]  ;;  %439 = vmatpush.msra.mxu3 %v1087_v5 }
   0x7   :  { %17 = vsyncpa [#allocation6], 0  ;;  %128 = vmatpush.msra.mxu2 %v1093_v6  ;;  %96 = vmatpush.msra.mxu1 %v71_v8  ;;  %v1002_v12 = vmov 0.0   ;;  %v35_v13 = vld [vmem:[%s1324_s0 + $0x8] sm:$0xff]  ;;  %v860_v15 = vld [vmem:[%s1329_s5] ss:$0 sm:$0xff] }
   0x8   :  { %62 = vmatpush.msra.mxu0 %v36_v4  ;;  %833 = vmatmul.msk.f32.vlgmr.msra.gmra.mxu1 %vm77_vm0, %v70_v9  ;;  %vm108_vm2 = vcmask 1041409   ;;  %s1003_s5 = smov 64   ;;  %s1004_s16 = smov 32  }
   0x9   :  { %831 = vmatmul.msk.f32.vlgmr.msra.gmra.mxu0 %vm40_vm1, %v34_v10  ;;  %129 = vmatpush.msra.mxu2 %v1111_v11  ;;  %s1005_s17 = smov 96   ;;  %s802_s29 = sshll.u32 %s1333_s9, 4  ;;  %s803_s29 = int_to_ptr.hbm [resolvable:$true] %s802_s29 }
   0xa   :  { %130 = vmatmul.f32.vlgmr.msra.gmra.mxu2 %v1002_v12  ;;  %204 = vmatpush.msrb.mxu1 %v1075_v2  ;;  %s1007_s30 = smov [#allocation7]   ;;  %s813_s13 = sshll.u32 %s1334_s10, 4  ;;  %s814_s13 = int_to_ptr.hbm [resolvable:$true] %s813_s13 }
   0xb   :  { %360 = vmatpush.msrb.mxu2 %v1075_v2  ;;  %440 = vmatpush.msra.mxu3 %v1093_v6  ;;  %s811_s2 = sshll.u32 %s1007_s30, 4  ;;  %s1008_s9 = smov [#allocation3]   ;;  %s812_s2 = int_to_ptr.vmem [resolvable:$true] %s811_s2 }
   0xc   :  { %205 = vmatpush.msrb.mxu1 %v1087_v5  ;;  %594 = vmatpush.msrb.mxu0 %v1075_v2  ;;  %s786_s1 = sshll.u32 %s1008_s9, 4  ;;  %s788_s4 = sshll.u32 %s1332_s8, 4  ;;  %s787_s1 = int_to_ptr.vmem [resolvable:$true] %s786_s1  ;;  %s789_s4 = int_to_ptr.hbm [resolvable:$true] %s788_s4 }
   0xd   :  { %361 = vmatpush.msrb.mxu2 %v1087_v5  ;;  %441 = vmatpush.msra.mxu3 %v1111_v11  ;;  %s1009_s10 = smov 128  }
   0xe   :  { %206 = vmatpush.msrb.mxu1 %v1093_v6  ;;  %595 = vmatpush.msrb.mxu0 %v1087_v5 }
   0xf   :  { %362 = vmatpush.msrb.mxu2 %v1093_v6 }
  0x10   :  { %207 = vmatpush.msrb.mxu1 %v1111_v11  ;;  %596 = vmatpush.msrb.mxu0 %v1093_v6 }
  0x11   :  { %832 = vmatmul.msk.f32.gmra.mxu0 %vm40_vm1, %v35_v13  ;;  %363 = vmatpush.msrb.mxu2 %v1111_v11 }
  0x12   :  { %282 = vmatpush.msra.mxu1 %v1075_v2  ;;  %597 = vmatpush.msrb.mxu0 %v1111_v11 }
  0x13   :  { %672 = vmatpush.msra.mxu2 %v1075_v2 }
  0x14   :  { %283 = vmatpush.msra.mxu1 %v1087_v5 }
  0x15   :  { %673 = vmatpush.msra.mxu2 %v1087_v5 }
  0x16   :  { %284 = vmatpush.msra.mxu1 %v1093_v6 }
  0x17   :  { %674 = vmatpush.msra.mxu2 %v1093_v6 }
  0x18   :  { %285 = vmatpush.msra.mxu1 %v1111_v11 }
  0x19   :  { %675 = vmatpush.msra.mxu2 %v1111_v11 }
  0x85   :  { %v98_v16 = vpop.f32.mrf.mxu1 }
  0x86   :  { %v64_v14 = vpop.f32.mrf.mxu0  ;;  %v1146_v17 = vadd.f32 %v860_v15, %v98_v16 }
  0x87   :  { %v187_v18 = vrot.slane %v64_v14, 1  ;;  %v264_v19 = vrot.slane %v64_v14, 2  ;;  %v342_v21 = vrot.slane %v64_v14, 3  ;;  %v420_v22 = vrot.slane %v64_v14, 4 }
  0x88   :  { %v498_v23 = vrot.slane %v64_v14, 5  ;;  %v576_v24 = vrot.slane %v64_v14, 6  ;;  %v654_v37 = vrot.slane %v64_v14, 7 }
  0x8d   :  { %v131_v26 = vpop.f32.mrf.mxu2 }
  0x8e   :  { %v67_v20 = vpop.f32.mrf.mxu0 }
  0x8f   :  { %v107_v25 = vrot.slane %v67_v20, 7  ;;  %v188_v27 = vsel %vm108_vm2, %v67_v20, %v187_v18  ;;  %v265_v28 = vrot.slane %v67_v20, 1  ;;  %v343_v29 = vrot.slane %v67_v20, 2 }
  0x90   :  { %v421_v30 = vrot.slane %v67_v20, 3  ;;  %v499_v31 = vrot.slane %v67_v20, 4  ;;  %v577_v32 = vrot.slane %v67_v20, 5  ;;  %v655_v33 = vrot.slane %v67_v20, 6 }
  0x91   :  { %v109_v34 = vsel %vm108_vm2, %v107_v25, %v64_v14  ;;  %v1151_v35 = vsel %vm108_vm2, %v265_v28, %v264_v19  ;;  %v1154_v36 = vsel %vm108_vm2, %v343_v29, %v342_v21 }
  0x92   :  { %v132_v38 = vadd.f32 %v131_v26, %v109_v34  ;;  %v1157_v39 = vsel %vm108_vm2, %v421_v30, %v420_v22  ;;  %v1160_v40 = vsel %vm108_vm2, %v499_v31, %v498_v23  ;;  %v1163_v41 = vsel %vm108_vm2, %v577_v32, %v576_v24 }
  0x93   :  { %v1166_v42 = vsel %vm108_vm2, %v655_v33, %v654_v37 }
  0x94   :  { %v134_v43 = vadd.f32 %v132_v38, %v1146_v17 }
  0x96   :  { %862 = vtanh.f32 %v134_v43  ;;  %v834_v45 = vmul.f32 -1.442695, %v134_v43 }
  0x98   :  { %864 = vpow2.f32 %v834_v45 }
  0x9c   :  { %v863_v44 = vpop.eup %862 }
  0x9d   :  { %157 = vrot.lane.b32.xlu0 %v863_v44, %s1003_s5 }
  0x9e   :  { %v865_v46 = vpop.eup %864 }
  0x9f   :  { %v138_v47 = vadd.f32 1.0, %v865_v46 }
  0xa1   :  { %866 = vrcp.f32 %v138_v47  ;;  %v150_v53 = vand.u32 2147483648, %v138_v47  ;;  %vm144_vm4 = vweird.f32 %v138_v47  ;;  %v148_v54 = vand.u32 2147483647, %v138_v47 }
  0xa3   :  { %v151_v56 = vor.u32 1.1754944e-38, %v150_v53  ;;  %vm149_vm6 = vcmp.eq.f32.partialorder %v148_v54, 8.507059e+37 }
  0xa7   :  { %v867_v48 = vpop.eup %866 }
  0xa8   :  { %v140_v49 = vmul.f32 %v867_v48, %v138_v47  ;;  %vm145_vm3 = vweird.f32 %v867_v48 }
  0xa9   :  { %vm146_vm5 = vmor %vm144_vm4, %vm145_vm3 }
  0xaa   :  { %v141_v50 = vsub.f32 1.0, %v140_v49 }
  0xac   :  { %v142_v51 = vmul.f32 %v867_v48, %v141_v50 }
  0xae   :  { %v143_v52 = vadd.f32 %v867_v48, %v142_v51 }
  0xb0   :  { %v147_v55 = vsel %vm146_vm5, %v867_v48, %v143_v52 }
  0xb1   :  { %v152_v58 = vsel %vm149_vm6, %v151_v56, %v147_v55 }
  0xb2   :  { %v155_v60 = vmul.f32 0.0, %v152_v58 }
 0x10f   :  { %v158_v57 = vpop.permute.xlu0 %157 }
 0x110   :  { %v160_v59 = vmul.f32 %v158_v57, %v152_v58 }
 0x112   :  { %162 = vrot.lane.b32.xlu0 %v160_v59, %s1004_s16 }
 0x184   :  { %v163_v61 = vpop.permute.xlu0 %162 }
 0x185   :  { %v165_v62 = vadd.f32 %v163_v61, %v155_v60 }
 0x187   :  { %868 = vtanh.f32 %v165_v62 }
 0x18d   :  { %v869_v63 = vpop.eup %868 }
 0x18e   :  { %168 = vrot.lane.b32.xlu1 %v869_v63, %s1003_s5 }
 0x200   :  { %v169_v0 = vpop.permute.xlu1 %168 }
 0x201   :  { %v1172_v1 = vmul.f32 %v169_v0, %v152_v58 }
 0x203   :  { %185 = vrot.lane.b32.xlu1 %v1172_v1, %s1004_s16 }
 0x275   :  { %v186_v3 = vpop.permute.xlu1 %185 }
 0x276   :  { %835 = vmatmul.msk.f32.vlgmr.msrb.gmra.mxu1 %vm40_vm1, %v186_v3 }
 0x277   :  { %516 = vmatpush.msrb.mxu1 %v1075_v2 }
 0x279   :  { %517 = vmatpush.msrb.mxu1 %v1087_v5 }
 0x27b   :  { %518 = vmatpush.msrb.mxu1 %v1093_v6 }
 0x27d   :  { %519 = vmatpush.msrb.mxu1 %v1111_v11 }
 0x2f3   :  { %v209_v4 = vpop.f32.mrf.mxu1 }
 0x2f4   :  { %v210_v7 = vadd.f32 %v209_v4, %v188_v27 }
 0x2f6   :  { %v212_v8 = vadd.f32 %v210_v7, %v1146_v17 }
 0x2f8   :  { %870 = vtanh.f32 %v212_v8  ;;  %v836_v10 = vmul.f32 -1.442695, %v212_v8 }
 0x2fa   :  { %872 = vpow2.f32 %v836_v10 }
 0x2fe   :  { %v871_v9 = vpop.eup %870 }
 0x2ff   :  { %235 = vrot.lane.b32.xlu2 %v871_v9, %s1003_s5 }
 0x300   :  { %v873_v12 = vpop.eup %872 }
 0x301   :  { %v216_v13 = vadd.f32 1.0, %v873_v12 }
 0x303   :  { %874 = vrcp.f32 %v216_v13  ;;  %v228_v11 = vand.u32 2147483648, %v216_v13  ;;  %vm222_vm8 = vweird.f32 %v216_v13  ;;  %v226_v16 = vand.u32 2147483647, %v216_v13 }
 0x305   :  { %v229_v19 = vor.u32 1.1754944e-38, %v228_v11  ;;  %vm227_vm10 = vcmp.eq.f32.partialorder %v226_v16, 8.507059e+37 }
 0x309   :  { %v875_v2 = vpop.eup %874 }
 0x30a   :  { %v218_v14 = vmul.f32 %v875_v2, %v216_v13  ;;  %vm223_vm7 = vweird.f32 %v875_v2 }
 0x30b   :  { %vm224_vm9 = vmor %vm222_vm8, %vm223_vm7 }
 0x30c   :  { %v219_v5 = vsub.f32 1.0, %v218_v14 }
 0x30e   :  { %v220_v15 = vmul.f32 %v875_v2, %v219_v5 }
 0x310   :  { %v221_v6 = vadd.f32 %v875_v2, %v220_v15 }
 0x312   :  { %v225_v18 = vsel %vm224_vm9, %v875_v2, %v221_v6 }
 0x313   :  { %v230_v21 = vsel %vm227_vm10, %v229_v19, %v225_v18 }
 0x314   :  { %v233_v23 = vmul.f32 %v230_v21, %v165_v62 }
 0x359   :  { %v236_v20 = vpop.permute.xlu2 %235 }
 0x35a   :  { %v238_v22 = vmul.f32 %v236_v20, %v230_v21 }
 0x35c   :  { %240 = vrot.lane.b32.xlu2 %v238_v22, %s1004_s16 }
 0x3b6   :  { %v241_v24 = vpop.permute.xlu2 %240 }
 0x3b7   :  { %v243_v25 = vadd.f32 %v241_v24, %v233_v23 }
 0x3b9   :  { %876 = vtanh.f32 %v243_v25 }
 0x3bf   :  { %v877_v26 = vpop.eup %876 }
 0x3c0   :  { %246 = vrot.lane.b32.xlu0 %v877_v26, %s1003_s5 }
 0x432   :  { %v247_v27 = vpop.permute.xlu0 %246 }
 0x433   :  { %v1185_v28 = vmul.f32 %v247_v27, %v230_v21 }
 0x435   :  { %262 = vrot.lane.b32.xlu1 %v1185_v28, %s1004_s16 }
 0x4a7   :  { %v263_v29 = vpop.permute.xlu1 %262 }
 0x4a8   :  { %837 = vmatmul.msk.f32.vlgmr.msra.gmra.mxu1 %vm40_vm1, %v263_v29 }
 0x525   :  { %v287_v30 = vpop.f32.mrf.mxu1 }
 0x526   :  { %v288_v31 = vadd.f32 %v287_v30, %v1151_v35 }
 0x528   :  { %v290_v32 = vadd.f32 %v288_v31, %v1146_v17 }
 0x52a   :  { %878 = vtanh.f32 %v290_v32  ;;  %v838_v34 = vmul.f32 -1.442695, %v290_v32 }
 0x52c   :  { %880 = vpow2.f32 %v838_v34 }
 0x530   :  { %v879_v33 = vpop.eup %878 }
 0x531   :  { %313 = vrot.lane.b32.xlu2 %v879_v33, %s1003_s5 }
 0x532   :  { %v881_v37 = vpop.eup %880 }
 0x533   :  { %v294_v38 = vadd.f32 1.0, %v881_v37 }
 0x535   :  { %882 = vrcp.f32 %v294_v38  ;;  %v306_v48 = vand.u32 2147483648, %v294_v38  ;;  %vm300_vm12 = vweird.f32 %v294_v38  ;;  %v304_v35 = vand.u32 2147483647, %v294_v38 }
 0x537   :  { %v307_v50 = vor.u32 1.1754944e-38, %v306_v48  ;;  %vm305_vm14 = vcmp.eq.f32.partialorder %v304_v35, 8.507059e+37 }
 0x53b   :  { %v883_v43 = vpop.eup %882 }
 0x53c   :  { %v296_v44 = vmul.f32 %v883_v43, %v294_v38  ;;  %vm301_vm11 = vweird.f32 %v883_v43 }
 0x53d   :  { %vm302_vm13 = vmor %vm300_vm12, %vm301_vm11 }
 0x53e   :  { %v297_v45 = vsub.f32 1.0, %v296_v44 }
 0x540   :  { %v298_v46 = vmul.f32 %v883_v43, %v297_v45 }
 0x542   :  { %v299_v47 = vadd.f32 %v883_v43, %v298_v46 }
 0x544   :  { %v303_v49 = vsel %vm302_vm13, %v883_v43, %v299_v47 }
 0x545   :  { %v308_v52 = vsel %vm305_vm14, %v307_v50, %v303_v49 }
 0x546   :  { %v311_v54 = vmul.f32 %v308_v52, %v243_v25 }
 0x58b   :  { %v314_v51 = vpop.permute.xlu2 %313 }
 0x58c   :  { %v316_v53 = vmul.f32 %v314_v51, %v308_v52 }
 0x58e   :  { %318 = vrot.lane.b32.xlu0 %v316_v53, %s1004_s16 }
 0x600   :  { %v319_v55 = vpop.permute.xlu0 %318 }
 0x601   :  { %v321_v56 = vadd.f32 %v319_v55, %v311_v54 }
 0x603   :  { %884 = vtanh.f32 %v321_v56 }
 0x609   :  { %v885_v57 = vpop.eup %884 }
 0x60a   :  { %324 = vrot.lane.b32.xlu1 %v885_v57, %s1003_s5 }
 0x67c   :  { %v325_v58 = vpop.permute.xlu1 %324 }
 0x67d   :  { %v1195_v59 = vmul.f32 %v325_v58, %v308_v52 }
 0x67f   :  { %340 = vrot.lane.b32.xlu2 %v1195_v59, %s1004_s16 }
 0x6d9   :  { %v341_v60 = vpop.permute.xlu2 %340 }
 0x6da   :  { %839 = vmatmul.msk.f32.vlgmr.msrb.gmra.mxu2 %vm40_vm1, %v341_v60 }
 0x75d   :  { %v365_v61 = vpop.f32.mrf.mxu2 }
 0x75e   :  { %v366_v62 = vadd.f32 %v365_v61, %v1154_v36 }
 0x760   :  { %v368_v63 = vadd.f32 %v366_v62, %v1146_v17 }
 0x762   :  { %886 = vtanh.f32 %v368_v63  ;;  %v840_v3 = vmul.f32 -1.442695, %v368_v63 }
 0x764   :  { %888 = vpow2.f32 %v840_v3 }
 0x768   :  { %v887_v0 = vpop.eup %886 }
 0x769   :  { %391 = vrot.lane.b32.xlu0 %v887_v0, %s1003_s5 }
 0x76a   :  { %v889_v4 = vpop.eup %888 }
 0x76b   :  { %v372_v7 = vadd.f32 1.0, %v889_v4 }
 0x76d   :  { %890 = vrcp.f32 %v372_v7  ;;  %v384_v2 = vand.u32 2147483648, %v372_v7  ;;  %vm378_vm0 = vweird.f32 %v372_v7  ;;  %v382_v36 = vand.u32 2147483647, %v372_v7 }
 0x76f   :  { %v385_v5 = vor.u32 1.1754944e-38, %v384_v2  ;;  %vm383_vm3 = vcmp.eq.f32.partialorder %v382_v36, 8.507059e+37 }
 0x773   :  { %v891_v8 = vpop.eup %890 }
 0x774   :  { %v374_v9 = vmul.f32 %v891_v8, %v372_v7  ;;  %vm379_vm15 = vweird.f32 %v891_v8 }
 0x775   :  { %vm380_vm2 = vmor %vm378_vm0, %vm379_vm15 }
 0x776   :  { %v375_v10 = vsub.f32 1.0, %v374_v9 }
 0x778   :  { %v376_v12 = vmul.f32 %v891_v8, %v375_v10 }
 0x77a   :  { %v377_v13 = vadd.f32 %v891_v8, %v376_v12 }
 0x77c   :  { %v381_v14 = vsel %vm380_vm2, %v891_v8, %v377_v13 }
 0x77d   :  { %v386_v6 = vsel %vm383_vm3, %v385_v5, %v381_v14 }
 0x77e   :  { %v389_v16 = vmul.f32 %v386_v6, %v321_v56 }
 0x7db   :  { %v392_v15 = vpop.permute.xlu0 %391 }
 0x7dc   :  { %v394_v11 = vmul.f32 %v392_v15, %v386_v6 }
 0x7de   :  { %396 = vrot.lane.b32.xlu1 %v394_v11, %s1004_s16 }
 0x850   :  { %v397_v18 = vpop.permute.xlu1 %396 }
 0x851   :  { %v399_v19 = vadd.f32 %v397_v18, %v389_v16 }
 0x853   :  { %892 = vtanh.f32 %v399_v19 }
 0x859   :  { %v893_v20 = vpop.eup %892 }
 0x85a   :  { %402 = vrot.lane.b32.xlu2 %v893_v20, %s1003_s5 }
 0x8b4   :  { %v403_v21 = vpop.permute.xlu2 %402 }
 0x8b5   :  { %v1205_v22 = vmul.f32 %v403_v21, %v386_v6 }
 0x8b7   :  { %418 = vrot.lane.b32.xlu0 %v1205_v22, %s1004_s16 }
 0x929   :  { %v419_v23 = vpop.permute.xlu0 %418 }
 0x92a   :  { %841 = vmatmul.msk.f32.vlgmr.msra.gmra.mxu3 %vm40_vm1, %v419_v23 }
 0x9ad   :  { %v443_v24 = vpop.f32.mrf.mxu3 }
 0x9ae   :  { %v444_v25 = vadd.f32 %v443_v24, %v1157_v39 }
 0x9b0   :  { %v446_v26 = vadd.f32 %v444_v25, %v1146_v17 }
 0x9b2   :  { %894 = vtanh.f32 %v446_v26  ;;  %v842_v29 = vmul.f32 -1.442695, %v446_v26 }
 0x9b4   :  { %896 = vpow2.f32 %v842_v29 }
 0x9b8   :  { %v895_v27 = vpop.eup %894 }
 0x9b9   :  { %469 = vrot.lane.b32.xlu1 %v895_v27, %s1003_s5 }
 0x9ba   :  { %v897_v30 = vpop.eup %896 }
 0x9bb   :  { %v450_v31 = vadd.f32 1.0, %v897_v30 }
 0x9bd   :  { %898 = vrcp.f32 %v450_v31  ;;  %v462_v43 = vand.u32 2147483648, %v450_v31  ;;  %vm456_vm5 = vweird.f32 %v450_v31  ;;  %v460_v39 = vand.u32 2147483647, %v450_v31 }
 0x9bf   :  { %v463_v45 = vor.u32 1.1754944e-38, %v462_v43  ;;  %vm461_vm7 = vcmp.eq.f32.partialorder %v460_v39, 8.507059e+37 }
 0x9c3   :  { %v899_v32 = vpop.eup %898 }
 0x9c4   :  { %v452_v33 = vmul.f32 %v899_v32, %v450_v31  ;;  %vm457_vm4 = vweird.f32 %v899_v32 }
 0x9c5   :  { %vm458_vm6 = vmor %vm456_vm5, %vm457_vm4  ;;  %vm182_vm5 = vcmask 253952  }
 0x9c6   :  { %v453_v34 = vsub.f32 1.0, %v452_v33 }
 0x9c8   :  { %v454_v37 = vmul.f32 %v899_v32, %v453_v34 }
 0x9ca   :  { %v455_v38 = vadd.f32 %v899_v32, %v454_v37 }
 0x9cc   :  { %v459_v44 = vsel %vm458_vm6, %v899_v32, %v455_v38  ;;  %vm733_vm6 = vcmask 254976  }
 0x9cd   :  { %v464_v47 = vsel %vm461_vm7, %v463_v45, %v459_v44 }
 0x9ce   :  { %v467_v35 = vmul.f32 %v464_v47, %v399_v19 }
 0xa2b   :  { %v470_v46 = vpop.permute.xlu1 %469 }
 0xa2c   :  { %v472_v48 = vmul.f32 %v470_v46, %v464_v47 }
 0xa2e   :  { %474 = vrot.lane.b32.xlu2 %v472_v48, %s1004_s16 }
 0xa88   :  { %v475_v49 = vpop.permute.xlu2 %474 }
 0xa89   :  { %v477_v50 = vadd.f32 %v475_v49, %v467_v35 }
 0xa8b   :  { %900 = vtanh.f32 %v477_v50 }
 0xa91   :  { %v901_v51 = vpop.eup %900 }
 0xa92   :  { %480 = vrot.lane.b32.xlu0 %v901_v51, %s1003_s5 }
 0xb04   :  { %v481_v52 = vpop.permute.xlu0 %480 }
 0xb05   :  { %v1215_v53 = vmul.f32 %v481_v52, %v464_v47 }
 0xb07   :  { %496 = vrot.lane.b32.xlu1 %v1215_v53, %s1004_s16 }
 0xb79   :  { %v497_v54 = vpop.permute.xlu1 %496 }
 0xb7a   :  { %843 = vmatmul.msk.f32.vlgmr.msrb.gmra.mxu1 %vm40_vm1, %v497_v54  ;;  %v174_v54 = vperm.slane %v1172_v1, 0 }
 0xbf7   :  { %v521_v55 = vpop.f32.mrf.mxu1 }
 0xbf8   :  { %v522_v56 = vadd.f32 %v521_v55, %v1160_v40  ;;  %v408_v55 = vperm.slane %v1205_v22, 0 }
 0xbfa   :  { %v524_v57 = vadd.f32 %v522_v56, %v1146_v17 }
 0xbfc   :  { %902 = vtanh.f32 %v524_v57  ;;  %v844_v60 = vmul.f32 -1.442695, %v524_v57 }
 0xbfe   :  { %904 = vpow2.f32 %v844_v60 }
 0xc02   :  { %v903_v58 = vpop.eup %902 }
 0xc03   :  { %547 = vrot.lane.b32.xlu2 %v903_v58, %s1003_s5 }
 0xc04   :  { %v905_v61 = vpop.eup %904 }
 0xc05   :  { %v528_v62 = vadd.f32 1.0, %v905_v61 }
 0xc07   :  { %906 = vrcp.f32 %v528_v62  ;;  %v540_v8 = vand.u32 2147483648, %v528_v62  ;;  %vm534_vm9 = vweird.f32 %v528_v62  ;;  %v538_v40 = vand.u32 2147483647, %v528_v62 }
 0xc09   :  { %v541_v10 = vor.u32 1.1754944e-38, %v540_v8  ;;  %vm539_vm11 = vcmp.eq.f32.partialorder %v538_v40, 8.507059e+37 }
 0xc0d   :  { %v907_v63 = vpop.eup %906 }
 0xc0e   :  { %v530_v0 = vmul.f32 %v907_v63, %v528_v62  ;;  %vm535_vm8 = vweird.f32 %v907_v63 }
 0xc0f   :  { %vm536_vm10 = vmor %vm534_vm9, %vm535_vm8 }
 0xc10   :  { %v531_v3 = vsub.f32 1.0, %v530_v0 }
 0xc12   :  { %v532_v4 = vmul.f32 %v907_v63, %v531_v3 }
 0xc14   :  { %v533_v7 = vadd.f32 %v907_v63, %v532_v4 }
 0xc16   :  { %v537_v9 = vsel %vm536_vm10, %v907_v63, %v533_v7 }
 0xc17   :  { %v542_v13 = vsel %vm539_vm11, %v541_v10, %v537_v9 }
 0xc18   :  { %v545_v36 = vmul.f32 %v542_v13, %v477_v50 }
 0xc5d   :  { %v548_v12 = vpop.permute.xlu2 %547 }
 0xc5e   :  { %v550_v2 = vmul.f32 %v548_v12, %v542_v13 }
 0xc60   :  { %552 = vrot.lane.b32.xlu0 %v550_v2, %s1004_s16 }
 0xcd2   :  { %v553_v14 = vpop.permute.xlu0 %552 }
 0xcd3   :  { %v555_v5 = vadd.f32 %v553_v14, %v545_v36  ;;  %v252_v14 = vperm.slane %v1185_v28, 0 }
 0xcd5   :  { %908 = vtanh.f32 %v555_v5 }
 0xcdb   :  { %v909_v15 = vpop.eup %908 }
 0xcdc   :  { %558 = vrot.lane.b32.xlu1 %v909_v15, %s1003_s5  ;;  %v486_v15 = vperm.slane %v1215_v53, 0 }
 0xd4e   :  { %v559_v6 = vpop.permute.xlu1 %558 }
 0xd4f   :  { %v1225_v11 = vmul.f32 %v559_v6, %v542_v13  ;;  %v329_v6 = vrot.slane %v1195_v59, 1 }
 0xd51   :  { %574 = vrot.lane.b32.xlu2 %v1225_v11, %s1004_s16 }
 0xdab   :  { %v575_v16 = vpop.permute.xlu2 %574 }
 0xdac   :  { %845 = vmatmul.msk.f32.vlgmr.msrb.gmra.mxu0 %vm40_vm1, %v575_v16 }
 0xe29   :  { %v599_v18 = vpop.f32.mrf.mxu0 }
 0xe2a   :  { %v600_v19 = vadd.f32 %v599_v18, %v1163_v41  ;;  %v331_v18 = vperm.slane %v329_v6, 0 }
 0xe2c   :  { %v602_v20 = vadd.f32 %v600_v19, %v1146_v17 }
 0xe2e   :  { %910 = vtanh.f32 %v602_v20  ;;  %v846_v23 = vmul.f32 -1.442695, %v602_v20 }
 0xe30   :  { %912 = vpow2.f32 %v846_v23 }
 0xe34   :  { %v911_v21 = vpop.eup %910 }
 0xe35   :  { %625 = vrot.lane.b32.xlu0 %v911_v21, %s1003_s5 }
 0xe36   :  { %v913_v24 = vpop.eup %912 }
 0xe37   :  { %v606_v25 = vadd.f32 1.0, %v913_v24 }
 0xe39   :  { %914 = vrcp.f32 %v606_v25  ;;  %v618_v32 = vand.u32 2147483648, %v606_v25  ;;  %vm612_vm13 = vweird.f32 %v606_v25  ;;  %v616_v41 = vand.u32 2147483647, %v606_v25 }
 0xe3b   :  { %v619_v34 = vor.u32 1.1754944e-38, %v618_v32  ;;  %vm617_vm15 = vcmp.eq.f32.partialorder %v616_v41, 8.507059e+37  ;;  %v407_v32 = vrot.slane %v1205_v22, 1  ;;  %v563_v22 = vrot.slane %v1225_v11, 1 }
 0xe3d   :  { %v409_v41 = vperm.slane %v407_v32, 0 }
 0xe3f   :  { %v915_v26 = vpop.eup %914 }
 0xe40   :  { %v608_v27 = vmul.f32 %v915_v26, %v606_v25  ;;  %vm613_vm12 = vweird.f32 %v915_v26 }
 0xe41   :  { %vm614_vm14 = vmor %vm612_vm13, %vm613_vm12 }
 0xe42   :  { %v609_v29 = vsub.f32 1.0, %v608_v27 }
 0xe44   :  { %v610_v30 = vmul.f32 %v915_v26, %v609_v29  ;;  %v564_v29 = vperm.slane %v1225_v11, 0 }
 0xe46   :  { %v611_v31 = vadd.f32 %v915_v26, %v610_v30  ;;  %v173_v30 = vrot.slane %v1172_v1, 1 }
 0xe48   :  { %v615_v33 = vsel %vm614_vm14, %v915_v26, %v611_v31  ;;  %v330_v26 = vperm.slane %v1195_v59, 0  ;;  %v175_v31 = vperm.slane %v173_v30, 0 }
 0xe49   :  { %v620_v38 = vsel %vm617_vm15, %v619_v34, %v615_v33 }
 0xe4a   :  { %v623_v39 = vmul.f32 %v620_v38, %v555_v5 }
 0xea7   :  { %v626_v37 = vpop.permute.xlu0 %625 }
 0xea8   :  { %v628_v43 = vmul.f32 %v626_v37, %v620_v38 }
 0xeaa   :  { %630 = vrot.lane.b32.xlu1 %v628_v43, %s1004_s16 }
 0xf1c   :  { %v631_v44 = vpop.permute.xlu1 %630 }
 0xf1d   :  { %v1234_v45 = vadd.f32 %v631_v44, %v623_v39  ;;  %v565_v44 = vperm.slane %v563_v22, 0 }
 0xf1f   :  { %916 = vtanh.f32 %v1234_v45 }
 0xf25   :  { %v917_v46 = vpop.eup %916 }
 0xf26   :  { %636 = vrot.lane.b32.xlu2 %v917_v46, %s1003_s5 }
 0xf80   :  { %v637_v47 = vpop.permute.xlu2 %636 }
 0xf81   :  { %v1238_v48 = vmul.f32 %v637_v47, %v620_v38 }
 0xf83   :  { %652 = vrot.lane.b32.xlu0 %v1238_v48, %s1004_s16  ;;  %v642_v56 = vperm.slane %v1238_v48, 0  ;;  %v641_v59 = vrot.slane %v1238_v48, 1 }
 0xf85   :  { %v643_v33 = vperm.slane %v641_v59, 0 }
 0xff5   :  { %v653_v35 = vpop.permute.xlu0 %652 }
 0xff6   :  { %847 = vmatmul.msk.f32.vlgmr.msra.gmra.mxu2 %vm40_vm1, %v653_v35  ;;  %v745_v35 = vld [vmem:[%s1330_s6 + $0x18] sm:$0xff] }
 0xff7   :  { %768 = vmatpush.msrb.mxu3 %v745_v35 }
0x1079   :  { %v677_v49 = vpop.f32.mrf.mxu2 }
0x107a   :  { %v678_v50 = vadd.f32 %v677_v49, %v1166_v42  ;;  %v251_v42 = vrot.slane %v1185_v28, 1  ;;  %v744_v49 = vld [vmem:[%s1330_s6 + $0x10] sm:$0xff] }
0x107b   :  { %769 = vmatpush.msrb.mxu3 %v744_v49 }
0x107c   :  { %v680_v51 = vadd.f32 %v678_v50, %v1146_v17  ;;  %v253_v57 = vperm.slane %v251_v42, 0  ;;  %v485_v17 = vrot.slane %v1215_v53, 1  ;;  %v743_v50 = vld [vmem:[%s1330_s6 + $0x8] sm:$0xff] }
0x107d   :  { %770 = vmatpush.msrb.mxu3 %v743_v50 }
0x107e   :  { %918 = vtanh.f32 %v680_v51  ;;  %v487_v58 = vperm.slane %v485_v17, 0  ;;  %v848_v60 = vmul.f32 -1.442695, %v680_v51  ;;  %v742_v51 = vld [vmem:[%s1330_s6] sm:$0xff]  ;;  %s1006_s6 = smov [#allocation5]  }
0x107f   :  { %771 = vmatpush.msrb.mxu3 %v742_v51  ;;  %s800_s26 = sshll.u32 %s1006_s6, 4  ;;  %v861_v17 = vld [vmem:[%s1331_s7] ss:$0 sm:$0xff]  ;;  %s801_s26 = int_to_ptr.vmem [resolvable:$true] %s800_s26 }
0x1080   :  { %920 = vpow2.f32 %v848_v60 }
0x1084   :  { %v919_v52 = vpop.eup %918 }
0x1085   :  { %703 = vrot.lane.b32.xlu1 %v919_v52, %s1003_s5 }
0x1086   :  { %v921_v61 = vpop.eup %920 }
0x1087   :  { %v684_v62 = vadd.f32 1.0, %v921_v61 }
0x1089   :  { %922 = vrcp.f32 %v684_v62  ;;  %v696_v8 = vand.u32 2147483648, %v684_v62  ;;  %vm690_vm2 = vweird.f32 %v684_v62  ;;  %v694_v40 = vand.u32 2147483647, %v684_v62 }
0x108b   :  { %v697_v10 = vor.u32 1.1754944e-38, %v696_v8  ;;  %vm695_vm4 = vcmp.eq.f32.partialorder %v694_v40, 8.507059e+37 }
0x108d   :  { %176 = vrot.lane.b32.xlu1 %v174_v54, %s1004_s16 }
0x108f   :  { %v923_v63 = vpop.eup %922 }
0x1090   :  { %v686_v0 = vmul.f32 %v923_v63, %v684_v62  ;;  %vm691_vm0 = vweird.f32 %v923_v63 }
0x1091   :  { %vm692_vm3 = vmor %vm690_vm2, %vm691_vm0 }
0x1092   :  { %v687_v3 = vsub.f32 1.0, %v686_v0 }
0x1094   :  { %v688_v4 = vmul.f32 %v923_v63, %v687_v3 }
0x1095   :  { %410 = vrot.lane.b32.xlu1 %v408_v55, %s1004_s16 }
0x1096   :  { %v689_v7 = vadd.f32 %v923_v63, %v688_v4 }
0x1098   :  { %v693_v9 = vsel %vm692_vm3, %v923_v63, %v689_v7 }
0x1099   :  { %v698_v13 = vsel %vm695_vm4, %v697_v10, %v693_v9 }
0x109a   :  { %v701_v20 = vmul.f32 %v698_v13, %v1234_v45 }
0x109d   :  { %644 = vrot.lane.b32.xlu1 %v642_v56, %s1004_s16 }
0x10a5   :  { %256 = vrot.lane.b32.xlu1 %v253_v57, %s1004_s16 }
0x10ad   :  { %490 = vrot.lane.b32.xlu1 %v487_v58, %s1004_s16 }
0x10f7   :  { %v704_v12 = vpop.permute.xlu1 %703 }
0x10f8   :  { %v706_v2 = vmul.f32 %v704_v12, %v698_v13 }
0x10fa   :  { %708 = vrot.lane.b32.xlu2 %v706_v2, %s1004_s16 }
0x10ff   :  { %v177_v36 = vpop.permute.xlu1 %176 }
0x1100   :  { %183 = vst.msk [vmem:[#allocation2] sm:$0x1] %vm182_vm5, %v177_v36 }
0x1102   :  { %254 = vrot.lane.b32.xlu2 %v252_v14, %s1004_s16 }
0x1107   :  { %v411_v5 = vpop.permute.xlu1 %410 }
0x1108   :  { %416 = vst.msk [vmem:[#allocation2 + $0x3] sm:$0x1] %vm182_vm5, %v411_v5 }
0x110a   :  { %488 = vrot.lane.b32.xlu2 %v486_v15, %s1004_s16 }
0x110f   :  { %v645_v16 = vpop.permute.xlu1 %644 }
0x1110   :  { %650 = vst.msk [vmem:[#allocation2 + $0x6] sm:$0x1] %vm182_vm5, %v645_v16 }
0x1112   :  { %334 = vrot.lane.b32.xlu2 %v331_v18, %s1004_s16 }
0x1117   :  { %v257_v19 = vpop.permute.xlu1 %256 }
0x1118   :  { %261 = vst.msk [vmem:[#allocation2 + $0x9] sm:$0x1] %vm182_vm5, %v257_v19 }
0x111f   :  { %v491_v28 = vpop.permute.xlu1 %490 }
0x1120   :  { %495 = vst.msk [vmem:[#allocation2 + $0xc] sm:$0x1] %vm182_vm5, %v491_v28 }
0x1154   :  { %v709_v21 = vpop.permute.xlu2 %708 }
0x1155   :  { %v711_v53 = vadd.f32 %v709_v21, %v701_v20 }
0x1157   :  { %924 = vtanh.f32 %v711_v53 }
0x115c   :  { %v255_v23 = vpop.permute.xlu2 %254 }
0x115d   :  { %v925_v24 = vpop.eup %924  ;;  %260 = vst.msk [vmem:[#allocation2 + $0x1] sm:$0x1] %vm182_vm5, %v255_v23 }
0x115e   :  { %714 = vrot.lane.b32.xlu0 %v925_v24, %s1003_s5  ;;  %s1010_s5 = smov 8  }
0x1164   :  { %v489_v25 = vpop.permute.xlu2 %488 }
0x1165   :  { %494 = vst.msk [vmem:[#allocation2 + $0x4] sm:$0x1] %vm182_vm5, %v489_v25 }
0x1166   :  { %332 = vrot.lane.b32.xlu0 %v330_v26, %s1004_s16 }
0x116c   :  { %v335_v27 = vpop.permute.xlu2 %334 }
0x116d   :  { %339 = vst.msk [vmem:[#allocation2 + $0xa] sm:$0x1] %vm182_vm5, %v335_v27 }
0x116e   :  { %566 = vrot.lane.b32.xlu0 %v564_v29, %s1004_s16 }
0x1176   :  { %178 = vrot.lane.b32.xlu0 %v175_v31, %s1004_s16 }
0x117e   :  { %412 = vrot.lane.b32.xlu0 %v409_v41, %s1004_s16 }
0x1186   :  { %646 = vrot.lane.b32.xlu0 %v643_v33, %s1004_s16 }
0x118e   :  { %736 = vrot.lane.b32.xlu0 %v711_v53, %s1005_s17 }
0x11d0   :  { %v715_v34 = vpop.permute.xlu0 %714 }
0x11d1   :  { %v717_v37 = vmul.f32 %v715_v34, %v698_v13 }
0x11d3   :  { %v720_v38 = vperm.slane %v717_v37, 0  ;;  %v719_v43 = vrot.slane %v717_v37, 1 }
0x11d5   :  { %722 = vrot.lane.b32.xlu2 %v720_v38, %s1004_s16  ;;  %v721_v1 = vperm.slane %v719_v43, 0 }
0x11d7   :  { %724 = vrot.lane.b32.xlu1 %v721_v1, %s1004_s16 }
0x11d8   :  { %v333_v39 = vpop.permute.xlu0 %332 }
0x11d9   :  { %338 = vst.msk [vmem:[#allocation2 + $0x2] sm:$0x1] %vm182_vm5, %v333_v39 }
0x11dd   :  { %568 = vrot.lane.b32.xlu2 %v565_v44, %s1004_s16 }
0x11e0   :  { %v567_v45 = vpop.permute.xlu0 %566 }
0x11e1   :  { %572 = vst.msk [vmem:[#allocation2 + $0x5] sm:$0x1] %vm182_vm5, %v567_v45 }
0x11e5   :  { %730 = vrot.lane.b32.xlu2 %v717_v37, %s1004_s16 }
0x11e8   :  { %v179_v46 = vpop.permute.xlu0 %178 }
0x11e9   :  { %184 = vst.msk [vmem:[#allocation2 + $0x8] sm:$0x1] %vm182_vm5, %v179_v46 }
0x11f0   :  { %v413_v47 = vpop.permute.xlu0 %412 }
0x11f1   :  { %417 = vst.msk [vmem:[#allocation2 + $0xb] sm:$0x1] %vm182_vm5, %v413_v47 }
0x11f8   :  { %v647_v48 = vpop.permute.xlu0 %646 }
0x11f9   :  { %651 = vst.msk [vmem:[#allocation2 + $0xe] sm:$0x1] %vm182_vm5, %v647_v48 }
0x1200   :  { %v737_v11 = vpop.permute.xlu0 %736 }
0x1201   :  { %739 = vst.msk [vmem:[#allocation7] sm:$0x3] %vm733_vm6, %v737_v11 }
0x122f   :  { %v723_v52 = vpop.permute.xlu2 %722 }
0x1230   :  { %728 = vst.msk [vmem:[#allocation2 + $0x7] sm:$0x1] %vm182_vm5, %v723_v52 }
0x1237   :  { %v569_v54 = vpop.permute.xlu2 %568  ;;  %v740_v55 = vld [vmem:[#allocation2] sm:$0xff] }
0x1238   :  { %573 = vst.msk [vmem:[#allocation2 + $0xd] sm:$0x1] %vm182_vm5, %v569_v54  ;;  %849 = vmatmul.msk.f32.vlgmr.msrb.gmra.mxu3 %vm40_vm1, %v740_v55 }
0x123f   :  { %v731_v56 = vpop.permute.xlu2 %730 }
0x1240   :  { %734 = vst.msk [vmem:[#allocation5] sm:$0x3] %vm733_vm6, %v731_v56 }
0x1241   :  { %805 = dma.vmem_to_hbm [thread:$0]  %s801_s26, 32, %s803_s29, [#allocation6]  }
0x1242   :  { %816 = dma.vmem_to_hbm [thread:$0]  %s812_s2, 32, %s814_s13, [#allocation6]  }
0x1249   :  { %v725_v42 = vpop.permute.xlu1 %724 }
0x124a   :  { %729 = vst.msk [vmem:[#allocation2 + $0xf] sm:$0x1] %vm182_vm5, %v725_v42 }
0x1251   :  { %v741_v57 = vld [vmem:[#allocation2 + $0x8] sm:$0xff] }
0x1252   :  { %850 = vmatmul.msk.f32.gmra.mxu3 %vm40_vm1, %v741_v57  ;;  %vm779_vm1 = vcmask 523264  }
0x12bb   :  { %v773_v58 = vpop.f32.mrf.mxu3 }
0x12bc   :  { %v774_v60 = vadd.f32 %v861_v17, %v773_v58 }
0x12be   :  { %780 = vst.msk [vmem:[#allocation3] sm:$0xff] %vm779_vm1, %v774_v60 }
0x12d5   :  { %v776_v61 = vpop.f32.mrf.mxu3 }
0x12d6   :  { %v777_v62 = vadd.f32 %v861_v17, %v776_v61 }
0x12d8   :  { %781 = vst.msk [vmem:[#allocation3 + $0x8] sm:$0xff] %vm779_vm1, %v777_v62 }
0x12d9   :  { %794 = dma.vmem_to_hbm [thread:$0]  %s787_s1, 256, %s789_s4, [#allocation4], %s1009_s10, %s1009_s10, %s1010_s5  }
0x12da   :  { %998 = dma.done.wait [#allocation4], 256  }
0x12db   :  { %999 = vsyncadd [#allocation4], 4294967040 }
0x12dc   :  { %1000 = dma.done.wait [#allocation6], 64  }
0x12dd   :  { %1001 = vsyncadd [#allocation6], 4294967232 }
0x12de   :  { %829 = vsyncpa [#allocation4], 1 }
0x12df   :  { %830 = vsyncpa [#allocation6], 1 }

// kernel: vae_forward.5
= control target key start
LH: loop header
LB: loop body
LE: loop exit
PB: predicated region body
PF: predicated region fallthrough
CT: control target
= control target key end

     0   :  { %vm39_vm0 = vcmask 261120   ;;  %s3202_s0 = inlined_call_operand.vmem [shape: f32[2,8,32], index: 0, kind: input, shape index: {}]   ;;  %s3203_s1 = inlined_call_operand.vmem [shape: f32[32,256], index: 1, kind: input, shape index: {}]   ;;  %s3204_s2 = inlined_call_operand.vmem [shape: f32[32,128], index: 2, kind: input, shape index: {}]   ;;  %s3205_s3 = inlined_call_operand.vmem [shape: f32[32,128], index: 3, kind: input, shape index: {}]   ;;  %s3206_s4 = inlined_call_operand.vmem [shape: f32[1,256], index: 4, kind: input, shape index: {}]   ;;  %s3207_s5 = inlined_call_operand.hbm [shape: f32[2,8,64], index: 5, kind: output, shape index: {0}]   ;;  %s3208_s6 = inlined_call_operand.vmem [shape: f32[2,64], index: 6, kind: output, shape index: {1}]  }
   0x1   :  { %v31_v0 = vld [vmem:[%s3203_s1 + $0x30] sm:$0xff]  ;;  %v32_v1 = vld [vmem:[%s3203_s1 + $0x38] sm:$0xff]  ;;  %v29_v4 = vld [vmem:[%s3203_s1 + $0x20] sm:$0xff] }
   0x2   :  { %v2503_v2 = vld [vmem:[%s3204_s2 + $0x18] sm:$0xff]  ;;  %58 = vmatpush.msra.mxu0 %v31_v0  ;;  %81 = vmatpush.msra.mxu1 %v32_v1  ;;  %v30_v5 = vld [vmem:[%s3203_s1 + $0x28] sm:$0xff]  ;;  %v2521_v6 = vld [vmem:[%s3204_s2 + $0x10] sm:$0xff] }
   0x3   :  { %v2508_v3 = vld [vmem:[%s3205_s3 + $0x18] sm:$0xff]  ;;  %115 = vmatpush.msra.mxu2 %v2503_v2  ;;  %v2526_v7 = vld [vmem:[%s3205_s3 + $0x10] sm:$0xff]  ;;  %v2537_v10 = vld [vmem:[%s3204_s2 + $0x8] sm:$0xff] }
   0x4   :  { %141 = vmatpush.msra.mxu3 %v2508_v3  ;;  %v27_v8 = vld [vmem:[%s3203_s1 + $0x10] sm:$0xff]  ;;  %59 = vmatpush.msra.mxu0 %v29_v4  ;;  %v28_v9 = vld [vmem:[%s3203_s1 + $0x18] sm:$0xff]  ;;  %v2542_v11 = vld [vmem:[%s3205_s3 + $0x8] sm:$0xff] }
   0x5   :  { %82 = vmatpush.msra.mxu1 %v30_v5  ;;  %116 = vmatpush.msra.mxu2 %v2521_v6  ;;  %v25_v12 = vld [vmem:[%s3203_s1] sm:$0xff]  ;;  %v26_v13 = vld [vmem:[%s3203_s1 + $0x8] sm:$0xff] }
   0x6   :  { %142 = vmatpush.msra.mxu3 %v2526_v7  ;;  %60 = vmatpush.msra.mxu0 %v27_v8  ;;  %v2555_v14 = vld [vmem:[%s3204_s2] sm:$0xff] }
   0x7   :  { %83 = vmatpush.msra.mxu1 %v28_v9  ;;  %v2560_v15 = vld [vmem:[%s3205_s3] sm:$0xff]  ;;  %117 = vmatpush.msra.mxu2 %v2537_v10 }
   0x8   :  { %143 = vmatpush.msra.mxu3 %v2542_v11  ;;  %v23_v16 = vld [vmem:[%s3202_s0] sm:$0xff] }
   0x9   :  { %12 = vsyncpa [#allocation3], 0  ;;  %61 = vmatpush.msra.mxu0 %v25_v12  ;;  %84 = vmatpush.msra.mxu1 %v26_v13  ;;  %v2453_v17 = vmov 0.0   ;;  %v24_v18 = vld [vmem:[%s3202_s0 + $0x8] sm:$0xff]  ;;  %v33_v21 = vld [vmem:[%s3206_s4] sm:$0x3] }
   0xa   :  { %118 = vmatpush.msra.mxu2 %v2555_v14  ;;  %144 = vmatpush.msra.mxu3 %v2560_v15  ;;  %v36_v22 = vperm.slane %v33_v21, 1  ;;  %v35_v24 = vperm.slane %v33_v21, 0  ;;  %s2454_s4 = smov 64   ;;  %s2455_s9 = smov 32  }
   0xb   :  { %2107 = vmatmul.msk.f32.vlgmr.msra.gmra.mxu0 %vm39_vm0, %v23_v16  ;;  %2109 = vmatmul.msk.f32.vlgmr.msra.gmra.mxu1 %vm39_vm0, %v23_v16  ;;  %s2091_s28 = sshll.u32 %s3207_s5, 4  ;;  %s2457_s1 = smov 128   ;;  %s2092_s28 = int_to_ptr.hbm [resolvable:$true] %s2091_s28 }
   0xc   :  { %119 = vmatmul.f32.vlgmr.msra.gmra.mxu2 %v2453_v17  ;;  %145 = vmatmul.f32.vlgmr.msra.gmra.mxu3 %v2453_v17  ;;  %s2458_s7 = smov 8  }
   0xd   :  { %345 = vmatpush.msrb.mxu2 %v2503_v2  ;;  %378 = vmatpush.msrb.mxu3 %v2508_v3 }
   0xe   :  { %593 = vmatpush.msrb.mxu0 %v2503_v2  ;;  %627 = vmatpush.msrb.mxu1 %v2508_v3 }
   0xf   :  { %346 = vmatpush.msrb.mxu2 %v2521_v6  ;;  %379 = vmatpush.msrb.mxu3 %v2526_v7 }
  0x10   :  { %594 = vmatpush.msrb.mxu0 %v2521_v6  ;;  %628 = vmatpush.msrb.mxu1 %v2526_v7 }
  0x11   :  { %347 = vmatpush.msrb.mxu2 %v2537_v10  ;;  %380 = vmatpush.msrb.mxu3 %v2542_v11 }
  0x12   :  { %595 = vmatpush.msrb.mxu0 %v2537_v10  ;;  %629 = vmatpush.msrb.mxu1 %v2542_v11 }
  0x13   :  { %2108 = vmatmul.msk.f32.gmra.mxu0 %vm39_vm0, %v24_v18  ;;  %2110 = vmatmul.msk.f32.gmra.mxu1 %vm39_vm0, %v24_v18 }
  0x14   :  { %348 = vmatpush.msrb.mxu2 %v2555_v14  ;;  %381 = vmatpush.msrb.mxu3 %v2560_v15 }
  0x15   :  { %596 = vmatpush.msrb.mxu0 %v2555_v14  ;;  %630 = vmatpush.msrb.mxu1 %v2560_v15 }
  0x16   :  { %843 = vmatpush.msra.mxu2 %v2503_v2  ;;  %877 = vmatpush.msra.mxu3 %v2508_v3 }
  0x17   :  { %1093 = vmatpush.msra.mxu0 %v2503_v2  ;;  %1127 = vmatpush.msra.mxu1 %v2508_v3 }
  0x18   :  { %844 = vmatpush.msra.mxu2 %v2521_v6  ;;  %878 = vmatpush.msra.mxu3 %v2526_v7 }
  0x19   :  { %1094 = vmatpush.msra.mxu0 %v2521_v6  ;;  %1128 = vmatpush.msra.mxu1 %v2526_v7 }
  0x1a   :  { %845 = vmatpush.msra.mxu2 %v2537_v10  ;;  %879 = vmatpush.msra.mxu3 %v2542_v11 }
  0x1b   :  { %1095 = vmatpush.msra.mxu0 %v2537_v10  ;;  %1129 = vmatpush.msra.mxu1 %v2542_v11 }
  0x1c   :  { %846 = vmatpush.msra.mxu2 %v2555_v14  ;;  %880 = vmatpush.msra.mxu3 %v2560_v15 }
  0x1d   :  { %1096 = vmatpush.msra.mxu0 %v2555_v14  ;;  %1130 = vmatpush.msra.mxu1 %v2560_v15 }
  0x88   :  { %v63_v19 = vpop.f32.mrf.mxu0  ;;  %v86_v20 = vpop.f32.mrf.mxu1 }
  0x89   :  { %v2611_v23 = vadd.f32 %v86_v20, %v36_v22  ;;  %v2619_v36 = vadd.f32 %v63_v19, %v35_v24 }
  0x8f   :  { %v120_v25 = vpop.f32.mrf.mxu2  ;;  %v146_v26 = vpop.f32.mrf.mxu3 }
  0x90   :  { %v124_v27 = vrot.slane %v120_v25, 1  ;;  %v150_v28 = vrot.slane %v146_v26, 1  ;;  %v66_v29 = vpop.f32.mrf.mxu0  ;;  %v89_v32 = vpop.f32.mrf.mxu1  ;;  %v151_v35 = vrot.slane %v146_v26, 2  ;;  %v127_v40 = vadd.f32 %v120_v25, %v2619_v36 }
  0x91   :  { %v2613_v30 = vadd.f32 %v66_v29, %v35_v24  ;;  %v2617_v34 = vadd.f32 %v89_v32, %v36_v22 }
  0x92   :  { %v154_v31 = vadd.f32 %v150_v28, %v2611_v23  ;;  %v2111_v47 = vmul.f32 -1.442695, %v127_v40 }
  0x93   :  { %v128_v33 = vadd.f32 %v124_v27, %v2613_v30  ;;  %v155_v37 = vadd.f32 %v151_v35, %v2617_v34 }
  0x94   :  { %2163 = vtanh.f32 %v154_v31  ;;  %v2113_v43 = vmul.f32 -1.442695, %v154_v31 }
  0x95   :  { %2165 = vtanh.f32 %v128_v33  ;;  %v2112_v44 = vmul.f32 -1.442695, %v128_v33  ;;  %v2114_v45 = vmul.f32 -1.442695, %v155_v37 }
  0x96   :  { %2167 = vtanh.f32 %v155_v37 }
  0x97   :  { %2169 = vtanh.f32 %v127_v40 }
  0x98   :  { %2171 = vpow2.f32 %v2113_v43 }
  0x99   :  { %2173 = vpow2.f32 %v2112_v44 }
  0x9a   :  { %v2164_v38 = vpop.eup %2163  ;;  %2175 = vpow2.f32 %v2114_v45 }
  0x9b   :  { %274 = vrot.lane.b32.xlu1 %v2164_v38, %s2454_s4  ;;  %v2166_v39 = vpop.eup %2165  ;;  %2177 = vpow2.f32 %v2111_v47 }
  0x9c   :  { %202 = vrot.lane.b32.xlu0 %v2166_v39, %s2454_s4  ;;  %v2168_v41 = vpop.eup %2167 }
  0x9d   :  { %v2170_v42 = vpop.eup %2169 }
  0x9e   :  { %v2172_v46 = vpop.eup %2171 }
  0x9f   :  { %v2174_v48 = vpop.eup %2173  ;;  %v236_v49 = vadd.f32 1.0, %v2172_v46 }
  0xa0   :  { %v163_v50 = vadd.f32 1.0, %v2174_v48  ;;  %v2176_v51 = vpop.eup %2175 }
  0xa1   :  { %2179 = vrcp.f32 %v236_v49  ;;  %v2178_v52 = vpop.eup %2177  ;;  %v237_v53 = vadd.f32 1.0, %v2176_v51  ;;  %vm243_vm2 = vweird.f32 %v236_v49  ;;  %v247_v9 = vand.u32 2147483647, %v236_v49 }
  0xa2   :  { %2181 = vrcp.f32 %v163_v50  ;;  %v2627_v55 = vadd.f32 1.0, %v2178_v52  ;;  %v249_v12 = vand.u32 2147483648, %v236_v49  ;;  %vm184_vm3 = vweird.f32 %v163_v50 }
  0xa3   :  { %276 = vrot.lane.b32.xlu1 %v2168_v41, %s2454_s4  ;;  %2183 = vrcp.f32 %v237_v53  ;;  %v190_v17 = vand.u32 2147483648, %v163_v50  ;;  %v188_v19 = vand.u32 2147483647, %v163_v50  ;;  %vm248_vm7 = vcmp.eq.f32.partialorder %v247_v9, 8.507059e+37 }
  0xa4   :  { %200 = vrot.lane.b32.xlu0 %v2170_v42, %s2454_s4  ;;  %2185 = vrcp.f32 %v2627_v55  ;;  %v250_v21 = vor.u32 1.1754944e-38, %v249_v12  ;;  %vm258_vm10 = vweird.f32 %v237_v53  ;;  %v264_v33 = vand.u32 2147483648, %v237_v53 }
  0xa5   :  { %v191_v27 = vor.u32 1.1754944e-38, %v190_v17  ;;  %vm189_vm8 = vcmp.eq.f32.partialorder %v188_v19, 8.507059e+37  ;;  %v262_v37 = vand.u32 2147483647, %v237_v53  ;;  %v175_v39 = vand.u32 2147483648, %v2627_v55 }
  0xa6   :  { %vm169_vm13 = vweird.f32 %v2627_v55  ;;  %v173_v41 = vand.u32 2147483647, %v2627_v55  ;;  %v265_v42 = vor.u32 1.1754944e-38, %v264_v33 }
  0xa7   :  { %v2180_v54 = vpop.eup %2179  ;;  %vm263_vm15 = vcmp.eq.f32.partialorder %v262_v37, 8.507059e+37  ;;  %v176_v46 = vor.u32 1.1754944e-38, %v175_v39 }
  0xa8   :  { %v2182_v56 = vpop.eup %2181  ;;  %v239_v57 = vmul.f32 %v2180_v54, %v236_v49  ;;  %vm244_vm1 = vweird.f32 %v2180_v54 }
  0xa9   :  { %v180_v58 = vmul.f32 %v2182_v56, %v163_v50  ;;  %v2184_v60 = vpop.eup %2183  ;;  %vm185_vm4 = vweird.f32 %v2182_v56  ;;  %vm245_vm5 = vmor %vm243_vm2, %vm244_vm1  ;;  %vm174_vm1 = vcmp.eq.f32.partialorder %v173_v41, 8.507059e+37  ;;  %vm327_vm2 = vcmask 1041409  }
  0xaa   :  { %v240_v59 = vsub.f32 1.0, %v239_v57  ;;  %v2186_v62 = vpop.eup %2185  ;;  %v254_v0 = vmul.f32 %v2184_v60, %v237_v53  ;;  %vm186_vm6 = vmor %vm184_vm3, %vm185_vm4  ;;  %vm259_vm9 = vweird.f32 %v2184_v60 }
  0xab   :  { %v181_v61 = vsub.f32 1.0, %v180_v58  ;;  %v165_v4 = vmul.f32 %v2186_v62, %v2627_v55  ;;  %vm170_vm11 = vweird.f32 %v2186_v62  ;;  %vm260_vm12 = vmor %vm258_vm10, %vm259_vm9 }
  0xac   :  { %v241_v63 = vmul.f32 %v2180_v54, %v240_v59  ;;  %v255_v8 = vsub.f32 1.0, %v254_v0  ;;  %vm171_vm14 = vmor %vm169_vm13, %vm170_vm11 }
  0xad   :  { %v182_v1 = vmul.f32 %v2182_v56, %v181_v61  ;;  %v166_v16 = vsub.f32 1.0, %v165_v4 }
  0xae   :  { %v242_v5 = vadd.f32 %v2180_v54, %v241_v63  ;;  %v256_v20 = vmul.f32 %v2184_v60, %v255_v8 }
  0xaf   :  { %v183_v13 = vadd.f32 %v2182_v56, %v182_v1  ;;  %v167_v24 = vmul.f32 %v2186_v62, %v166_v16 }
  0xb0   :  { %v246_v18 = vsel %vm245_vm5, %v2180_v54, %v242_v5  ;;  %v257_v29 = vadd.f32 %v2184_v60, %v256_v20 }
  0xb1   :  { %v187_v22 = vsel %vm186_vm6, %v2182_v56, %v183_v13  ;;  %v2631_v26 = vsel %vm248_vm7, %v250_v21, %v246_v18  ;;  %v168_v38 = vadd.f32 %v2186_v62, %v167_v24 }
  0xb2   :  { %v192_v32 = vsel %vm189_vm8, %v191_v27, %v187_v22  ;;  %v261_v40 = vsel %vm260_vm12, %v2184_v60, %v257_v29  ;;  %v270_v59 = vmul.f32 0.0, %v2631_v26 }
  0xb3   :  { %v172_v43 = vsel %vm171_vm14, %v2186_v62, %v168_v38  ;;  %v266_v44 = vsel %vm263_vm15, %v265_v42, %v261_v40  ;;  %v197_v51 = vmul.f32 0.0, %v192_v32 }
  0xb4   :  { %v177_v49 = vsel %vm174_vm1, %v176_v46, %v172_v43  ;;  %v271_v62 = vmul.f32 0.0, %v266_v44 }
  0xb5   :  { %v196_v54 = vmul.f32 0.0, %v177_v49 }
 0x10d   :  { %v275_v25 = vpop.permute.xlu1 %274 }
 0x10e   :  { %v280_v28 = vmul.f32 %v275_v25, %v2631_v26  ;;  %v203_v31 = vpop.permute.xlu0 %202 }
 0x10f   :  { %v207_v35 = vmul.f32 %v203_v31, %v192_v32 }
 0x110   :  { %284 = vrot.lane.b32.xlu0 %v280_v28, %s2455_s9 }
 0x111   :  { %212 = vrot.lane.b32.xlu2 %v207_v35, %s2455_s9 }
 0x115   :  { %v277_v45 = vpop.permute.xlu1 %276 }
 0x116   :  { %v281_v47 = vmul.f32 %v277_v45, %v266_v44  ;;  %v201_v48 = vpop.permute.xlu0 %200 }
 0x117   :  { %v206_v50 = vmul.f32 %v201_v48, %v177_v49 }
 0x118   :  { %286 = vrot.lane.b32.xlu1 %v281_v47, %s2455_s9 }
 0x119   :  { %210 = vrot.lane.b32.xlu2 %v206_v50, %s2455_s9 }
 0x16b   :  { %v213_v52 = vpop.permute.xlu2 %212 }
 0x16c   :  { %v2641_v53 = vadd.f32 %v213_v52, %v197_v51 }
 0x16e   :  { %2187 = vtanh.f32 %v2641_v53 }
 0x173   :  { %v211_v55 = vpop.permute.xlu2 %210 }
 0x174   :  { %v2188_v56 = vpop.eup %2187  ;;  %v2644_v57 = vadd.f32 %v211_v55, %v196_v54 }
 0x175   :  { %224 = vrot.lane.b32.xlu2 %v2188_v56, %s2454_s4 }
 0x176   :  { %2189 = vtanh.f32 %v2644_v57 }
 0x17c   :  { %v2190_v58 = vpop.eup %2189 }
 0x17d   :  { %222 = vrot.lane.b32.xlu0 %v2190_v58, %s2454_s4 }
 0x182   :  { %v285_v60 = vpop.permute.xlu0 %284 }
 0x183   :  { %v2650_v61 = vadd.f32 %v285_v60, %v270_v59 }
 0x185   :  { %2191 = vtanh.f32 %v2650_v61 }
 0x18a   :  { %v287_v63 = vpop.permute.xlu1 %286 }
 0x18b   :  { %v2192_v0 = vpop.eup %2191  ;;  %v2653_v1 = vadd.f32 %v287_v63, %v271_v62 }
 0x18c   :  { %296 = vrot.lane.b32.xlu1 %v2192_v0, %s2454_s4 }
 0x18d   :  { %2193 = vtanh.f32 %v2653_v1 }
 0x193   :  { %v2194_v4 = vpop.eup %2193 }
 0x194   :  { %298 = vrot.lane.b32.xlu2 %v2194_v4, %s2454_s4 }
 0x1cf   :  { %v225_v5 = vpop.permute.xlu2 %224 }
 0x1d0   :  { %v2658_v8 = vmul.f32 %v225_v5, %v192_v32 }
 0x1d2   :  { %v326_v12 = vrot.slane %v2658_v8, 7 }
 0x1ee   :  { %v299_v17 = vpop.permute.xlu2 %298 }
 0x1ef   :  { %v223_v9 = vpop.permute.xlu0 %222  ;;  %v2666_v18 = vmul.f32 %v299_v17, %v266_v44 }
 0x1f0   :  { %v2661_v13 = vmul.f32 %v223_v9, %v177_v49 }
 0x1f1   :  { %v360_v21 = vrot.slane %v2666_v18, 6 }
 0x1f2   :  { %v328_v16 = vsel %vm327_vm2, %v326_v12, %v2661_v13 }
 0x1f3   :  { %329 = vrot.lane.b32.xlu0 %v328_v16, %s2455_s9 }
 0x1fe   :  { %v297_v19 = vpop.permute.xlu1 %296 }
 0x1ff   :  { %v2669_v20 = vmul.f32 %v297_v19, %v2631_v26 }
 0x201   :  { %v359_v22 = vrot.slane %v2669_v20, 7 }
 0x203   :  { %v361_v24 = vsel %vm327_vm2, %v360_v21, %v359_v22 }
 0x204   :  { %362 = vrot.lane.b32.xlu1 %v361_v24, %s2455_s9 }
 0x265   :  { %v330_v25 = vpop.permute.xlu0 %329 }
 0x266   :  { %2115 = vmatmul.msk.f32.vlgmr.msrb.gmra.mxu2 %vm39_vm0, %v330_v25 }
 0x267   :  { %1343 = vmatpush.msrb.mxu2 %v2503_v2 }
 0x269   :  { %1344 = vmatpush.msrb.mxu2 %v2521_v6 }
 0x26b   :  { %1345 = vmatpush.msrb.mxu2 %v2537_v10 }
 0x26d   :  { %1346 = vmatpush.msrb.mxu2 %v2555_v14 }
 0x276   :  { %v363_v26 = vpop.permute.xlu1 %362 }
 0x277   :  { %2116 = vmatmul.msk.f32.vlgmr.msrb.gmra.mxu3 %vm39_vm0, %v363_v26 }
 0x278   :  { %1377 = vmatpush.msrb.mxu3 %v2508_v3 }
 0x27a   :  { %1378 = vmatpush.msrb.mxu3 %v2526_v7 }
 0x27c   :  { %1379 = vmatpush.msrb.mxu3 %v2542_v11 }
 0x27e   :  { %1380 = vmatpush.msrb.mxu3 %v2560_v15 }
 0x2e9   :  { %v350_v27 = vpop.f32.mrf.mxu2 }
 0x2ea   :  { %v354_v28 = vrot.slane %v350_v27, 7  ;;  %v358_v29 = vadd.f32 %v350_v27, %v2613_v30 }
 0x2ec   :  { %v357_v31 = vadd.f32 %v354_v28, %v2619_v36  ;;  %2195 = vtanh.f32 %v358_v29  ;;  %v2118_v47 = vmul.f32 -1.442695, %v358_v29 }
 0x2ee   :  { %2197 = vtanh.f32 %v357_v31  ;;  %v2117_v43 = vmul.f32 -1.442695, %v357_v31 }
 0x2f2   :  { %v2196_v32 = vpop.eup %2195 }
 0x2f3   :  { %445 = vrot.lane.b32.xlu0 %v2196_v32, %s2454_s4 }
 0x2f4   :  { %v2198_v33 = vpop.eup %2197 }
 0x2f5   :  { %443 = vrot.lane.b32.xlu2 %v2198_v33, %s2454_s4 }
 0x2fa   :  { %v383_v35 = vpop.f32.mrf.mxu3 }
 0x2fb   :  { %v387_v37 = vrot.slane %v383_v35, 2  ;;  %v388_v38 = vrot.slane %v383_v35, 3 }
 0x2fd   :  { %v391_v39 = vadd.f32 %v387_v37, %v2611_v23  ;;  %v392_v40 = vadd.f32 %v388_v38, %v2617_v34 }
 0x2ff   :  { %2199 = vtanh.f32 %v391_v39  ;;  %v2120_v46 = vmul.f32 -1.442695, %v392_v40  ;;  %v2119_v60 = vmul.f32 -1.442695, %v391_v39 }
 0x300   :  { %2201 = vtanh.f32 %v392_v40 }
 0x301   :  { %2203 = vpow2.f32 %v2117_v43 }
 0x305   :  { %v2200_v41 = vpop.eup %2199 }
 0x306   :  { %v2202_v42 = vpop.eup %2201  ;;  %523 = vrot.lane.b32.xlu1 %v2200_v41, %s2454_s4 }
 0x307   :  { %525 = vrot.lane.b32.xlu2 %v2202_v42, %s2454_s4  ;;  %v2204_v44 = vpop.eup %2203 }
 0x308   :  { %v399_v45 = vadd.f32 1.0, %v2204_v44 }
 0x30a   :  { %2205 = vrcp.f32 %v399_v45  ;;  %v412_v62 = vand.u32 2147483648, %v399_v45  ;;  %vm406_vm4 = vweird.f32 %v399_v45  ;;  %v410_v63 = vand.u32 2147483647, %v399_v45 }
 0x30b   :  { %2207 = vpow2.f32 %v2120_v46 }
 0x30c   :  { %2209 = vpow2.f32 %v2118_v47  ;;  %v413_v5 = vor.u32 1.1754944e-38, %v412_v62  ;;  %vm411_vm6 = vcmp.eq.f32.partialorder %v410_v63, 8.507059e+37  ;;  %v435_v62 = vrot.slane %v2644_v57, 7 }
 0x310   :  { %v2206_v48 = vpop.eup %2205 }
 0x311   :  { %v2208_v49 = vpop.eup %2207  ;;  %v402_v50 = vmul.f32 %v2206_v48, %v399_v45  ;;  %vm407_vm3 = vweird.f32 %v2206_v48 }
 0x312   :  { %v480_v51 = vadd.f32 1.0, %v2208_v49  ;;  %v2210_v54 = vpop.eup %2209  ;;  %vm408_vm5 = vmor %vm406_vm4, %vm407_vm3 }
 0x313   :  { %v403_v52 = vsub.f32 1.0, %v402_v50  ;;  %v400_v55 = vadd.f32 1.0, %v2210_v54 }
 0x314   :  { %2211 = vrcp.f32 %v480_v51  ;;  %v507_v28 = vand.u32 2147483648, %v480_v51  ;;  %vm501_vm8 = vweird.f32 %v480_v51  ;;  %v505_v31 = vand.u32 2147483647, %v480_v51 }
 0x315   :  { %v404_v56 = vmul.f32 %v2206_v48, %v403_v52  ;;  %2213 = vrcp.f32 %v400_v55  ;;  %v427_v37 = vand.u32 2147483648, %v400_v55  ;;  %vm421_vm12 = vweird.f32 %v400_v55 }
 0x316   :  { %2215 = vpow2.f32 %v2119_v60  ;;  %v508_v33 = vor.u32 1.1754944e-38, %v507_v28  ;;  %vm506_vm11 = vcmp.eq.f32.partialorder %v505_v31, 8.507059e+37  ;;  %v425_v40 = vand.u32 2147483647, %v400_v55 }
 0x317   :  { %v405_v58 = vadd.f32 %v2206_v48, %v404_v56  ;;  %v428_v44 = vor.u32 1.1754944e-38, %v427_v37 }
 0x318   :  { %vm426_vm14 = vcmp.eq.f32.partialorder %v425_v40, 8.507059e+37 }
 0x319   :  { %v409_v0 = vsel %vm408_vm5, %v2206_v48, %v405_v58 }
 0x31a   :  { %v2212_v59 = vpop.eup %2211  ;;  %v2693_v16 = vsel %vm411_vm6, %v413_v5, %v409_v0 }
 0x31b   :  { %v497_v4 = vmul.f32 %v2212_v59, %v480_v51  ;;  %v2214_v9 = vpop.eup %2213  ;;  %vm502_vm7 = vweird.f32 %v2212_v59  ;;  %v439_v63 = vmul.f32 %v435_v62, %v2693_v16 }
 0x31c   :  { %v417_v21 = vmul.f32 %v2214_v9, %v400_v55  ;;  %v2216_v22 = vpop.eup %2215  ;;  %vm503_vm9 = vmor %vm501_vm8, %vm502_vm7  ;;  %vm422_vm10 = vweird.f32 %v2214_v9 }
 0x31d   :  { %v498_v19 = vsub.f32 1.0, %v497_v4  ;;  %v479_v26 = vadd.f32 1.0, %v2216_v22  ;;  %vm423_vm13 = vmor %vm421_vm12, %vm422_vm10 }
 0x31e   :  { %v418_v25 = vsub.f32 1.0, %v417_v21 }
 0x31f   :  { %v499_v24 = vmul.f32 %v2212_v59, %v498_v19  ;;  %2217 = vrcp.f32 %v479_v26  ;;  %v492_v52 = vand.u32 2147483648, %v479_v26  ;;  %vm486_vm1 = vweird.f32 %v479_v26 }
 0x320   :  { %v419_v29 = vmul.f32 %v2214_v9, %v418_v25  ;;  %v490_v54 = vand.u32 2147483647, %v479_v26  ;;  %v436_v25 = vrot.slane %v2641_v53, 7 }
 0x321   :  { %v500_v27 = vadd.f32 %v2212_v59, %v499_v24  ;;  %v493_v56 = vor.u32 1.1754944e-38, %v492_v52 }
 0x322   :  { %v420_v35 = vadd.f32 %v2214_v9, %v419_v29  ;;  %vm491_vm4 = vcmp.eq.f32.partialorder %v490_v54, 8.507059e+37 }
 0x323   :  { %v504_v32 = vsel %vm503_vm9, %v2212_v59, %v500_v27 }
 0x324   :  { %v2697_v38 = vsel %vm506_vm11, %v508_v33, %v504_v32  ;;  %v424_v43 = vsel %vm423_vm13, %v2214_v9, %v420_v35  ;;  %v515_v9 = vrot.slane %v2650_v61, 1 }
 0x325   :  { %v2218_v41 = vpop.eup %2217  ;;  %v429_v47 = vsel %vm426_vm14, %v428_v44, %v424_v43 }
 0x326   :  { %v482_v45 = vmul.f32 %v2218_v41, %v479_v26  ;;  %vm487_vm15 = vweird.f32 %v2218_v41  ;;  %v440_v26 = vmul.f32 %v436_v25, %v429_v47 }
 0x327   :  { %vm488_vm3 = vmor %vm486_vm1, %vm487_vm15 }
 0x328   :  { %v483_v49 = vsub.f32 1.0, %v482_v45 }
 0x32a   :  { %v484_v50 = vmul.f32 %v2218_v41, %v483_v49 }
 0x32c   :  { %v485_v51 = vadd.f32 %v2218_v41, %v484_v50 }
 0x32e   :  { %v489_v55 = vsel %vm488_vm3, %v2218_v41, %v485_v51 }
 0x32f   :  { %v494_v59 = vsel %vm491_vm4, %v493_v56, %v489_v55 }
 0x34f   :  { %v444_v12 = vpop.permute.xlu2 %443 }
 0x350   :  { %v449_v17 = vmul.f32 %v444_v12, %v2693_v16  ;;  %v516_v12 = vrot.slane %v2653_v1, 1 }
 0x352   :  { %453 = vrot.lane.b32.xlu0 %v449_v17, %s2455_s9  ;;  %v519_v17 = vmul.f32 %v515_v9, %v494_v59  ;;  %v520_v21 = vmul.f32 %v516_v12, %v2697_v38 }
 0x361   :  { %v526_v39 = vpop.permute.xlu2 %525 }
 0x362   :  { %v530_v42 = vmul.f32 %v526_v39, %v2697_v38 }
 0x364   :  { %535 = vrot.lane.b32.xlu0 %v530_v42, %s2455_s9 }
 0x365   :  { %v446_v46 = vpop.permute.xlu0 %445 }
 0x366   :  { %v450_v48 = vmul.f32 %v446_v46, %v429_v47 }
 0x368   :  { %455 = vrot.lane.b32.xlu1 %v450_v48, %s2455_s9 }
 0x378   :  { %v524_v58 = vpop.permute.xlu1 %523 }
 0x379   :  { %v529_v60 = vmul.f32 %v524_v58, %v494_v59 }
 0x37b   :  { %533 = vrot.lane.b32.xlu2 %v529_v60, %s2455_s9 }
 0x3c4   :  { %v454_v0 = vpop.permute.xlu0 %453 }
 0x3c5   :  { %v2705_v4 = vadd.f32 %v454_v0, %v439_v63 }
 0x3c7   :  { %2219 = vtanh.f32 %v2705_v4 }
 0x3cd   :  { %v2220_v5 = vpop.eup %2219 }
 0x3ce   :  { %465 = vrot.lane.b32.xlu1 %v2220_v5, %s2454_s4 }
 0x3d5   :  { %v534_v19 = vpop.permute.xlu2 %533 }
 0x3d6   :  { %v2712_v22 = vadd.f32 %v534_v19, %v519_v17  ;;  %v536_v57 = vpop.permute.xlu0 %535 }
 0x3d7   :  { %v2714_v24 = vadd.f32 %v536_v57, %v520_v21 }
 0x3d8   :  { %2221 = vtanh.f32 %v2712_v22 }
 0x3d9   :  { %2223 = vtanh.f32 %v2714_v24 }
 0x3da   :  { %v456_v27 = vpop.permute.xlu1 %455 }
 0x3db   :  { %v2719_v61 = vadd.f32 %v456_v27, %v440_v26 }
 0x3dd   :  { %2225 = vtanh.f32 %v2719_v61 }
 0x3de   :  { %v2222_v1 = vpop.eup %2221 }
 0x3df   :  { %v2224_v28 = vpop.eup %2223  ;;  %545 = vrot.lane.b32.xlu0 %v2222_v1, %s2454_s4 }
 0x3e0   :  { %547 = vrot.lane.b32.xlu1 %v2224_v28, %s2454_s4 }
 0x3e3   :  { %v2226_v29 = vpop.eup %2225 }
 0x3e4   :  { %467 = vrot.lane.b32.xlu2 %v2226_v29, %s2454_s4 }
 0x43e   :  { %v468_v53 = vpop.permute.xlu2 %467 }
 0x43f   :  { %v2728_v33 = vmul.f32 %v468_v53, %v429_v47 }
 0x440   :  { %v466_v31 = vpop.permute.xlu1 %465 }
 0x441   :  { %v2726_v32 = vmul.f32 %v466_v31, %v2693_v16 }
 0x443   :  { %v575_v35 = vrot.slane %v2726_v32, 1 }
 0x445   :  { %v576_v37 = vsel %vm327_vm2, %v2728_v33, %v575_v35 }
 0x446   :  { %577 = vrot.lane.b32.xlu2 %v576_v37, %s2455_s9 }
 0x451   :  { %v546_v39 = vpop.permute.xlu0 %545 }
 0x452   :  { %v2734_v40 = vmul.f32 %v546_v39, %v494_v59  ;;  %v548_v41 = vpop.permute.xlu1 %547 }
 0x453   :  { %v2737_v42 = vmul.f32 %v548_v41, %v2697_v38 }
 0x454   :  { %v608_v43 = vrot.slane %v2734_v40, 6 }
 0x455   :  { %v609_v16 = vrot.slane %v2737_v42, 5 }
 0x457   :  { %v610_v44 = vsel %vm327_vm2, %v609_v16, %v608_v43 }
 0x458   :  { %611 = vrot.lane.b32.xlu0 %v610_v44, %s2455_s9 }
 0x4a0   :  { %v578_v45 = vpop.permute.xlu2 %577 }
 0x4a1   :  { %2121 = vmatmul.msk.f32.vlgmr.msrb.gmra.mxu0 %vm39_vm0, %v578_v45 }
 0x4a2   :  { %1593 = vmatpush.msrb.mxu0 %v2503_v2 }
 0x4a4   :  { %1594 = vmatpush.msrb.mxu0 %v2521_v6 }
 0x4a6   :  { %1595 = vmatpush.msrb.mxu0 %v2537_v10 }
 0x4a8   :  { %1596 = vmatpush.msrb.mxu0 %v2555_v14 }
 0x4ca   :  { %v612_v38 = vpop.permute.xlu0 %611 }
 0x4cb   :  { %2122 = vmatmul.msk.f32.vlgmr.msrb.gmra.mxu1 %vm39_vm0, %v612_v38 }
 0x4cc   :  { %1627 = vmatpush.msrb.mxu1 %v2508_v3 }
 0x4ce   :  { %1628 = vmatpush.msrb.mxu1 %v2526_v7 }
 0x4d0   :  { %1629 = vmatpush.msrb.mxu1 %v2542_v11 }
 0x4d2   :  { %1630 = vmatpush.msrb.mxu1 %v2560_v15 }
 0x51e   :  { %v598_v46 = vpop.f32.mrf.mxu0 }
 0x51f   :  { %v602_v47 = vrot.slane %v598_v46, 6  ;;  %v603_v2 = vrot.slane %v598_v46, 7 }
 0x521   :  { %v606_v6 = vadd.f32 %v602_v47, %v2619_v36  ;;  %v607_v10 = vadd.f32 %v603_v2, %v2613_v30 }
 0x523   :  { %2227 = vtanh.f32 %v606_v6  ;;  %v2124_v52 = vmul.f32 -1.442695, %v607_v10  ;;  %v2123_v58 = vmul.f32 -1.442695, %v606_v6 }
 0x524   :  { %2229 = vtanh.f32 %v607_v10 }
 0x529   :  { %v2228_v14 = vpop.eup %2227 }
 0x52a   :  { %v2230_v48 = vpop.eup %2229  ;;  %692 = vrot.lane.b32.xlu1 %v2228_v14, %s2454_s4 }
 0x52b   :  { %694 = vrot.lane.b32.xlu2 %v2230_v48, %s2454_s4 }
 0x548   :  { %v632_v3 = vpop.f32.mrf.mxu1 }
 0x549   :  { %v636_v7 = vrot.slane %v632_v3, 3  ;;  %v637_v11 = vrot.slane %v632_v3, 4 }
 0x54b   :  { %v640_v15 = vadd.f32 %v636_v7, %v2611_v23  ;;  %v641_v49 = vadd.f32 %v637_v11, %v2617_v34 }
 0x54d   :  { %2231 = vtanh.f32 %v640_v15  ;;  %v2125_v31 = vmul.f32 -1.442695, %v640_v15  ;;  %v2126_v37 = vmul.f32 -1.442695, %v641_v49 }
 0x54e   :  { %2233 = vtanh.f32 %v641_v49 }
 0x54f   :  { %2235 = vpow2.f32 %v2124_v52 }
 0x553   :  { %v2232_v50 = vpop.eup %2231 }
 0x554   :  { %v2234_v51 = vpop.eup %2233  ;;  %772 = vrot.lane.b32.xlu0 %v2232_v50, %s2454_s4 }
 0x555   :  { %774 = vrot.lane.b32.xlu1 %v2234_v51, %s2454_s4  ;;  %v2236_v54 = vpop.eup %2235 }
 0x556   :  { %v649_v55 = vadd.f32 1.0, %v2236_v54 }
 0x558   :  { %2237 = vrcp.f32 %v649_v55  ;;  %v676_v9 = vand.u32 2147483648, %v649_v55  ;;  %vm670_vm6 = vweird.f32 %v649_v55  ;;  %v674_v12 = vand.u32 2147483647, %v649_v55 }
 0x559   :  { %2239 = vpow2.f32 %v2123_v58 }
 0x55a   :  { %v677_v19 = vor.u32 1.1754944e-38, %v676_v9  ;;  %vm675_vm8 = vcmp.eq.f32.partialorder %v674_v12, 8.507059e+37  ;;  %v684_v12 = vrot.slane %v2705_v4, 7  ;;  %v765_v4 = vrot.slane %v2714_v24, 1 }
 0x55e   :  { %v2238_v56 = vpop.eup %2237 }
 0x55f   :  { %v666_v59 = vmul.f32 %v2238_v56, %v649_v55  ;;  %v2240_v62 = vpop.eup %2239  ;;  %vm671_vm5 = vweird.f32 %v2238_v56 }
 0x560   :  { %v648_v0 = vadd.f32 1.0, %v2240_v62  ;;  %vm672_vm7 = vmor %vm670_vm6, %vm671_vm5 }
 0x561   :  { %v667_v60 = vsub.f32 1.0, %v666_v59 }
 0x562   :  { %2241 = vrcp.f32 %v648_v0  ;;  %v661_v53 = vand.u32 2147483648, %v648_v0  ;;  %vm655_vm10 = vweird.f32 %v648_v0  ;;  %v659_v35 = vand.u32 2147483647, %v648_v0 }
 0x563   :  { %v668_v63 = vmul.f32 %v2238_v56, %v667_v60  ;;  %2243 = vpow2.f32 %v2125_v31 }
 0x564   :  { %v662_v41 = vor.u32 1.1754944e-38, %v661_v53  ;;  %vm660_vm12 = vcmp.eq.f32.partialorder %v659_v35, 8.507059e+37  ;;  %2245 = vpow2.f32 %v2126_v37  ;;  %v764_v37 = vrot.slane %v2712_v22, 1 }
 0x565   :  { %v669_v5 = vadd.f32 %v2238_v56, %v668_v63 }
 0x567   :  { %v673_v17 = vsel %vm672_vm7, %v2238_v56, %v669_v5 }
 0x568   :  { %v2761_v57 = vsel %vm675_vm8, %v677_v19, %v673_v17  ;;  %v2242_v25 = vpop.eup %2241  ;;  %v685_v17 = vrot.slane %v2719_v61, 7 }
 0x569   :  { %v651_v27 = vmul.f32 %v2242_v25, %v648_v0  ;;  %vm656_vm9 = vweird.f32 %v2242_v25  ;;  %v2244_v45 = vpop.eup %2243 }
 0x56a   :  { %vm657_vm11 = vmor %vm655_vm10, %vm656_vm9  ;;  %v2246_v38 = vpop.eup %2245  ;;  %v728_v46 = vadd.f32 1.0, %v2244_v45 }
 0x56b   :  { %v652_v1 = vsub.f32 1.0, %v651_v27  ;;  %v729_v47 = vadd.f32 1.0, %v2246_v38 }
 0x56c   :  { %2247 = vrcp.f32 %v728_v46  ;;  %v741_v49 = vand.u32 2147483648, %v728_v46  ;;  %vm735_vm15 = vweird.f32 %v728_v46  ;;  %v739_v51 = vand.u32 2147483647, %v728_v46 }
 0x56d   :  { %v653_v28 = vmul.f32 %v2242_v25, %v652_v1  ;;  %2249 = vrcp.f32 %v729_v47  ;;  %v756_v52 = vand.u32 2147483648, %v729_v47  ;;  %vm750_vm3 = vweird.f32 %v729_v47 }
 0x56e   :  { %v754_v54 = vand.u32 2147483647, %v729_v47  ;;  %v742_v56 = vor.u32 1.1754944e-38, %v741_v49  ;;  %vm740_vm5 = vcmp.eq.f32.partialorder %v739_v51, 8.507059e+37  ;;  %v2421_v49 = vld [vmem:[%s3204_s2 + $0x8] sm:$0xff] }
 0x56f   :  { %v654_v29 = vadd.f32 %v2242_v25, %v653_v28  ;;  %v757_v59 = vor.u32 1.1754944e-38, %v756_v52  ;;  %v2423_v52 = vld [vmem:[%s3205_s3 + $0x18] sm:$0xff] }
 0x570   :  { %vm755_vm6 = vcmp.eq.f32.partialorder %v754_v54, 8.507059e+37  ;;  %v2424_v54 = vld [vmem:[%s3205_s3 + $0x10] sm:$0xff] }
 0x571   :  { %v658_v39 = vsel %vm657_vm11, %v2242_v25, %v654_v29 }
 0x572   :  { %v2765_v43 = vsel %vm660_vm12, %v662_v41, %v658_v39  ;;  %v2248_v2 = vpop.eup %2247 }
 0x573   :  { %v2250_v6 = vpop.eup %2249  ;;  %v731_v10 = vmul.f32 %v2248_v2, %v728_v46  ;;  %vm736_vm13 = vweird.f32 %v2248_v2  ;;  %v688_v19 = vmul.f32 %v684_v12, %v2765_v43 }
 0x574   :  { %v746_v14 = vmul.f32 %v2250_v6, %v729_v47  ;;  %vm751_vm14 = vweird.f32 %v2250_v6  ;;  %vm737_vm1 = vmor %vm735_vm15, %vm736_vm13 }
 0x575   :  { %v732_v48 = vsub.f32 1.0, %v731_v10  ;;  %vm752_vm4 = vmor %vm750_vm3, %vm751_vm14 }
 0x576   :  { %v747_v3 = vsub.f32 1.0, %v746_v14 }
 0x577   :  { %v733_v7 = vmul.f32 %v2248_v2, %v732_v48 }
 0x578   :  { %v748_v11 = vmul.f32 %v2250_v6, %v747_v3 }
 0x579   :  { %v734_v15 = vadd.f32 %v2248_v2, %v733_v7 }
 0x57a   :  { %v749_v50 = vadd.f32 %v2250_v6, %v748_v11  ;;  %v2419_v11 = vld [vmem:[%s3204_s2 + $0x18] sm:$0xff] }
 0x57b   :  { %v738_v55 = vsel %vm737_vm1, %v2248_v2, %v734_v15  ;;  %v2420_v15 = vld [vmem:[%s3204_s2 + $0x10] sm:$0xff] }
 0x57c   :  { %v753_v58 = vsel %vm752_vm4, %v2250_v6, %v749_v50  ;;  %v743_v62 = vsel %vm740_vm5, %v742_v56, %v738_v55  ;;  %v2422_v50 = vld [vmem:[%s3204_s2] sm:$0xff]  ;;  %v2425_v55 = vld [vmem:[%s3205_s3 + $0x8] sm:$0xff] }
 0x57d   :  { %v758_v0 = vsel %vm755_vm6, %v757_v59, %v753_v58  ;;  %v768_v39 = vmul.f32 %v764_v37, %v743_v62  ;;  %v2426_v56 = vld [vmem:[%s3205_s3] sm:$0xff]  ;;  %s2456_s3 = smov [#allocation2]  }
 0x57e   :  { %v769_v61 = vmul.f32 %v765_v4, %v758_v0  ;;  %s2089_s25 = sshll.u32 %s2456_s3, 4  ;;  %s2090_s25 = int_to_ptr.vmem [resolvable:$true] %s2089_s25 }
 0x585   :  { %v695_v21 = vpop.permute.xlu2 %694 }
 0x586   :  { %v699_v26 = vmul.f32 %v695_v21, %v2761_v57  ;;  %v689_v21 = vmul.f32 %v685_v17, %v2761_v57 }
 0x588   :  { %704 = vrot.lane.b32.xlu0 %v699_v26, %s2455_s9 }
 0x59c   :  { %v693_v16 = vpop.permute.xlu1 %692 }
 0x59d   :  { %v698_v44 = vmul.f32 %v693_v16, %v2765_v43 }
 0x59f   :  { %702 = vrot.lane.b32.xlu2 %v698_v44, %s2455_s9 }
 0x5c6   :  { %v773_v60 = vpop.permute.xlu0 %772 }
 0x5c7   :  { %v778_v63 = vmul.f32 %v773_v60, %v743_v62  ;;  %v775_v5 = vpop.permute.xlu1 %774 }
 0x5c8   :  { %v779_v9 = vmul.f32 %v775_v5, %v758_v0 }
 0x5c9   :  { %782 = vrot.lane.b32.xlu1 %v778_v63, %s2455_s9 }
 0x5ca   :  { %784 = vrot.lane.b32.xlu2 %v779_v9, %s2455_s9 }
 0x5f9   :  { %v703_v25 = vpop.permute.xlu2 %702 }
 0x5fa   :  { %v705_v26 = vpop.permute.xlu0 %704  ;;  %v2775_v27 = vadd.f32 %v703_v25, %v688_v19 }
 0x5fb   :  { %v2777_v1 = vadd.f32 %v705_v26, %v689_v21 }
 0x5fc   :  { %2251 = vtanh.f32 %v2775_v27 }
 0x5fd   :  { %2253 = vtanh.f32 %v2777_v1 }
 0x602   :  { %v2252_v28 = vpop.eup %2251 }
 0x603   :  { %v2254_v29 = vpop.eup %2253  ;;  %714 = vrot.lane.b32.xlu0 %v2252_v28, %s2454_s4 }
 0x604   :  { %716 = vrot.lane.b32.xlu1 %v2254_v29, %s2454_s4 }
 0x624   :  { %v785_v53 = vpop.permute.xlu2 %784 }
 0x625   :  { %v2784_v31 = vadd.f32 %v785_v53, %v769_v61 }
 0x627   :  { %2255 = vtanh.f32 %v2784_v31 }
 0x62d   :  { %v2256_v35 = vpop.eup %2255 }
 0x62e   :  { %796 = vrot.lane.b32.xlu0 %v2256_v35, %s2454_s4 }
 0x63b   :  { %v783_v41 = vpop.permute.xlu1 %782 }
 0x63c   :  { %v2789_v16 = vadd.f32 %v783_v41, %v768_v39 }
 0x63e   :  { %2257 = vtanh.f32 %v2789_v16 }
 0x644   :  { %v2258_v44 = vpop.eup %2257 }
 0x645   :  { %794 = vrot.lane.b32.xlu2 %v2258_v44, %s2454_s4 }
 0x675   :  { %v715_v24 = vpop.permute.xlu0 %714 }
 0x676   :  { %v2794_v45 = vmul.f32 %v715_v24, %v2765_v43  ;;  %v717_v38 = vpop.permute.xlu1 %716 }
 0x677   :  { %v2797_v46 = vmul.f32 %v717_v38, %v2761_v57 }
 0x678   :  { %v824_v47 = vrot.slane %v2794_v45, 2 }
 0x679   :  { %v825_v22 = vrot.slane %v2797_v46, 1 }
 0x67b   :  { %v826_v2 = vsel %vm327_vm2, %v825_v22, %v824_v47 }
 0x67c   :  { %827 = vrot.lane.b32.xlu1 %v826_v2, %s2455_s9 }
 0x69f   :  { %v795_v6 = vpop.permute.xlu2 %794 }
 0x6a0   :  { %v797_v10 = vpop.permute.xlu0 %796  ;;  %v2803_v14 = vmul.f32 %v795_v6, %v743_v62 }
 0x6a1   :  { %v2805_v48 = vmul.f32 %v797_v10, %v758_v0 }
 0x6a2   :  { %v858_v43 = vrot.slane %v2803_v14, 5 }
 0x6a3   :  { %v859_v3 = vrot.slane %v2805_v48, 4 }
 0x6a5   :  { %v860_v57 = vsel %vm327_vm2, %v859_v3, %v858_v43 }
 0x6a6   :  { %861 = vrot.lane.b32.xlu2 %v860_v57, %s2455_s9 }
 0x6ee   :  { %v828_v7 = vpop.permute.xlu1 %827 }
 0x6ef   :  { %2127 = vmatmul.msk.f32.vlgmr.msra.gmra.mxu2 %vm39_vm0, %v828_v7 }
 0x6f0   :  { %1842 = vmatpush.msra.mxu2 %v2419_v11 }
 0x6f2   :  { %1843 = vmatpush.msra.mxu2 %v2420_v15 }
 0x6f4   :  { %1844 = vmatpush.msra.mxu2 %v2421_v49 }
 0x6f6   :  { %1845 = vmatpush.msra.mxu2 %v2422_v50 }
 0x700   :  { %v862_v51 = vpop.permute.xlu2 %861 }
 0x701   :  { %2128 = vmatmul.msk.f32.vlgmr.msra.gmra.mxu3 %vm39_vm0, %v862_v51 }
 0x702   :  { %1875 = vmatpush.msra.mxu3 %v2423_v52 }
 0x704   :  { %1876 = vmatpush.msra.mxu3 %v2424_v54 }
 0x706   :  { %1877 = vmatpush.msra.mxu3 %v2425_v55 }
 0x708   :  { %1878 = vmatpush.msra.mxu3 %v2426_v56 }
 0x772   :  { %v848_v58 = vpop.f32.mrf.mxu2 }
 0x773   :  { %v852_v59 = vrot.slane %v848_v58, 5  ;;  %v853_v60 = vrot.slane %v848_v58, 6 }
 0x775   :  { %v856_v62 = vadd.f32 %v852_v59, %v2619_v36  ;;  %v857_v63 = vadd.f32 %v853_v60, %v2613_v30 }
 0x777   :  { %2259 = vtanh.f32 %v856_v62  ;;  %v2129_v29 = vmul.f32 -1.442695, %v856_v62  ;;  %v2130_v4 = vmul.f32 -1.442695, %v857_v63 }
 0x778   :  { %2261 = vtanh.f32 %v857_v63 }
 0x77d   :  { %v2260_v0 = vpop.eup %2259 }
 0x77e   :  { %v2262_v5 = vpop.eup %2261  ;;  %942 = vrot.lane.b32.xlu0 %v2260_v0, %s2454_s4 }
 0x77f   :  { %944 = vrot.lane.b32.xlu1 %v2262_v5, %s2454_s4 }
 0x784   :  { %v882_v9 = vpop.f32.mrf.mxu3 }
 0x785   :  { %v886_v12 = vrot.slane %v882_v9, 4  ;;  %v887_v17 = vrot.slane %v882_v9, 5 }
 0x787   :  { %v890_v19 = vadd.f32 %v886_v12, %v2611_v23  ;;  %v891_v21 = vadd.f32 %v887_v17, %v2617_v34 }
 0x789   :  { %2263 = vtanh.f32 %v890_v19  ;;  %v2131_v28 = vmul.f32 -1.442695, %v890_v19  ;;  %v2132_v24 = vmul.f32 -1.442695, %v891_v21 }
 0x78a   :  { %2265 = vtanh.f32 %v891_v21 }
 0x78b   :  { %2267 = vpow2.f32 %v2131_v28 }
 0x78c   :  { %2269 = vpow2.f32 %v2129_v29 }
 0x78d   :  { %2271 = vpow2.f32 %v2130_v4 }
 0x78f   :  { %v2264_v25 = vpop.eup %2263 }
 0x790   :  { %v2266_v26 = vpop.eup %2265  ;;  %1022 = vrot.lane.b32.xlu2 %v2264_v25, %s2454_s4 }
 0x791   :  { %1024 = vrot.lane.b32.xlu0 %v2266_v26, %s2454_s4  ;;  %v2268_v61 = vpop.eup %2267 }
 0x792   :  { %v978_v53 = vadd.f32 1.0, %v2268_v61  ;;  %v2270_v35 = vpop.eup %2269 }
 0x793   :  { %v2272_v37 = vpop.eup %2271  ;;  %v898_v39 = vadd.f32 1.0, %v2270_v35 }
 0x794   :  { %2273 = vrcp.f32 %v978_v53  ;;  %v899_v41 = vadd.f32 1.0, %v2272_v37  ;;  %v991_v15 = vand.u32 2147483648, %v978_v53  ;;  %vm985_vm8 = vweird.f32 %v978_v53 }
 0x795   :  { %2275 = vrcp.f32 %v898_v39  ;;  %v989_v50 = vand.u32 2147483647, %v978_v53  ;;  %v911_v63 = vand.u32 2147483648, %v898_v39  ;;  %vm905_vm13 = vweird.f32 %v898_v39 }
 0x796   :  { %2277 = vrcp.f32 %v899_v41  ;;  %v992_v54 = vor.u32 1.1754944e-38, %v991_v15  ;;  %v926_v5 = vand.u32 2147483648, %v899_v41  ;;  %v909_v9 = vand.u32 2147483647, %v898_v39 }
 0x797   :  { %2279 = vpow2.f32 %v2132_v24  ;;  %vm990_vm10 = vcmp.eq.f32.partialorder %v989_v50, 8.507059e+37  ;;  %vm920_vm14 = vweird.f32 %v899_v41  ;;  %v924_v12 = vand.u32 2147483647, %v899_v41 }
 0x798   :  { %v912_v21 = vor.u32 1.1754944e-38, %v911_v63  ;;  %v927_v26 = vor.u32 1.1754944e-38, %v926_v5  ;;  %vm910_vm3 = vcmp.eq.f32.partialorder %v909_v9, 8.507059e+37 }
 0x799   :  { %vm925_vm4 = vcmp.eq.f32.partialorder %v924_v12, 8.507059e+37 }
 0x79a   :  { %v2274_v44 = vpop.eup %2273 }
 0x79b   :  { %v981_v38 = vmul.f32 %v2274_v44, %v978_v53  ;;  %v2276_v22 = vpop.eup %2275  ;;  %vm986_vm7 = vweird.f32 %v2274_v44 }
 0x79c   :  { %v2278_v2 = vpop.eup %2277  ;;  %v901_v10 = vmul.f32 %v2276_v22, %v898_v39  ;;  %vm987_vm9 = vmor %vm985_vm8, %vm986_vm7  ;;  %vm906_vm11 = vweird.f32 %v2276_v22 }
 0x79d   :  { %v982_v47 = vsub.f32 1.0, %v981_v38  ;;  %v2280_v43 = vpop.eup %2279  ;;  %v916_v3 = vmul.f32 %v2278_v2, %v899_v41  ;;  %vm921_vm12 = vweird.f32 %v2278_v2  ;;  %vm907_vm15 = vmor %vm905_vm13, %vm906_vm11 }
 0x79e   :  { %v979_v57 = vadd.f32 1.0, %v2280_v43  ;;  %v902_v11 = vsub.f32 1.0, %v901_v10  ;;  %vm922_vm1 = vmor %vm920_vm14, %vm921_vm12  ;;  %v935_v10 = vrot.slane %v2777_v1, 7  ;;  %v934_v1 = vrot.slane %v2775_v27, 7 }
 0x79f   :  { %v983_v6 = vmul.f32 %v2274_v44, %v982_v47  ;;  %v917_v49 = vsub.f32 1.0, %v916_v3 }
 0x7a0   :  { %2281 = vrcp.f32 %v979_v57  ;;  %v903_v52 = vmul.f32 %v2276_v22, %v902_v11  ;;  %vm1000_vm6 = vweird.f32 %v979_v57  ;;  %v1004_v24 = vand.u32 2147483647, %v979_v57 }
 0x7a1   :  { %v984_v7 = vadd.f32 %v2274_v44, %v983_v6  ;;  %v918_v55 = vmul.f32 %v2278_v2, %v917_v49 }
 0x7a2   :  { %v904_v60 = vadd.f32 %v2276_v22, %v903_v52  ;;  %vm1005_vm8 = vcmp.eq.f32.partialorder %v1004_v24, 8.507059e+37 }
 0x7a3   :  { %v988_v51 = vsel %vm987_vm9, %v2274_v44, %v984_v7  ;;  %v919_v62 = vadd.f32 %v2278_v2, %v918_v55  ;;  %v1006_v44 = vand.u32 2147483648, %v979_v57 }
 0x7a4   :  { %v2845_v58 = vsel %vm990_vm10, %v992_v54, %v988_v51  ;;  %v908_v17 = vsel %vm907_vm15, %v2276_v22, %v904_v60 }
 0x7a5   :  { %v923_v19 = vsel %vm922_vm1, %v2278_v2, %v919_v62  ;;  %v913_v29 = vsel %vm910_vm3, %v912_v21, %v908_v17  ;;  %v1007_v47 = vor.u32 1.1754944e-38, %v1006_v44 }
 0x7a6   :  { %v2282_v0 = vpop.eup %2281  ;;  %v928_v61 = vsel %vm925_vm4, %v927_v26, %v923_v19  ;;  %v938_v51 = vmul.f32 %v934_v1, %v913_v29 }
 0x7a7   :  { %v996_v25 = vmul.f32 %v2282_v0, %v979_v57  ;;  %vm1001_vm5 = vweird.f32 %v2282_v0  ;;  %v939_v43 = vmul.f32 %v935_v10, %v928_v61  ;;  %v1014_v57 = vrot.slane %v2789_v16, 1 }
 0x7a8   :  { %vm1002_vm7 = vmor %vm1000_vm6, %vm1001_vm5  ;;  %v1015_v16 = vrot.slane %v2784_v31, 1 }
 0x7a9   :  { %v997_v37 = vsub.f32 1.0, %v996_v25  ;;  %v1018_v15 = vmul.f32 %v1014_v57, %v2845_v58 }
 0x7ab   :  { %v998_v39 = vmul.f32 %v2282_v0, %v997_v37 }
 0x7ad   :  { %v999_v41 = vadd.f32 %v2282_v0, %v998_v39 }
 0x7af   :  { %v1003_v38 = vsel %vm1002_vm7, %v2282_v0, %v999_v41 }
 0x7b0   :  { %v1008_v22 = vsel %vm1005_vm8, %v1007_v47, %v1003_v38 }
 0x7ea   :  { %v1023_v56 = vpop.permute.xlu2 %1022 }
 0x7eb   :  { %v1028_v59 = vmul.f32 %v1023_v56, %v2845_v58 }
 0x7ed   :  { %1032 = vrot.lane.b32.xlu0 %v1028_v59, %s2455_s9  ;;  %v1019_v59 = vmul.f32 %v1015_v16, %v1008_v22 }
 0x7f0   :  { %v943_v28 = vpop.permute.xlu0 %942 }
 0x7f1   :  { %v945_v4 = vpop.permute.xlu1 %944  ;;  %v948_v53 = vmul.f32 %v943_v28, %v913_v29 }
 0x7f2   :  { %v949_v35 = vmul.f32 %v945_v4, %v928_v61 }
 0x7f3   :  { %952 = vrot.lane.b32.xlu1 %v948_v53, %s2455_s9 }
 0x7f4   :  { %954 = vrot.lane.b32.xlu2 %v949_v35, %s2455_s9 }
 0x803   :  { %v1025_v2 = vpop.permute.xlu0 %1024 }
 0x804   :  { %v1029_v6 = vmul.f32 %v1025_v2, %v1008_v22 }
 0x806   :  { %1034 = vrot.lane.b32.xlu1 %v1029_v6, %s2455_s9 }
 0x84e   :  { %v955_v3 = vpop.permute.xlu2 %954 }
 0x84f   :  { %v2853_v7 = vadd.f32 %v955_v3, %v939_v43 }
 0x851   :  { %2283 = vtanh.f32 %v2853_v7 }
 0x857   :  { %v2284_v11 = vpop.eup %2283 }
 0x858   :  { %966 = vrot.lane.b32.xlu0 %v2284_v11, %s2454_s4 }
 0x85f   :  { %v1033_v49 = vpop.permute.xlu0 %1032 }
 0x860   :  { %v2859_v50 = vadd.f32 %v1033_v49, %v1018_v15 }
 0x862   :  { %2285 = vtanh.f32 %v2859_v50 }
 0x865   :  { %v953_v52 = vpop.permute.xlu1 %952 }
 0x866   :  { %v2863_v55 = vadd.f32 %v953_v52, %v938_v51 }
 0x868   :  { %v2286_v54 = vpop.eup %2285  ;;  %2287 = vtanh.f32 %v2863_v55 }
 0x869   :  { %1044 = vrot.lane.b32.xlu1 %v2286_v54, %s2454_s4 }
 0x86e   :  { %v2288_v56 = vpop.eup %2287 }
 0x86f   :  { %964 = vrot.lane.b32.xlu2 %v2288_v56, %s2454_s4 }
 0x878   :  { %v1035_v60 = vpop.permute.xlu1 %1034 }
 0x879   :  { %v2869_v62 = vadd.f32 %v1035_v60, %v1019_v59 }
 0x87b   :  { %2289 = vtanh.f32 %v2869_v62 }
 0x881   :  { %v2290_v27 = vpop.eup %2289 }
 0x882   :  { %1046 = vrot.lane.b32.xlu2 %v2290_v27, %s2454_s4 }
 0x8c9   :  { %v965_v63 = vpop.permute.xlu2 %964 }
 0x8ca   :  { %v967_v0 = vpop.permute.xlu0 %966  ;;  %v2873_v5 = vmul.f32 %v965_v63, %v913_v29 }
 0x8cb   :  { %v2875_v9 = vmul.f32 %v967_v0, %v928_v61 }
 0x8cc   :  { %v1074_v12 = vrot.slane %v2873_v5, 3 }
 0x8cd   :  { %v1075_v17 = vrot.slane %v2875_v9, 2 }
 0x8cf   :  { %v1076_v31 = vsel %vm327_vm2, %v1075_v17, %v1074_v12 }
 0x8d0   :  { %1077 = vrot.lane.b32.xlu0 %v1076_v31, %s2455_s9 }
 0x8db   :  { %v1045_v19 = vpop.permute.xlu1 %1044 }
 0x8dc   :  { %v2882_v21 = vmul.f32 %v1045_v19, %v2845_v58  ;;  %v1047_v25 = vpop.permute.xlu2 %1046 }
 0x8dd   :  { %v2884_v26 = vmul.f32 %v1047_v25, %v1008_v22 }
 0x8de   :  { %v1108_v28 = vrot.slane %v2882_v21, 4 }
 0x8df   :  { %v1109_v29 = vrot.slane %v2884_v26, 3 }
 0x8e1   :  { %v1110_v4 = vsel %vm327_vm2, %v1109_v29, %v1108_v28 }
 0x8e2   :  { %1111 = vrot.lane.b32.xlu1 %v1110_v4, %s2455_s9 }
 0x942   :  { %v1078_v61 = vpop.permute.xlu0 %1077 }
 0x943   :  { %2133 = vmatmul.msk.f32.vlgmr.msra.gmra.mxu0 %vm39_vm0, %v1078_v61 }
 0x954   :  { %v1112_v53 = vpop.permute.xlu1 %1111 }
 0x955   :  { %2134 = vmatmul.msk.f32.vlgmr.msra.gmra.mxu1 %vm39_vm0, %v1112_v53 }
 0x9c0   :  { %v1098_v35 = vpop.f32.mrf.mxu0 }
 0x9c1   :  { %v1102_v58 = vrot.slane %v1098_v35, 4  ;;  %v1103_v37 = vrot.slane %v1098_v35, 5 }
 0x9c3   :  { %v1106_v39 = vadd.f32 %v1102_v58, %v2619_v36  ;;  %v1107_v41 = vadd.f32 %v1103_v37, %v2613_v30 }
 0x9c5   :  { %2291 = vtanh.f32 %v1106_v39  ;;  %v2135_v3 = vmul.f32 -1.442695, %v1106_v39  ;;  %v2136_v1 = vmul.f32 -1.442695, %v1107_v41 }
 0x9c6   :  { %2293 = vtanh.f32 %v1107_v41 }
 0x9cb   :  { %v2292_v44 = vpop.eup %2291 }
 0x9cc   :  { %v2294_v24 = vpop.eup %2293  ;;  %1192 = vrot.lane.b32.xlu2 %v2292_v44, %s2454_s4 }
 0x9cd   :  { %1194 = vrot.lane.b32.xlu0 %v2294_v24, %s2454_s4 }
 0x9d2   :  { %v1132_v38 = vpop.f32.mrf.mxu1 }
 0x9d3   :  { %v1136_v47 = vrot.slane %v1132_v38, 5  ;;  %v1137_v22 = vrot.slane %v1132_v38, 6 }
 0x9d5   :  { %v1140_v2 = vadd.f32 %v1136_v47, %v2611_v23  ;;  %v1141_v6 = vadd.f32 %v1137_v22, %v2617_v34 }
 0x9d7   :  { %2295 = vtanh.f32 %v1140_v2  ;;  %v2138_v15 = vmul.f32 -1.442695, %v1141_v6  ;;  %v2137_v12 = vmul.f32 -1.442695, %v1140_v2 }
 0x9d8   :  { %2297 = vtanh.f32 %v1141_v6 }
 0x9d9   :  { %2299 = vpow2.f32 %v2135_v3 }
 0x9dd   :  { %v2296_v10 = vpop.eup %2295 }
 0x9de   :  { %v2298_v43 = vpop.eup %2297  ;;  %1272 = vrot.lane.b32.xlu1 %v2296_v10, %s2454_s4 }
 0x9df   :  { %1274 = vrot.lane.b32.xlu2 %v2298_v43, %s2454_s4  ;;  %v2300_v11 = vpop.eup %2299 }
 0x9e0   :  { %v1148_v57 = vadd.f32 1.0, %v2300_v11 }
 0x9e2   :  { %2301 = vrcp.f32 %v1148_v57  ;;  %v1161_v63 = vand.u32 2147483648, %v1148_v57  ;;  %vm1155_vm10 = vweird.f32 %v1148_v57  ;;  %v1159_v17 = vand.u32 2147483647, %v1148_v57 }
 0x9e3   :  { %2303 = vpow2.f32 %v2138_v15 }
 0x9e4   :  { %2305 = vpow2.f32 %v2136_v1  ;;  %v1162_v19 = vor.u32 1.1754944e-38, %v1161_v63  ;;  %vm1160_vm12 = vcmp.eq.f32.partialorder %v1159_v17, 8.507059e+37 }
 0x9e8   :  { %v2302_v49 = vpop.eup %2301 }
 0x9e9   :  { %v1151_v51 = vmul.f32 %v2302_v49, %v1148_v57  ;;  %v2304_v52 = vpop.eup %2303  ;;  %vm1156_vm9 = vweird.f32 %v2302_v49 }
 0x9ea   :  { %v1229_v54 = vadd.f32 1.0, %v2304_v52  ;;  %v2306_v59 = vpop.eup %2305  ;;  %vm1157_vm11 = vmor %vm1155_vm10, %vm1156_vm9 }
 0x9eb   :  { %v1152_v56 = vsub.f32 1.0, %v1151_v51  ;;  %v1149_v60 = vadd.f32 1.0, %v2306_v59 }
 0x9ec   :  { %2307 = vrcp.f32 %v1229_v54  ;;  %v1256_v24 = vand.u32 2147483648, %v1229_v54  ;;  %vm1250_vm14 = vweird.f32 %v1229_v54  ;;  %v1254_v38 = vand.u32 2147483647, %v1229_v54 }
 0x9ed   :  { %v1153_v16 = vmul.f32 %v2302_v49, %v1152_v56  ;;  %2309 = vrcp.f32 %v1149_v60  ;;  %v1176_v57 = vand.u32 2147483648, %v1149_v60  ;;  %vm1170_vm4 = vweird.f32 %v1149_v60 }
 0x9ee   :  { %2311 = vpow2.f32 %v2137_v12  ;;  %v1257_v2 = vor.u32 1.1754944e-38, %v1256_v24  ;;  %vm1255_vm1 = vcmp.eq.f32.partialorder %v1254_v38, 8.507059e+37  ;;  %v1174_v15 = vand.u32 2147483647, %v1149_v60 }
 0x9ef   :  { %v1154_v27 = vadd.f32 %v2302_v49, %v1153_v16  ;;  %v1177_v51 = vor.u32 1.1754944e-38, %v1176_v57  ;;  %v1185_v38 = vrot.slane %v2853_v7, 7 }
 0x9f0   :  { %vm1175_vm6 = vcmp.eq.f32.partialorder %v1174_v15, 8.507059e+37 }
 0x9f1   :  { %v1158_v31 = vsel %vm1157_vm11, %v2302_v49, %v1154_v27 }
 0x9f2   :  { %v2308_v0 = vpop.eup %2307  ;;  %v2900_v28 = vsel %vm1160_vm12, %v1162_v19, %v1158_v31 }
 0x9f3   :  { %v1246_v25 = vmul.f32 %v2308_v0, %v1229_v54  ;;  %v2310_v53 = vpop.eup %2309  ;;  %vm1251_vm13 = vweird.f32 %v2308_v0 }
 0x9f4   :  { %v2312_v35 = vpop.eup %2311  ;;  %v1166_v37 = vmul.f32 %v2310_v53, %v1149_v60  ;;  %vm1252_vm15 = vmor %vm1250_vm14, %vm1251_vm13  ;;  %vm1171_vm3 = vweird.f32 %v2310_v53 }
 0x9f5   :  { %v1247_v61 = vsub.f32 1.0, %v1246_v25  ;;  %v1228_v39 = vadd.f32 1.0, %v2312_v35  ;;  %vm1172_vm5 = vmor %vm1170_vm4, %vm1171_vm3  ;;  %v1184_v25 = vrot.slane %v2863_v55, 7  ;;  %v1264_v35 = vrot.slane %v2859_v50, 1 }
 0x9f6   :  { %v1167_v44 = vsub.f32 1.0, %v1166_v37 }
 0x9f7   :  { %v1248_v58 = vmul.f32 %v2308_v0, %v1247_v61  ;;  %2313 = vrcp.f32 %v1228_v39  ;;  %v1241_v63 = vand.u32 2147483648, %v1228_v39  ;;  %vm1235_vm8 = vweird.f32 %v1228_v39 }
 0x9f8   :  { %v1168_v22 = vmul.f32 %v2310_v53, %v1167_v44 }
 0x9f9   :  { %v1249_v41 = vadd.f32 %v2308_v0, %v1248_v58  ;;  %v1242_v60 = vor.u32 1.1754944e-38, %v1241_v63  ;;  %v1265_v58 = vrot.slane %v2869_v62, 1 }
 0x9fa   :  { %v1169_v11 = vadd.f32 %v2310_v53, %v1168_v22 }
 0x9fb   :  { %v1253_v47 = vsel %vm1252_vm15, %v2308_v0, %v1249_v41  ;;  %v1239_v0 = vand.u32 2147483647, %v1228_v39 }
 0x9fc   :  { %v2904_v6 = vsel %vm1255_vm1, %v1257_v2, %v1253_v47  ;;  %v1173_v1 = vsel %vm1172_vm5, %v2310_v53, %v1169_v11 }
 0x9fd   :  { %v2314_v43 = vpop.eup %2313  ;;  %v1178_v54 = vsel %vm1175_vm6, %v1177_v51, %v1173_v1  ;;  %vm1240_vm10 = vcmp.eq.f32.partialorder %v1239_v0, 8.507059e+37 }
 0x9fe   :  { %v1231_v49 = vmul.f32 %v2314_v43, %v1228_v39  ;;  %vm1236_vm7 = vweird.f32 %v2314_v43  ;;  %v1269_v39 = vmul.f32 %v1265_v58, %v2904_v6  ;;  %v1189_v47 = vmul.f32 %v1185_v38, %v1178_v54 }
 0x9ff   :  { %vm1237_vm9 = vmor %vm1235_vm8, %vm1236_vm7 }
 0xa00   :  { %v1232_v56 = vsub.f32 1.0, %v1231_v49 }
 0xa02   :  { %v1233_v59 = vmul.f32 %v2314_v43, %v1232_v56 }
 0xa04   :  { %v1234_v27 = vadd.f32 %v2314_v43, %v1233_v59 }
 0xa06   :  { %v1238_v12 = vsel %vm1237_vm9, %v2314_v43, %v1234_v27 }
 0xa07   :  { %v1243_v31 = vsel %vm1240_vm10, %v1242_v60, %v1238_v12 }
 0xa08   :  { %v1268_v37 = vmul.f32 %v1264_v35, %v1243_v31 }
 0xa26   :  { %v1193_v29 = vpop.permute.xlu2 %1192 }
 0xa27   :  { %v1198_v4 = vmul.f32 %v1193_v29, %v2900_v28  ;;  %v1188_v29 = vmul.f32 %v1184_v25, %v2900_v28 }
 0xa29   :  { %1202 = vrot.lane.b32.xlu0 %v1198_v4, %s2455_s9 }
 0xa39   :  { %v1275_v10 = vpop.permute.xlu2 %1274 }
 0xa3a   :  { %v1279_v3 = vmul.f32 %v1275_v10, %v2904_v6 }
 0xa3c   :  { %1284 = vrot.lane.b32.xlu0 %v1279_v3, %s2455_s9 }
 0xa3f   :  { %v1195_v52 = vpop.permute.xlu0 %1194 }
 0xa40   :  { %v1199_v16 = vmul.f32 %v1195_v52, %v1178_v54 }
 0xa42   :  { %1204 = vrot.lane.b32.xlu1 %v1199_v16, %s2455_s9 }
 0xa50   :  { %v1273_v17 = vpop.permute.xlu1 %1272 }
 0xa51   :  { %v1278_v19 = vmul.f32 %v1273_v17, %v1243_v31 }
 0xa53   :  { %1282 = vrot.lane.b32.xlu2 %v1278_v19, %s2455_s9 }
 0xa9b   :  { %v1203_v4 = vpop.permute.xlu0 %1202 }
 0xa9c   :  { %v2912_v61 = vadd.f32 %v1203_v4, %v1188_v29 }
 0xa9e   :  { %2315 = vtanh.f32 %v2912_v61 }
 0xaa4   :  { %v2316_v53 = vpop.eup %2315 }
 0xaa5   :  { %1214 = vrot.lane.b32.xlu1 %v2316_v53, %s2454_s4 }
 0xaad   :  { %v1283_v41 = vpop.permute.xlu2 %1282 }
 0xaae   :  { %v1285_v44 = vpop.permute.xlu0 %1284  ;;  %v2919_v55 = vadd.f32 %v1283_v41, %v1268_v37 }
 0xaaf   :  { %v2921_v24 = vadd.f32 %v1285_v44, %v1269_v39 }
 0xab0   :  { %2317 = vtanh.f32 %v2919_v55 }
 0xab1   :  { %2319 = vtanh.f32 %v2921_v24 }
 0xab4   :  { %v1205_v50 = vpop.permute.xlu1 %1204 }
 0xab5   :  { %v2926_v62 = vadd.f32 %v1205_v50, %v1189_v47 }
 0xab6   :  { %v2318_v22 = vpop.eup %2317 }
 0xab7   :  { %v2320_v2 = vpop.eup %2319  ;;  %1294 = vrot.lane.b32.xlu0 %v2318_v22, %s2454_s4  ;;  %2321 = vtanh.f32 %v2926_v62 }
 0xab8   :  { %1296 = vrot.lane.b32.xlu1 %v2320_v2, %s2454_s4 }
 0xabd   :  { %v2322_v10 = vpop.eup %2321 }
 0xabe   :  { %1216 = vrot.lane.b32.xlu2 %v2322_v10, %s2454_s4 }
 0xb17   :  { %v1215_v43 = vpop.permute.xlu1 %1214 }
 0xb18   :  { %v2933_v3 = vmul.f32 %v1215_v43, %v2900_v28  ;;  %v1217_v7 = vpop.permute.xlu2 %1216 }
 0xb19   :  { %v2935_v11 = vmul.f32 %v1217_v7, %v1178_v54 }
 0xb1a   :  { %v1324_v57 = vrot.slane %v2933_v3, 4 }
 0xb1b   :  { %v1325_v15 = vrot.slane %v2935_v11, 3 }
 0xb1d   :  { %v1326_v49 = vsel %vm327_vm2, %v1325_v15, %v1324_v57 }
 0xb1e   :  { %1327 = vrot.lane.b32.xlu2 %v1326_v49, %s2455_s9 }
 0xb29   :  { %v1295_v1 = vpop.permute.xlu0 %1294 }
 0xb2a   :  { %v1297_v51 = vpop.permute.xlu1 %1296  ;;  %v2941_v52 = vmul.f32 %v1295_v1, %v1243_v31 }
 0xb2b   :  { %v2944_v56 = vmul.f32 %v1297_v51, %v2904_v6 }
 0xb2c   :  { %v1358_v28 = vrot.slane %v2941_v52, 3 }
 0xb2d   :  { %v1359_v54 = vrot.slane %v2944_v56, 2 }
 0xb2f   :  { %v1360_v16 = vsel %vm327_vm2, %v1359_v54, %v1358_v28 }
 0xb30   :  { %1361 = vrot.lane.b32.xlu0 %v1360_v16, %s2455_s9 }
 0xb78   :  { %v1328_v59 = vpop.permute.xlu2 %1327 }
 0xb79   :  { %2139 = vmatmul.msk.f32.vlgmr.msrb.gmra.mxu2 %vm39_vm0, %v1328_v59 }
 0xba2   :  { %v1362_v27 = vpop.permute.xlu0 %1361 }
 0xba3   :  { %2140 = vmatmul.msk.f32.vlgmr.msrb.gmra.mxu3 %vm39_vm0, %v1362_v27 }
 0xbfc   :  { %v1348_v63 = vpop.f32.mrf.mxu2 }
 0xbfd   :  { %v1352_v0 = vrot.slane %v1348_v63, 3  ;;  %v1353_v12 = vrot.slane %v1348_v63, 4 }
 0xbff   :  { %v1356_v6 = vadd.f32 %v1352_v0, %v2619_v36  ;;  %v1357_v60 = vadd.f32 %v1353_v12, %v2613_v30 }
 0xc01   :  { %2323 = vtanh.f32 %v1356_v6  ;;  %v2142_v37 = vmul.f32 -1.442695, %v1357_v60  ;;  %v2141_v38 = vmul.f32 -1.442695, %v1356_v6 }
 0xc02   :  { %2325 = vtanh.f32 %v1357_v60 }
 0xc07   :  { %v2324_v17 = vpop.eup %2323 }
 0xc08   :  { %v2326_v31 = vpop.eup %2325  ;;  %1442 = vrot.lane.b32.xlu1 %v2324_v17, %s2454_s4 }
 0xc09   :  { %1444 = vrot.lane.b32.xlu2 %v2326_v31, %s2454_s4 }
 0xc26   :  { %v1382_v19 = vpop.f32.mrf.mxu3 }
 0xc27   :  { %v1386_v25 = vrot.slane %v1382_v19, 6  ;;  %v1387_v29 = vrot.slane %v1382_v19, 7 }
 0xc29   :  { %v1390_v4 = vadd.f32 %v1386_v25, %v2611_v23  ;;  %v1391_v53 = vadd.f32 %v1387_v29, %v2617_v34 }
 0xc2b   :  { %2327 = vtanh.f32 %v1390_v4  ;;  %v2143_v12 = vmul.f32 -1.442695, %v1390_v4  ;;  %v2144_v60 = vmul.f32 -1.442695, %v1391_v53 }
 0xc2c   :  { %2329 = vtanh.f32 %v1391_v53 }
 0xc2d   :  { %2331 = vpow2.f32 %v2142_v37 }
 0xc31   :  { %v2328_v35 = vpop.eup %2327 }
 0xc32   :  { %v2330_v58 = vpop.eup %2329  ;;  %1522 = vrot.lane.b32.xlu0 %v2328_v35, %s2454_s4 }
 0xc33   :  { %1524 = vrot.lane.b32.xlu1 %v2330_v58, %s2454_s4  ;;  %v2332_v39 = vpop.eup %2331 }
 0xc34   :  { %v1399_v41 = vadd.f32 1.0, %v2332_v39 }
 0xc36   :  { %2333 = vrcp.f32 %v1399_v41  ;;  %v1426_v7 = vand.u32 2147483648, %v1399_v41  ;;  %vm1420_vm12 = vweird.f32 %v1399_v41  ;;  %v1424_v57 = vand.u32 2147483647, %v1399_v41 }
 0xc37   :  { %2335 = vpow2.f32 %v2141_v38 }
 0xc38   :  { %v1427_v49 = vor.u32 1.1754944e-38, %v1426_v7  ;;  %vm1425_vm14 = vcmp.eq.f32.partialorder %v1424_v57, 8.507059e+37 }
 0xc3c   :  { %v2334_v44 = vpop.eup %2333 }
 0xc3d   :  { %v1416_v47 = vmul.f32 %v2334_v44, %v1399_v41  ;;  %v2336_v50 = vpop.eup %2335  ;;  %vm1421_vm11 = vweird.f32 %v2334_v44 }
 0xc3e   :  { %v1398_v10 = vadd.f32 1.0, %v2336_v50  ;;  %vm1422_vm13 = vmor %vm1420_vm12, %vm1421_vm11 }
 0xc3f   :  { %v1417_v22 = vsub.f32 1.0, %v1416_v47 }
 0xc40   :  { %2337 = vrcp.f32 %v1398_v10  ;;  %v1411_v0 = vand.u32 2147483648, %v1398_v10  ;;  %vm1405_vm1 = vweird.f32 %v1398_v10  ;;  %v1409_v6 = vand.u32 2147483647, %v1398_v10 }
 0xc41   :  { %v1418_v2 = vmul.f32 %v2334_v44, %v1417_v22  ;;  %2339 = vpow2.f32 %v2143_v12 }
 0xc42   :  { %v1412_v31 = vor.u32 1.1754944e-38, %v1411_v0  ;;  %vm1410_vm4 = vcmp.eq.f32.partialorder %v1409_v6, 8.507059e+37  ;;  %2341 = vpow2.f32 %v2144_v60  ;;  %v1434_v6 = vrot.slane %v2912_v61, 7 }
 0xc43   :  { %v1419_v43 = vadd.f32 %v2334_v44, %v1418_v2  ;;  %v1435_v60 = vrot.slane %v2926_v62, 7  ;;  %v1515_v61 = vrot.slane %v2921_v24, 1 }
 0xc45   :  { %v1423_v15 = vsel %vm1422_vm13, %v2334_v44, %v1419_v43 }
 0xc46   :  { %v2960_v51 = vsel %vm1425_vm14, %v1427_v49, %v1423_v15  ;;  %v2338_v28 = vpop.eup %2337 }
 0xc47   :  { %v1401_v16 = vmul.f32 %v2338_v28, %v1398_v10  ;;  %vm1406_vm15 = vweird.f32 %v2338_v28  ;;  %v2340_v35 = vpop.eup %2339 }
 0xc48   :  { %vm1407_vm3 = vmor %vm1405_vm1, %vm1406_vm15  ;;  %v2342_v58 = vpop.eup %2341  ;;  %v1478_v37 = vadd.f32 1.0, %v2340_v35 }
 0xc49   :  { %v1402_v59 = vsub.f32 1.0, %v1401_v16  ;;  %v1479_v4 = vadd.f32 1.0, %v2342_v58 }
 0xc4a   :  { %2343 = vrcp.f32 %v1478_v37  ;;  %v1491_v10 = vand.u32 2147483648, %v1478_v37  ;;  %vm1485_vm7 = vweird.f32 %v1478_v37  ;;  %v1489_v7 = vand.u32 2147483647, %v1478_v37 }
 0xc4b   :  { %v1403_v27 = vmul.f32 %v2338_v28, %v1402_v59  ;;  %2345 = vrcp.f32 %v1479_v4  ;;  %v1506_v57 = vand.u32 2147483648, %v1479_v4  ;;  %vm1500_vm9 = vweird.f32 %v1479_v4 }
 0xc4c   :  { %v1504_v15 = vand.u32 2147483647, %v1479_v4  ;;  %vm1490_vm11 = vcmp.eq.f32.partialorder %v1489_v7, 8.507059e+37 }
 0xc4d   :  { %v1404_v63 = vadd.f32 %v2338_v28, %v1403_v27 }
 0xc4e   :  { %vm1505_vm12 = vcmp.eq.f32.partialorder %v1504_v15, 8.507059e+37 }
 0xc4f   :  { %v1408_v17 = vsel %vm1407_vm3, %v2338_v28, %v1404_v63 }
 0xc50   :  { %v2964_v25 = vsel %vm1410_vm4, %v1412_v31, %v1408_v17  ;;  %v2344_v53 = vpop.eup %2343  ;;  %v1439_v31 = vmul.f32 %v1435_v60, %v2960_v51 }
 0xc51   :  { %v2346_v39 = vpop.eup %2345  ;;  %v1481_v41 = vmul.f32 %v2344_v53, %v1478_v37  ;;  %vm1486_vm5 = vweird.f32 %v2344_v53  ;;  %v1438_v17 = vmul.f32 %v1434_v6, %v2964_v25 }
 0xc52   :  { %v1496_v44 = vmul.f32 %v2346_v39, %v1479_v4  ;;  %vm1501_vm6 = vweird.f32 %v2346_v39  ;;  %vm1487_vm8 = vmor %vm1485_vm7, %vm1486_vm5 }
 0xc53   :  { %v1482_v38 = vsub.f32 1.0, %v1481_v41  ;;  %vm1502_vm10 = vmor %vm1500_vm9, %vm1501_vm6 }
 0xc54   :  { %v1497_v47 = vsub.f32 1.0, %v1496_v44  ;;  %v1514_v44 = vrot.slane %v2919_v55, 1 }
 0xc55   :  { %v1483_v22 = vmul.f32 %v2344_v53, %v1482_v38 }
 0xc56   :  { %v1498_v50 = vmul.f32 %v2346_v39, %v1497_v47 }
 0xc57   :  { %v1484_v2 = vadd.f32 %v2344_v53, %v1483_v22 }
 0xc58   :  { %v1499_v43 = vadd.f32 %v2346_v39, %v1498_v50 }
 0xc59   :  { %v1488_v49 = vsel %vm1487_vm8, %v2344_v53, %v1484_v2 }
 0xc5a   :  { %v1503_v28 = vsel %vm1502_vm10, %v2346_v39, %v1499_v43 }
 0xc63   :  { %v1445_v1 = vpop.permute.xlu2 %1444 }
 0xc64   :  { %v1449_v54 = vmul.f32 %v1445_v1, %v2960_v51  ;;  %v1492_v1 = vor.u32 1.1754944e-38, %v1491_v10 }
 0xc66   :  { %1454 = vrot.lane.b32.xlu0 %v1449_v54, %s2455_s9  ;;  %v1507_v54 = vor.u32 1.1754944e-38, %v1506_v57  ;;  %v1493_v59 = vsel %vm1490_vm11, %v1492_v1, %v1488_v49 }
 0xc67   :  { %v1518_v38 = vmul.f32 %v1514_v44, %v1493_v59 }
 0xc68   :  { %v1508_v63 = vsel %vm1505_vm12, %v1507_v54, %v1503_v28 }
 0xc69   :  { %v1519_v62 = vmul.f32 %v1515_v61, %v1508_v63 }
 0xc7a   :  { %v1443_v19 = vpop.permute.xlu1 %1442 }
 0xc7b   :  { %v1448_v29 = vmul.f32 %v1443_v19, %v2964_v25 }
 0xc7d   :  { %1452 = vrot.lane.b32.xlu2 %v1448_v29, %s2455_s9 }
 0xca4   :  { %v1523_v16 = vpop.permute.xlu0 %1522 }
 0xca5   :  { %v1528_v27 = vmul.f32 %v1523_v16, %v1493_v59  ;;  %v1525_v0 = vpop.permute.xlu1 %1524 }
 0xca6   :  { %v1529_v12 = vmul.f32 %v1525_v0, %v1508_v63 }
 0xca7   :  { %1532 = vrot.lane.b32.xlu1 %v1528_v27, %s2455_s9 }
 0xca8   :  { %1534 = vrot.lane.b32.xlu2 %v1529_v12, %s2455_s9 }
 0xcd7   :  { %v1453_v19 = vpop.permute.xlu2 %1452 }
 0xcd8   :  { %v1455_v29 = vpop.permute.xlu0 %1454  ;;  %v2974_v35 = vadd.f32 %v1453_v19, %v1438_v17 }
 0xcd9   :  { %v2976_v58 = vadd.f32 %v1455_v29, %v1439_v31 }
 0xcda   :  { %2347 = vtanh.f32 %v2974_v35 }
 0xcdb   :  { %2349 = vtanh.f32 %v2976_v58 }
 0xce0   :  { %v2348_v37 = vpop.eup %2347 }
 0xce1   :  { %v2350_v4 = vpop.eup %2349  ;;  %1464 = vrot.lane.b32.xlu0 %v2348_v37, %s2454_s4 }
 0xce2   :  { %1466 = vrot.lane.b32.xlu1 %v2350_v4, %s2454_s4 }
 0xd02   :  { %v1535_v53 = vpop.permute.xlu2 %1534 }
 0xd03   :  { %v2983_v39 = vadd.f32 %v1535_v53, %v1519_v62 }
 0xd05   :  { %2351 = vtanh.f32 %v2983_v39 }
 0xd0b   :  { %v2352_v41 = vpop.eup %2351 }
 0xd0c   :  { %1546 = vrot.lane.b32.xlu0 %v2352_v41, %s2454_s4 }
 0xd19   :  { %v1533_v47 = vpop.permute.xlu1 %1532 }
 0xd1a   :  { %v2988_v22 = vadd.f32 %v1533_v47, %v1518_v38 }
 0xd1c   :  { %2353 = vtanh.f32 %v2988_v22 }
 0xd22   :  { %v2354_v50 = vpop.eup %2353 }
 0xd23   :  { %1544 = vrot.lane.b32.xlu2 %v2354_v50, %s2454_s4 }
 0xd53   :  { %v1465_v24 = vpop.permute.xlu0 %1464 }
 0xd54   :  { %v1467_v2 = vpop.permute.xlu1 %1466  ;;  %v2993_v10 = vmul.f32 %v1465_v24, %v2964_v25 }
 0xd55   :  { %v2996_v43 = vmul.f32 %v1467_v2, %v2960_v51 }
 0xd56   :  { %v1574_v7 = vrot.slane %v2993_v10, 5 }
 0xd57   :  { %v1575_v55 = vrot.slane %v2996_v43, 4 }
 0xd59   :  { %v1576_v57 = vsel %vm327_vm2, %v1575_v55, %v1574_v7 }
 0xd5a   :  { %1577 = vrot.lane.b32.xlu1 %v1576_v57, %s2455_s9 }
 0xd7d   :  { %v1545_v15 = vpop.permute.xlu2 %1544 }
 0xd7e   :  { %v3002_v49 = vmul.f32 %v1545_v15, %v1493_v59  ;;  %v1547_v1 = vpop.permute.xlu0 %1546 }
 0xd7f   :  { %v3004_v28 = vmul.f32 %v1547_v1, %v1508_v63 }
 0xd80   :  { %v1608_v25 = vrot.slane %v3002_v49, 2 }
 0xd81   :  { %v1609_v54 = vrot.slane %v3004_v28, 1 }
 0xd83   :  { %v1610_v51 = vsel %vm327_vm2, %v1609_v54, %v1608_v25 }
 0xd84   :  { %1611 = vrot.lane.b32.xlu2 %v1610_v51, %s2455_s9 }
 0xdcc   :  { %v1578_v16 = vpop.permute.xlu1 %1577 }
 0xdcd   :  { %2145 = vmatmul.msk.f32.vlgmr.msrb.gmra.mxu0 %vm39_vm0, %v1578_v16 }
 0xdde   :  { %v1612_v27 = vpop.permute.xlu2 %1611 }
 0xddf   :  { %2146 = vmatmul.msk.f32.vlgmr.msrb.gmra.mxu1 %vm39_vm0, %v1612_v27 }
 0xe4a   :  { %v1598_v0 = vpop.f32.mrf.mxu0 }
 0xe4b   :  { %v1602_v59 = vrot.slane %v1598_v0, 2  ;;  %v1603_v12 = vrot.slane %v1598_v0, 3 }
 0xe4d   :  { %v1606_v63 = vadd.f32 %v1602_v59, %v2619_v36  ;;  %v1607_v6 = vadd.f32 %v1603_v12, %v2613_v30 }
 0xe4f   :  { %2355 = vtanh.f32 %v1606_v63  ;;  %v2147_v53 = vmul.f32 -1.442695, %v1606_v63  ;;  %v2148_v41 = vmul.f32 -1.442695, %v1607_v6 }
 0xe50   :  { %2357 = vtanh.f32 %v1607_v6 }
 0xe55   :  { %v2356_v60 = vpop.eup %2355 }
 0xe56   :  { %v2358_v17 = vpop.eup %2357  ;;  %1691 = vrot.lane.b32.xlu0 %v2356_v60, %s2454_s4 }
 0xe57   :  { %1693 = vrot.lane.b32.xlu1 %v2358_v17, %s2454_s4 }
 0xe5c   :  { %v1632_v31 = vpop.f32.mrf.mxu1 }
 0xe5d   :  { %v1636_v19 = vrot.slane %v1632_v31, 7  ;;  %v1640_v29 = vadd.f32 %v1632_v31, %v2617_v34 }
 0xe5f   :  { %v1639_v37 = vadd.f32 %v1636_v19, %v2611_v23  ;;  %2359 = vtanh.f32 %v1640_v29  ;;  %v2150_v7 = vmul.f32 -1.442695, %v1640_v29 }
 0xe61   :  { %2361 = vtanh.f32 %v1639_v37  ;;  %v2149_v62 = vmul.f32 -1.442695, %v1639_v37 }
 0xe63   :  { %2363 = vpow2.f32 %v2149_v62 }
 0xe64   :  { %2365 = vpow2.f32 %v2147_v53 }
 0xe65   :  { %v2360_v4 = vpop.eup %2359  ;;  %2367 = vpow2.f32 %v2148_v41 }
 0xe66   :  { %1773 = vrot.lane.b32.xlu0 %v2360_v4, %s2454_s4 }
 0xe67   :  { %v2362_v61 = vpop.eup %2361 }
 0xe68   :  { %1771 = vrot.lane.b32.xlu2 %v2362_v61, %s2454_s4 }
 0xe69   :  { %v2364_v44 = vpop.eup %2363 }
 0xe6a   :  { %v1727_v38 = vadd.f32 1.0, %v2364_v44  ;;  %v2366_v47 = vpop.eup %2365 }
 0xe6b   :  { %v2368_v50 = vpop.eup %2367  ;;  %v1647_v24 = vadd.f32 1.0, %v2366_v47 }
 0xe6c   :  { %2369 = vrcp.f32 %v1727_v38  ;;  %v1648_v2 = vadd.f32 1.0, %v2368_v50  ;;  %v1740_v6 = vand.u32 2147483648, %v1727_v38  ;;  %vm1734_vm14 = vweird.f32 %v1727_v38 }
 0xe6d   :  { %2371 = vrcp.f32 %v1647_v24  ;;  %v1738_v60 = vand.u32 2147483647, %v1727_v38  ;;  %v1660_v44 = vand.u32 2147483648, %v1647_v24  ;;  %vm1654_vm5 = vweird.f32 %v1647_v24 }
 0xe6e   :  { %2373 = vrcp.f32 %v1648_v2  ;;  %v1741_v29 = vor.u32 1.1754944e-38, %v1740_v6  ;;  %v1675_v47 = vand.u32 2147483648, %v1648_v2  ;;  %vm1669_vm6 = vweird.f32 %v1648_v2 }
 0xe6f   :  { %2375 = vpow2.f32 %v2150_v7  ;;  %vm1739_vm1 = vcmp.eq.f32.partialorder %v1738_v60, 8.507059e+37  ;;  %v1673_v7 = vand.u32 2147483647, %v1648_v2 }
 0xe71   :  { %vm1674_vm10 = vcmp.eq.f32.partialorder %v1673_v7, 8.507059e+37 }
 0xe72   :  { %v2370_v55 = vpop.eup %2369 }
 0xe73   :  { %v1730_v57 = vmul.f32 %v2370_v55, %v1727_v38  ;;  %v2372_v15 = vpop.eup %2371  ;;  %vm1735_vm13 = vweird.f32 %v2370_v55  ;;  %v1658_v38 = vand.u32 2147483647, %v1647_v24 }
 0xe74   :  { %v2374_v1 = vpop.eup %2373  ;;  %v1650_v51 = vmul.f32 %v2372_v15, %v1647_v24  ;;  %vm1736_vm15 = vmor %vm1734_vm14, %vm1735_vm13  ;;  %vm1655_vm3 = vweird.f32 %v2372_v15 }
 0xe75   :  { %v1731_v25 = vsub.f32 1.0, %v1730_v57  ;;  %v2376_v54 = vpop.eup %2375  ;;  %v1665_v0 = vmul.f32 %v2374_v1, %v1648_v2  ;;  %vm1670_vm4 = vweird.f32 %v2374_v1  ;;  %vm1656_vm7 = vmor %vm1654_vm5, %vm1655_vm3  ;;  %vm1659_vm9 = vcmp.eq.f32.partialorder %v1658_v38, 8.507059e+37 }
 0xe76   :  { %v1728_v16 = vadd.f32 1.0, %v2376_v54  ;;  %v1651_v59 = vsub.f32 1.0, %v1650_v51  ;;  %vm1671_vm8 = vmor %vm1669_vm6, %vm1670_vm4  ;;  %v1676_v54 = vor.u32 1.1754944e-38, %v1675_v47 }
 0xe77   :  { %v1732_v27 = vmul.f32 %v2370_v55, %v1731_v25  ;;  %v1666_v63 = vsub.f32 1.0, %v1665_v0  ;;  %v1661_v25 = vor.u32 1.1754944e-38, %v1660_v44 }
 0xe78   :  { %2377 = vrcp.f32 %v1728_v16  ;;  %v1652_v17 = vmul.f32 %v2372_v15, %v1651_v59  ;;  %vm1749_vm12 = vweird.f32 %v1728_v16 }
 0xe79   :  { %v1733_v12 = vadd.f32 %v2370_v55, %v1732_v27  ;;  %v1667_v19 = vmul.f32 %v2374_v1, %v1666_v63 }
 0xe7a   :  { %v1653_v62 = vadd.f32 %v2372_v15, %v1652_v17 }
 0xe7b   :  { %v1737_v31 = vsel %vm1736_vm15, %v2370_v55, %v1733_v12  ;;  %v1668_v41 = vadd.f32 %v2374_v1, %v1667_v19 }
 0xe7c   :  { %v3020_v61 = vsel %vm1739_vm1, %v1741_v29, %v1737_v31  ;;  %v1657_v55 = vsel %vm1656_vm7, %v2372_v15, %v1653_v62  ;;  %v1755_v15 = vand.u32 2147483648, %v1728_v16 }
 0xe7d   :  { %v1672_v57 = vsel %vm1671_vm8, %v2374_v1, %v1668_v41  ;;  %v1662_v27 = vsel %vm1659_vm9, %v1661_v25, %v1657_v55  ;;  %v1753_v1 = vand.u32 2147483647, %v1728_v16 }
 0xe7e   :  { %v2378_v37 = vpop.eup %2377  ;;  %v1677_v12 = vsel %vm1674_vm10, %v1676_v54, %v1672_v57  ;;  %v1756_v17 = vor.u32 1.1754944e-38, %v1755_v15 }
 0xe7f   :  { %v1745_v50 = vmul.f32 %v2378_v37, %v1728_v16  ;;  %vm1750_vm11 = vweird.f32 %v2378_v37  ;;  %vm1754_vm14 = vcmp.eq.f32.partialorder %v1753_v1, 8.507059e+37  ;;  %v1763_v16 = vrot.slane %v2988_v22, 1 }
 0xe80   :  { %vm1751_vm13 = vmor %vm1749_vm12, %vm1750_vm11  ;;  %v1764_v22 = vrot.slane %v2983_v39, 1  ;;  %vm312_vm11 = vcmask 253952  }
 0xe81   :  { %v1746_v51 = vsub.f32 1.0, %v1745_v50 }
 0xe83   :  { %v1747_v6 = vmul.f32 %v2378_v37, %v1746_v51 }
 0xe85   :  { %v1748_v2 = vadd.f32 %v2378_v37, %v1747_v6 }
 0xe87   :  { %v1752_v60 = vsel %vm1751_vm13, %v2378_v37, %v1748_v2  ;;  %v1767_v37 = vmul.f32 %v1763_v16, %v3020_v61 }
 0xe88   :  { %v1757_v31 = vsel %vm1754_vm14, %v1756_v17, %v1752_v60 }
 0xe89   :  { %v1768_v54 = vmul.f32 %v1764_v22, %v1757_v31 }
 0xec2   :  { %v1772_v4 = vpop.permute.xlu2 %1771 }
 0xec3   :  { %v1777_v53 = vmul.f32 %v1772_v4, %v3020_v61  ;;  %v1684_v4 = vrot.slane %v2976_v58, 7  ;;  %v1683_v58 = vrot.slane %v2974_v35, 7 }
 0xec5   :  { %1781 = vrot.lane.b32.xlu0 %v1777_v53, %s2455_s9  ;;  %v1688_v62 = vmul.f32 %v1684_v4, %v1677_v12  ;;  %v1687_v50 = vmul.f32 %v1683_v58, %v1662_v27 }
 0xec8   :  { %v1692_v0 = vpop.permute.xlu0 %1691 }
 0xec9   :  { %v1694_v59 = vpop.permute.xlu1 %1693  ;;  %v1697_v63 = vmul.f32 %v1692_v0, %v1662_v27 }
 0xeca   :  { %v1698_v24 = vmul.f32 %v1694_v59, %v1677_v12 }
 0xecb   :  { %1701 = vrot.lane.b32.xlu1 %v1697_v63, %s2455_s9 }
 0xecc   :  { %1703 = vrot.lane.b32.xlu2 %v1698_v24, %s2455_s9 }
 0xed8   :  { %v1774_v19 = vpop.permute.xlu0 %1773 }
 0xed9   :  { %v1778_v29 = vmul.f32 %v1774_v19, %v1757_v31 }
 0xedb   :  { %1783 = vrot.lane.b32.xlu1 %v1778_v29, %s2455_s9 }
 0xf26   :  { %v1704_v53 = vpop.permute.xlu2 %1703 }
 0xf27   :  { %v3028_v41 = vadd.f32 %v1704_v53, %v1688_v62 }
 0xf29   :  { %2379 = vtanh.f32 %v3028_v41 }
 0xf2f   :  { %v2380_v44 = vpop.eup %2379 }
 0xf30   :  { %1715 = vrot.lane.b32.xlu0 %v2380_v44, %s2454_s4 }
 0xf37   :  { %v1782_v47 = vpop.permute.xlu0 %1781 }
 0xf38   :  { %v3034_v38 = vadd.f32 %v1782_v47, %v1767_v37 }
 0xf3a   :  { %2381 = vtanh.f32 %v3034_v38 }
 0xf3d   :  { %v1702_v7 = vpop.permute.xlu1 %1701 }
 0xf3e   :  { %v3038_v55 = vadd.f32 %v1702_v7, %v1687_v50 }
 0xf40   :  { %v2382_v57 = vpop.eup %2381  ;;  %2383 = vtanh.f32 %v3038_v55 }
 0xf41   :  { %1793 = vrot.lane.b32.xlu1 %v2382_v57, %s2454_s4 }
 0xf46   :  { %v2384_v25 = vpop.eup %2383 }
 0xf47   :  { %1713 = vrot.lane.b32.xlu2 %v2384_v25, %s2454_s4 }
 0xf4d   :  { %v1784_v51 = vpop.permute.xlu1 %1783 }
 0xf4e   :  { %v3044_v0 = vadd.f32 %v1784_v51, %v1768_v54 }
 0xf50   :  { %2385 = vtanh.f32 %v3044_v0 }
 0xf56   :  { %v2386_v35 = vpop.eup %2385 }
 0xf57   :  { %1795 = vrot.lane.b32.xlu2 %v2386_v35, %s2454_s4 }
 0xfa1   :  { %v1714_v59 = vpop.permute.xlu2 %1713 }
 0xfa2   :  { %v3048_v63 = vmul.f32 %v1714_v59, %v1662_v27  ;;  %v1716_v24 = vpop.permute.xlu0 %1715 }
 0xfa3   :  { %v3050_v6 = vmul.f32 %v1716_v24, %v1677_v12 }
 0xfa4   :  { %v1823_v2 = vrot.slane %v3048_v63, 6 }
 0xfa5   :  { %v1824_v15 = vrot.slane %v3050_v6, 5 }
 0xfa7   :  { %v1825_v39 = vsel %vm327_vm2, %v1824_v15, %v1823_v2 }
 0xfa8   :  { %1826 = vrot.lane.b32.xlu0 %v1825_v39, %s2455_s9 }
 0xfb1   :  { %v1796_v1 = vpop.permute.xlu2 %1795 }
 0xfb2   :  { %v3059_v19 = vmul.f32 %v1796_v1, %v1757_v31 }
 0xfb3   :  { %v1794_v60 = vpop.permute.xlu1 %1793 }
 0xfb4   :  { %v3057_v17 = vmul.f32 %v1794_v60, %v3020_v61 }
 0xfb6   :  { %v1857_v27 = vrot.slane %v3057_v17, 1 }
 0xfb8   :  { %v1858_v12 = vsel %vm327_vm2, %v3059_v19, %v1857_v27 }
 0xfb9   :  { %1859 = vrot.lane.b32.xlu1 %v1858_v12, %s2455_s9 }
0x101a   :  { %v1827_v29 = vpop.permute.xlu0 %1826 }
0x101b   :  { %2151 = vmatmul.msk.f32.vlgmr.msra.gmra.mxu2 %vm39_vm0, %v1827_v29 }
0x102b   :  { %v1860_v4 = vpop.permute.xlu1 %1859 }
0x102c   :  { %2152 = vmatmul.msk.f32.vlgmr.msra.gmra.mxu3 %vm39_vm0, %v1860_v4 }
0x109e   :  { %v1847_v62 = vpop.f32.mrf.mxu2 }
0x109f   :  { %v1851_v53 = vrot.slane %v1847_v62, 1  ;;  %v1852_v44 = vrot.slane %v1847_v62, 2 }
0x10a1   :  { %v1855_v61 = vadd.f32 %v1851_v53, %v2619_v36  ;;  %v1856_v31 = vadd.f32 %v1852_v44, %v2613_v30 }
0x10a3   :  { %2387 = vtanh.f32 %v1855_v61  ;;  %v2154_v57 = vmul.f32 -1.442695, %v1856_v31  ;;  %v2153_v54 = vmul.f32 -1.442695, %v1855_v61 }
0x10a4   :  { %2389 = vtanh.f32 %v1856_v31 }
0x10a9   :  { %v2388_v16 = vpop.eup %2387 }
0x10aa   :  { %v2390_v37 = vpop.eup %2389  ;;  %1939 = vrot.lane.b32.xlu1 %v2388_v16, %s2454_s4 }
0x10ab   :  { %1941 = vrot.lane.b32.xlu2 %v2390_v37, %s2454_s4 }
0x10af   :  { %v1880_v47 = vpop.f32.mrf.mxu3 }
0x10b0   :  { %v1884_v58 = vrot.slane %v1880_v47, 1  ;;  %v1887_v50 = vadd.f32 %v1880_v47, %v2611_v23 }
0x10b2   :  { %v1888_v7 = vadd.f32 %v1884_v58, %v2617_v34  ;;  %2391 = vtanh.f32 %v1887_v50  ;;  %306 = vrot.lane.b32.xlu1 %v2661_v13, %s2455_s9  ;;  %v2155_v39 = vmul.f32 -1.442695, %v1887_v50 }
0x10b4   :  { %2393 = vtanh.f32 %v1888_v7  ;;  %v2156_v22 = vmul.f32 -1.442695, %v1888_v7 }
0x10b5   :  { %2395 = vpow2.f32 %v2154_v57 }
0x10b8   :  { %v2392_v30 = vpop.eup %2391 }
0x10b9   :  { %2019 = vrot.lane.b32.xlu0 %v2392_v30, %s2454_s4 }
0x10ba   :  { %v2394_v36 = vpop.eup %2393 }
0x10bb   :  { %2021 = vrot.lane.b32.xlu2 %v2394_v36, %s2454_s4  ;;  %v2396_v25 = vpop.eup %2395 }
0x10bc   :  { %v1896_v23 = vadd.f32 1.0, %v2396_v25 }
0x10be   :  { %2397 = vrcp.f32 %v1896_v23  ;;  %v1923_v60 = vand.u32 2147483648, %v1896_v23  ;;  %vm1917_vm15 = vweird.f32 %v1896_v23  ;;  %v1921_v27 = vand.u32 2147483647, %v1896_v23 }
0x10bf   :  { %2399 = vpow2.f32 %v2156_v22 }
0x10c0   :  { %2401 = vpow2.f32 %v2153_v54  ;;  %v1924_v4 = vor.u32 1.1754944e-38, %v1923_v60  ;;  %vm1922_vm3 = vcmp.eq.f32.partialorder %v1921_v27, 8.507059e+37 }
0x10c3   :  { %308 = vrot.lane.b32.xlu2 %v2658_v8, %s2455_s9 }
0x10c4   :  { %v2398_v34 = vpop.eup %2397 }
0x10c5   :  { %v2400_v13 = vpop.eup %2399  ;;  %v1913_v51 = vmul.f32 %v2398_v34, %v1896_v23  ;;  %vm1918_vm2 = vweird.f32 %v2398_v34 }
0x10c6   :  { %v1976_v35 = vadd.f32 1.0, %v2400_v13  ;;  %v2402_v24 = vpop.eup %2401  ;;  %vm1919_vm1 = vmor %vm1917_vm15, %vm1918_vm2 }
0x10c7   :  { %v1914_v59 = vsub.f32 1.0, %v1913_v51  ;;  %v1895_v15 = vadd.f32 1.0, %v2402_v24 }
0x10c8   :  { %2403 = vrcp.f32 %v1976_v35  ;;  %v2003_v30 = vand.u32 2147483648, %v1976_v35  ;;  %vm1997_vm5 = vweird.f32 %v1976_v35  ;;  %v2001_v36 = vand.u32 2147483647, %v1976_v35 }
0x10c9   :  { %v1915_v2 = vmul.f32 %v2398_v34, %v1914_v59  ;;  %2405 = vrcp.f32 %v1895_v15  ;;  %v1908_v59 = vand.u32 2147483648, %v1895_v15  ;;  %vm1902_vm9 = vweird.f32 %v1895_v15 }
0x10ca   :  { %2407 = vpow2.f32 %v2155_v39  ;;  %v2004_v23 = vor.u32 1.1754944e-38, %v2003_v30  ;;  %vm2002_vm7 = vcmp.eq.f32.partialorder %v2001_v36, 8.507059e+37  ;;  %v1906_v24 = vand.u32 2147483647, %v1895_v15 }
0x10cb   :  { %v1916_v8 = vadd.f32 %v2398_v34, %v1915_v2  ;;  %v1909_v39 = vor.u32 1.1754944e-38, %v1908_v59  ;;  %v2011_v30 = vrot.slane %v3034_v38, 1 }
0x10cc   :  { %vm1907_vm12 = vcmp.eq.f32.partialorder %v1906_v24, 8.507059e+37 }
0x10cd   :  { %v1920_v12 = vsel %vm1919_vm1, %v2398_v34, %v1916_v8  ;;  %vm561_vm1 = vcmask 254977  }
0x10ce   :  { %v2404_v1 = vpop.eup %2403  ;;  %v3079_v53 = vsel %vm1922_vm3, %v1924_v4, %v1920_v12  ;;  %vm572_vm3 = vcmask 522502  }
0x10cf   :  { %v1993_v29 = vmul.f32 %v2404_v1, %v1976_v35  ;;  %v2406_v44 = vpop.eup %2405  ;;  %vm1998_vm4 = vweird.f32 %v2404_v1 }
0x10d0   :  { %v2408_v16 = vpop.eup %2407  ;;  %v1898_v37 = vmul.f32 %v2406_v44, %v1895_v15  ;;  %vm1999_vm6 = vmor %vm1997_vm5, %vm1998_vm4  ;;  %vm1903_vm8 = vweird.f32 %v2406_v44  ;;  %vm821_vm4 = vcmask 521477   ;;  %vm323_vm5 = vcmask 523527  }
0x10d1   :  { %v1994_v31 = vsub.f32 1.0, %v1993_v29  ;;  %v1975_v47 = vadd.f32 1.0, %v2408_v16  ;;  %vm1904_vm10 = vmor %vm1902_vm9, %vm1903_vm8  ;;  %vm810_vm8 = vcmask 256002   ;;  %vm1321_vm9 = vcmask 519427  }
0x10d2   :  { %v1899_v50 = vsub.f32 1.0, %v1898_v37 }
0x10d3   :  { %v1995_v58 = vmul.f32 %v2404_v1, %v1994_v31  ;;  %2409 = vrcp.f32 %v1975_v47  ;;  %vm1982_vm14 = vweird.f32 %v1975_v47 }
0x10d4   :  { %v1900_v57 = vmul.f32 %v2406_v44, %v1899_v50 }
0x10d5   :  { %v1996_v7 = vadd.f32 %v2404_v1, %v1995_v58 }
0x10d6   :  { %v1901_v13 = vadd.f32 %v2406_v44, %v1900_v57 }
0x10d7   :  { %v2000_v25 = vsel %vm1999_vm6, %v2404_v1, %v1996_v7  ;;  %vm1060_vm6 = vcmask 257027  }
0x10d8   :  { %v3083_v34 = vsel %vm2002_vm7, %v2004_v23, %v2000_v25  ;;  %v1905_v35 = vsel %vm1904_vm10, %v2406_v44, %v1901_v13  ;;  %v1986_v44 = vand.u32 2147483647, %v1975_v47  ;;  %vm1071_vm7 = vcmask 520452  }
0x10d9   :  { %v2410_v22 = vpop.eup %2409  ;;  %v3087_v60 = vsel %vm1907_vm12, %v1909_v39, %v1905_v35  ;;  %vm1560_vm10 = vcmask 259077   ;;  %vm1820_vm12 = vcmask 517377  }
0x10da   :  { %v1978_v2 = vmul.f32 %v2410_v22, %v1975_v47  ;;  %vm1983_vm13 = vweird.f32 %v2410_v22  ;;  %vm1987_vm15 = vcmp.eq.f32.partialorder %v1986_v44, 8.507059e+37 }
0x10db   :  { %vm1984_vm2 = vmor %vm1982_vm14, %vm1983_vm13  ;;  %vm1310_vm13 = vcmask 258052   ;;  %vm1571_vm14 = vcmask 518402  }
0x10dc   :  { %v1979_v8 = vsub.f32 1.0, %v1978_v2 }
0x10de   :  { %v1980_v29 = vmul.f32 %v2410_v22, %v1979_v8 }
0x10e0   :  { %v1981_v15 = vadd.f32 %v2410_v22, %v1980_v29 }
0x1105   :  { %v1942_v62 = vpop.permute.xlu2 %1941 }
0x1106   :  { %v1946_v61 = vmul.f32 %v1942_v62, %v3079_v53  ;;  %v1988_v62 = vand.u32 2147483648, %v1975_v47 }
0x1108   :  { %1951 = vrot.lane.b32.xlu0 %v1946_v61, %s2455_s9  ;;  %v1985_v61 = vsel %vm1984_vm2, %v2410_v22, %v1981_v15  ;;  %v1989_v31 = vor.u32 1.1754944e-38, %v1988_v62  ;;  %vm2057_vm2 = vcmask 261127  }
0x110a   :  { %v3097_v16 = vsel %vm1987_vm15, %v1989_v31, %v1985_v61  ;;  %vm2068_vm15 = vcmask 516352  }
0x110b   :  { %v2015_v36 = vmul.f32 %v2011_v30, %v3097_v16 }
0x1115   :  { %v2022_v54 = vpop.permute.xlu2 %2021 }
0x1116   :  { %v2026_v51 = vmul.f32 %v2022_v54, %v3083_v34 }
0x1118   :  { %2031 = vrot.lane.b32.xlu0 %v2026_v51, %s2455_s9 }
0x111c   :  { %v1940_v1 = vpop.permute.xlu1 %1939 }
0x111d   :  { %v309_v27 = vpop.permute.xlu2 %308  ;;  %v1945_v12 = vmul.f32 %v1940_v1, %v3087_v60 }
0x111e   :  { %314 = vst.msk [vmem:[#allocation2 + $0x8] sm:$0x1] %vm312_vm11, %v309_v27 }
0x111f   :  { %1949 = vrot.lane.b32.xlu2 %v1945_v12, %s2455_s9 }
0x1120   :  { %317 = vrot.lane.b32.xlu0 %v2669_v20, %s2454_s4 }
0x1124   :  { %v307_v4 = vpop.permute.xlu1 %306 }
0x1125   :  { %313 = vst.msk [vmem:[#allocation2] sm:$0x1] %vm312_vm11, %v307_v4  ;;  %vm1809_vm11 = vcmask 260102  }
0x1127   :  { %555 = vrot.lane.b32.xlu2 %v2726_v32, %s2455_s9  ;;  %v1932_v32 = vrot.slane %v3028_v41, 7 }
0x1128   :  { %557 = vrot.lane.b32.xlu0 %v2728_v33, %s2455_s9 }
0x112b   :  { %v2020_v20 = vpop.permute.xlu0 %2019 }
0x112c   :  { %v2025_v37 = vmul.f32 %v2020_v20, %v3097_v16 }
0x112e   :  { %2029 = vrot.lane.b32.xlu1 %v2025_v37, %s2455_s9 }
0x112f   :  { %568 = vrot.lane.b32.xlu2 %v2737_v42, %s2454_s4  ;;  %v1936_v42 = vmul.f32 %v1932_v32, %v3079_v53 }
0x1130   :  { %804 = vrot.lane.b32.xlu0 %v2794_v45, %s2455_s9 }
0x1136   :  { %319 = vrot.lane.b32.xlu1 %v2666_v18, %s2454_s4  ;;  %v1931_v18 = vrot.slane %v3038_v55, 7 }
0x1137   :  { %815 = vrot.lane.b32.xlu2 %v2803_v14, %s2454_s4 }
0x1138   :  { %1056 = vrot.lane.b32.xlu0 %v2875_v9, %s2455_s9  ;;  %v1935_v33 = vmul.f32 %v1931_v18, %v3087_v60 }
0x113e   :  { %566 = vrot.lane.b32.xlu1 %v2734_v40, %s2454_s4 }
0x113f   :  { %1054 = vrot.lane.b32.xlu2 %v2873_v5, %s2455_s9 }
0x1146   :  { %806 = vrot.lane.b32.xlu1 %v2797_v46, %s2455_s9 }
0x1147   :  { %1067 = vrot.lane.b32.xlu2 %v2884_v26, %s2454_s4 }
0x114e   :  { %817 = vrot.lane.b32.xlu1 %v2805_v48, %s2454_s4 }
0x1156   :  { %1065 = vrot.lane.b32.xlu1 %v2882_v21, %s2454_s4  ;;  %v2012_v21 = vrot.slane %v3044_v0, 1 }
0x1158   :  { %v2016_v41 = vmul.f32 %v2012_v21, %v3083_v34 }
0x1179   :  { %v1950_v40 = vpop.permute.xlu2 %1949 }
0x117a   :  { %v1955_v45 = vadd.f32 %v1950_v40, %v1935_v33  ;;  %v1952_v46 = vpop.permute.xlu0 %1951 }
0x117b   :  { %v1956_v14 = vadd.f32 %v1952_v46, %v1936_v42 }
0x117c   :  { %2411 = vtanh.f32 %v1955_v45 }
0x117d   :  { %2413 = vtanh.f32 %v1956_v14 }
0x1181   :  { %v556_v5 = vpop.permute.xlu2 %555 }
0x1182   :  { %v2412_v48 = vpop.eup %2411  ;;  %562 = vst.msk [vmem:[#allocation2] sm:$0x2] %vm561_vm1, %v556_v5 }
0x1183   :  { %v2414_v9 = vpop.eup %2413  ;;  %1961 = vrot.lane.b32.xlu2 %v2412_v48, %s2454_s4 }
0x1184   :  { %1963 = vrot.lane.b32.xlu0 %v2414_v9, %s2454_s4 }
0x1189   :  { %v569_v26 = vpop.permute.xlu2 %568 }
0x118a   :  { %574 = vst.msk [vmem:[#allocation2 + $0x8] sm:$0x40] %vm572_vm3, %v569_v26  ;;  %v2032_v55 = vpop.permute.xlu0 %2031 }
0x118b   :  { %v2036_v47 = vadd.f32 %v2032_v55, %v2016_v41  ;;  %1315 = vrot.lane.b32.xlu2 %v2941_v52, %s2454_s4 }
0x118d   :  { %2415 = vtanh.f32 %v2036_v47 }
0x1191   :  { %v816_v58 = vpop.permute.xlu2 %815 }
0x1192   :  { %822 = vst.msk [vmem:[#allocation2] sm:$0x20] %vm821_vm4, %v816_v58  ;;  %v318_v50 = vpop.permute.xlu0 %317 }
0x1193   :  { %v2416_v7 = vpop.eup %2415  ;;  %324 = vst.msk [vmem:[#allocation2] sm:$0x80] %vm323_vm5, %v318_v50  ;;  %1556 = vrot.lane.b32.xlu2 %v2996_v43, %s2455_s9 }
0x1194   :  { %2043 = vrot.lane.b32.xlu0 %v2416_v7, %s2454_s4 }
0x1199   :  { %v1055_v0 = vpop.permute.xlu2 %1054 }
0x119a   :  { %1061 = vst.msk [vmem:[#allocation2] sm:$0x8] %vm1060_vm6, %v1055_v0  ;;  %v558_v52 = vpop.permute.xlu0 %557 }
0x119b   :  { %563 = vst.msk [vmem:[#allocation2 + $0x8] sm:$0x2] %vm561_vm1, %v558_v52  ;;  %1803 = vrot.lane.b32.xlu2 %v3048_v63, %s2455_s9  ;;  %vm2083_vm1 = vcmask 516096  }
0x119c   :  { %1304 = vrot.lane.b32.xlu0 %v2933_v3, %s2455_s9 }
0x11a0   :  { %v2030_v43 = vpop.permute.xlu1 %2029 }
0x11a1   :  { %v2035_v57 = vadd.f32 %v2030_v43, %v2015_v36  ;;  %v1068_v25 = vpop.permute.xlu2 %1067 }
0x11a2   :  { %1073 = vst.msk [vmem:[#allocation2 + $0x8] sm:$0x10] %vm1071_vm7, %v1068_v25  ;;  %v805_v23 = vpop.permute.xlu0 %804 }
0x11a3   :  { %2417 = vtanh.f32 %v2035_v57  ;;  %811 = vst.msk [vmem:[#allocation2] sm:$0x4] %vm810_vm8, %v805_v23  ;;  %1816 = vrot.lane.b32.xlu2 %v3059_v19, %s2454_s4 }
0x11a4   :  { %1317 = vrot.lane.b32.xlu0 %v2944_v56, %s2454_s4 }
0x11a8   :  { %v320_v3 = vpop.permute.xlu1 %319 }
0x11a9   :  { %v2418_v38 = vpop.eup %2417  ;;  %325 = vst.msk [vmem:[#allocation2 + $0x8] sm:$0x80] %vm323_vm5, %v320_v3 }
0x11aa   :  { %2041 = vrot.lane.b32.xlu1 %v2418_v38, %s2454_s4  ;;  %v1057_v63 = vpop.permute.xlu0 %1056 }
0x11ab   :  { %1062 = vst.msk [vmem:[#allocation2 + $0x8] sm:$0x8] %vm1060_vm6, %v1057_v63 }
0x11ac   :  { %1565 = vrot.lane.b32.xlu0 %v3002_v49, %s2454_s4 }
0x11b0   :  { %v567_v22 = vpop.permute.xlu1 %566 }
0x11b1   :  { %573 = vst.msk [vmem:[#allocation2] sm:$0x40] %vm572_vm3, %v567_v22  ;;  %vm2081_vm3 = vcmask 523271  }
0x11b2   :  { %1306 = vrot.lane.b32.xlu1 %v2935_v11, %s2455_s9 }
0x11b4   :  { %1805 = vrot.lane.b32.xlu0 %v3050_v6, %s2455_s9 }
0x11b8   :  { %v807_v56 = vpop.permute.xlu1 %806 }
0x11b9   :  { %812 = vst.msk [vmem:[#allocation2 + $0x8] sm:$0x4] %vm810_vm8, %v807_v56 }
0x11ba   :  { %1554 = vrot.lane.b32.xlu1 %v2993_v10, %s2455_s9 }
0x11c0   :  { %v818_v19 = vpop.permute.xlu1 %817 }
0x11c1   :  { %823 = vst.msk [vmem:[#allocation2 + $0x8] sm:$0x20] %vm821_vm4, %v818_v19 }
0x11c2   :  { %1567 = vrot.lane.b32.xlu1 %v3004_v28, %s2454_s4 }
0x11c8   :  { %v1066_v49 = vpop.permute.xlu1 %1065 }
0x11c9   :  { %1072 = vst.msk [vmem:[#allocation2] sm:$0x10] %vm1071_vm7, %v1066_v49 }
0x11ca   :  { %1814 = vrot.lane.b32.xlu1 %v3057_v17, %s2454_s4 }
0x11dd   :  { %v1962_v11 = vpop.permute.xlu2 %1961 }
0x11de   :  { %v1967_v6 = vmul.f32 %v1962_v11, %v3087_v60 }
0x11e0   :  { %2051 = vrot.lane.b32.xlu0 %v1967_v6, %s2455_s9 }
0x11e5   :  { %v1316_v54 = vpop.permute.xlu2 %1315 }
0x11e6   :  { %1322 = vst.msk [vmem:[#allocation2] sm:$0x8] %vm1321_vm9, %v1316_v54 }
0x11ed   :  { %v1557_v10 = vpop.permute.xlu2 %1556 }
0x11ee   :  { %1562 = vst.msk [vmem:[#allocation2 + $0x8] sm:$0x20] %vm1560_vm10, %v1557_v10 }
0x11f5   :  { %v1804_v28 = vpop.permute.xlu2 %1803 }
0x11f6   :  { %1810 = vst.msk [vmem:[#allocation2] sm:$0x40] %vm1809_vm11, %v1804_v28  ;;  %v1964_v13 = vpop.permute.xlu0 %1963 }
0x11f7   :  { %v1968_v17 = vmul.f32 %v1964_v13, %v3079_v53 }
0x11f9   :  { %2053 = vrot.lane.b32.xlu1 %v1968_v17, %s2455_s9  ;;  %v2071_v59 = vrot.slane %v1968_v17, 7 }
0x11fd   :  { %v1817_v51 = vpop.permute.xlu2 %1816 }
0x11fe   :  { %1822 = vst.msk [vmem:[#allocation2 + $0x8] sm:$0x2] %vm1820_vm12, %v1817_v51 }
0x1201   :  { %2072 = vrot.lane.b32.xlu1 %v2071_v59, %s2455_s9 }
0x1206   :  { %v2044_v24 = vpop.permute.xlu0 %2043 }
0x1207   :  { %v2048_v2 = vmul.f32 %v2044_v24, %v3083_v34 }
0x1209   :  { %2064 = vrot.lane.b32.xlu0 %v2048_v2, %s2454_s4 }
0x120e   :  { %v1305_v35 = vpop.permute.xlu0 %1304 }
0x120f   :  { %1311 = vst.msk [vmem:[#allocation2] sm:$0x10] %vm1310_vm13, %v1305_v35 }
0x1216   :  { %v1318_v39 = vpop.permute.xlu0 %1317 }
0x1217   :  { %1323 = vst.msk [vmem:[#allocation2 + $0x8] sm:$0x8] %vm1321_vm9, %v1318_v39 }
0x121c   :  { %v2042_v53 = vpop.permute.xlu1 %2041 }
0x121d   :  { %v2047_v8 = vmul.f32 %v2042_v53, %v3097_v16 }
0x121e   :  { %v1566_v1 = vpop.permute.xlu0 %1565 }
0x121f   :  { %2062 = vrot.lane.b32.xlu2 %v2047_v8, %s2454_s4  ;;  %1572 = vst.msk [vmem:[#allocation2] sm:$0x4] %vm1571_vm14, %v1566_v1  ;;  %v2075_v27 = vrot.slane %v2047_v8, 1 }
0x1224   :  { %v1307_v60 = vpop.permute.xlu1 %1306 }
0x1225   :  { %1312 = vst.msk [vmem:[#allocation2 + $0x8] sm:$0x10] %vm1310_vm13, %v1307_v60 }
0x1226   :  { %v1806_v34 = vpop.permute.xlu0 %1805 }
0x1227   :  { %2076 = vrot.lane.b32.xlu2 %v2075_v27, %s2454_s4  ;;  %1811 = vst.msk [vmem:[#allocation2 + $0x8] sm:$0x40] %vm1809_vm11, %v1806_v34 }
0x122c   :  { %v1555_v12 = vpop.permute.xlu1 %1554 }
0x122d   :  { %1561 = vst.msk [vmem:[#allocation2] sm:$0x20] %vm1560_vm10, %v1555_v12 }
0x1234   :  { %v1568_v29 = vpop.permute.xlu1 %1567 }
0x1235   :  { %1573 = vst.msk [vmem:[#allocation2 + $0x8] sm:$0x4] %vm1571_vm14, %v1568_v29 }
0x123c   :  { %v1815_v15 = vpop.permute.xlu1 %1814 }
0x123d   :  { %1821 = vst.msk [vmem:[#allocation2] sm:$0x2] %vm1820_vm12, %v1815_v15 }
0x1252   :  { %v2052_v4 = vpop.permute.xlu0 %2051 }
0x1253   :  { %2058 = vst.msk [vmem:[#allocation2] sm:$0x80] %vm2057_vm2, %v2052_v4 }
0x126b   :  { %v2054_v62 = vpop.permute.xlu1 %2053 }
0x126c   :  { %2059 = vst.msk [vmem:[#allocation2 + $0x8] sm:$0x80] %vm2057_vm2, %v2054_v62 }
0x1273   :  { %v2073_v61 = vpop.permute.xlu1 %2072 }
0x1279   :  { %v2063_v44 = vpop.permute.xlu2 %2062 }
0x127a   :  { %2069 = vst.msk [vmem:[#allocation2] sm:$0x1] %vm2068_vm15, %v2063_v44 }
0x127b   :  { %v2065_v31 = vpop.permute.xlu0 %2064 }
0x127c   :  { %2070 = vst.msk [vmem:[#allocation2 + $0x8] sm:$0x1] %vm2068_vm15, %v2065_v31  ;;  %v2080_v16 = vsel %vm39_vm0, %v2073_v61, %v2065_v31 }
0x127d   :  { %2084 = vst.msk [vmem:[%s3208_s6 + $0x1] sm:$0x1] %vm2083_vm1, %v2080_v16 }
0x127e   :  { %2097 = dma.vmem_to_hbm [thread:$0]  %s2090_s25, 256, %s2092_s28, [#allocation3], %s2457_s1, %s2457_s1, %s2458_s7  }
0x1281   :  { %v2077_v20 = vpop.permute.xlu2 %2076 }
0x1282   :  { %v2079_v37 = vsel %vm39_vm0, %v2052_v4, %v2077_v20 }
0x1283   :  { %2082 = vst.msk [vmem:[%s3208_s6 - $0x7] sm:$0x80] %vm2081_vm3, %v2079_v37 }
0x1284   :  { %2451 = dma.done.wait [#allocation3], 256  }
0x1285   :  { %2452 = vsyncadd [#allocation3], 4294967040 }
0x1286   :  { %2106 = vsyncpa [#allocation3], 1 }

</bundles_post_ra>
